<compile_context>
chip_gen: v7x
topology: tpu7x:2x2x1
jax: 0.10.0
libtpu: 0.0.40
codegen_flags: <defaults>
</compile_context>

<pallas_src>
import jax
import jax.numpy as jnp
from jax.experimental import pallas as pl
from jax.experimental.pallas import tpu as pltpu

IN_FEATURES = 9540
IN_PAD = 9600            # next multiple of 128 (unmasked DMAs / clean MXU K-steps)
H1 = 128
H2 = 128
H3 = 64
NUM_CLASSES = 3
OUT_PAD = 128            # lane-dense output slab; wrapper slices back to 3
DEFAULT_TB = 256         # batch tile (rows per grid step)
VMEM_LIMIT_BYTES = 48 << 20  # <= 64 MiB so it is legal on v7x as well as v5e/v6e


def _round_up(n, m):
    return ((n + m - 1) // m) * m


def mlp_kernel(x_ref, w1_ref, b1_ref, w2_ref, b2_ref, w3_ref, b3_ref,
               w4_ref, b4_ref, o_ref):
    # Layer 1: Linear(9600-padded -> 128) + ReLU. bf16 operands, f32 accumulate.
    h = jnp.dot(x_ref[...], w1_ref[...], preferred_element_type=jnp.float32)
    h = jnp.maximum(h + b1_ref[...], 0.0)
    # Layer 2: Linear(128 -> 128) + ReLU.
    h = jnp.dot(h.astype(jnp.bfloat16), w2_ref[...],
                preferred_element_type=jnp.float32)
    h = jnp.maximum(h + b2_ref[...], 0.0)
    # Layer 3: Linear(128 -> 64) + ReLU.
    h = jnp.dot(h.astype(jnp.bfloat16), w3_ref[...],
                preferred_element_type=jnp.float32)
    h = jnp.maximum(h + b3_ref[...], 0.0)
    # Layer 4: Linear(64 -> 3), computed on a zero-padded 128-wide weight slab.
    logits = jnp.dot(h.astype(jnp.bfloat16), w4_ref[...],
                     preferred_element_type=jnp.float32)
    logits = logits + b4_ref[...]
    # Mask padded columns to -inf so softmax is exactly over the 3 real classes.
    col = jax.lax.broadcasted_iota(jnp.int32, logits.shape, 1)
    logits = jnp.where(col < NUM_CLASSES, logits, -jnp.inf)
    # Softmax over the class dimension (PyTorch nn.Softmax() on 2D -> dim=1).
    m = jnp.max(logits, axis=-1, keepdims=True)
    e = jnp.exp(logits - m)
    o_ref[...] = e / jnp.sum(e, axis=-1, keepdims=True)


def prepare_params(params):
    """One-time param prep: transpose-free (already (in,out)), pad, cast to bf16."""
    w1, b1, w2, b2, w3, b3, w4, b4 = params
    w1p = jnp.pad(w1.astype(jnp.float32),
                  ((0, IN_PAD - IN_FEATURES), (0, 0))).astype(jnp.bfloat16)
    w4p = (jnp.zeros((H3, OUT_PAD), jnp.float32)
           .at[:, :NUM_CLASSES].set(w4)).astype(jnp.bfloat16)
    b4p = jnp.zeros((1, OUT_PAD), jnp.float32).at[:, :NUM_CLASSES].set(b4)
    return (w1p, b1.reshape(1, H1).astype(jnp.float32),
            w2.astype(jnp.bfloat16), b2.reshape(1, H2).astype(jnp.float32),
            w3.astype(jnp.bfloat16), b3.reshape(1, H3).astype(jnp.float32),
            w4p, b4p)


def neural_network_forward(x, prepared_params, *, tb=DEFAULT_TB):
    """x: (B, ...) -> flattened to (B, IN_FEATURES). Returns (B, NUM_CLASSES) f32."""
    B = x.shape[0]
    x2d = x.reshape(B, -1).astype(jnp.float32)
    assert x2d.shape[1] == IN_FEATURES

    # Pick a batch tile: at most `tb`, at least a full 8-sublane multiple of B.
    TB = min(tb, _round_up(max(B, 1), 8))
    n_tiles = pl.cdiv(B, TB)
    Bp = n_tiles * TB

    # Pad features to IN_PAD and batch to a TB multiple, then cast to bf16.
    x2d = jnp.pad(x2d, ((0, Bp - B), (0, IN_PAD - IN_FEATURES)))
    xb = x2d.astype(jnp.bfloat16)

    w1p, b1, w2, b2, w3, b3, w4p, b4p = prepared_params

    def resident(shape):
        # Weights/biases: constant block index -> stay resident in VMEM across
        # grid steps (Pallas skips re-DMA for unchanged block indices).
        nd = len(shape)
        return pl.BlockSpec(shape, lambda i, _nd=nd: (0,) * _nd)

    in_specs = [
        pl.BlockSpec((TB, IN_PAD), lambda i: (i, 0)),   # x tile moves with grid
        resident(w1p.shape), resident(b1.shape),
        resident(w2.shape), resident(b2.shape),
        resident(w3.shape), resident(b3.shape),
        resident(w4p.shape), resident(b4p.shape),
    ]

    out_padded = pl.pallas_call(
        mlp_kernel,
        out_shape=jax.ShapeDtypeStruct((Bp, OUT_PAD), jnp.float32),
        grid_spec=pltpu.PrefetchScalarGridSpec(
            num_scalar_prefetch=0,
            grid=(n_tiles,),
            in_specs=in_specs,
            out_specs=pl.BlockSpec((TB, OUT_PAD), lambda i: (i, 0)),
        ),
        compiler_params=pltpu.CompilerParams(
            dimension_semantics=("parallel",),   # shard batch tiles across TCs (v7x)
            vmem_limit_bytes=VMEM_LIMIT_BYTES,
        ),
    )(xb, w1p, b1, w2, b2, w3, b3, w4p, b4p)
    # TODO(synk): for very large TB (>=512) a K-tiled layer-1 grid axis with a
    # VMEM accumulator would further cap the per-step footprint; not needed at TB<=256.
    return out_padded[:B, :NUM_CLASSES]


def init_params(key):
    """Deterministic init mimicking nn.Linear defaults (U(-1/sqrt(in), 1/sqrt(in)))."""
    dims = [(IN_FEATURES, H1), (H1, H2), (H2, H3), (H3, NUM_CLASSES)]
    params = []
    for (fan_in, fan_out) in dims:
        key, kw, kb = jax.random.split(key, 3)
        bound = 1.0 / jnp.sqrt(jnp.float32(fan_in))
        w = jax.random.uniform(kw, (fan_in, fan_out), jnp.float32, -bound, bound)
        b = jax.random.uniform(kb, (fan_out,), jnp.float32, -bound, bound)
        params.extend([w, b])
    return tuple(params)


if __name__ == "__main__":
    key = jax.random.PRNGKey(0)
    key, kx = jax.random.split(key)
    B = 8
    x = jax.random.normal(kx, (B, IN_FEATURES), jnp.float32)
    params = init_params(key)
    prepared = prepare_params(params)

    probs = neural_network_forward(x, prepared)
    probs = jax.block_until_ready(probs)

    # Pure-JAX reference with the same bf16-operand / f32-accumulate recipe.
    w1, b1, w2, b2, w3, b3, w4, b4 = params

    def bf16_dot(a, w):
        return jnp.dot(a.astype(jnp.bfloat16), w.astype(jnp.bfloat16),
                       preferred_element_type=jnp.float32)

    h = jnp.maximum(bf16_dot(x, w1) + b1, 0.0)
    h = jnp.maximum(bf16_dot(h, w2) + b2, 0.0)
    h = jnp.maximum(bf16_dot(h, w3) + b3, 0.0)
    ref = jax.nn.softmax(bf16_dot(h, w4) + b4, axis=-1)

    assert probs.shape == (B, NUM_CLASSES)
    assert jnp.allclose(jnp.sum(probs, axis=-1), 1.0, atol=1e-5)
    assert jnp.allclose(probs, ref, atol=5e-3, rtol=5e-3)
    print("KERNEL_OK")
</pallas_src>

<mosaic_0001>
module attributes {stable_mosaic.version = 11 : i64} {
  func.func @mlp_kernel(%arg0: i32, %arg1: memref<8x9600xbf16, #tpu.memory_space<vmem>>, %arg2: memref<9600x128xbf16, #tpu.memory_space<vmem>>, %arg3: memref<1x128xf32, #tpu.memory_space<vmem>>, %arg4: memref<128x128xbf16, #tpu.memory_space<vmem>>, %arg5: memref<1x128xf32, #tpu.memory_space<vmem>>, %arg6: memref<128x64xbf16, #tpu.memory_space<vmem>>, %arg7: memref<1x64xf32, #tpu.memory_space<vmem>>, %arg8: memref<64x128xbf16, #tpu.memory_space<vmem>>, %arg9: memref<1x128xf32, #tpu.memory_space<vmem>>, %arg10: memref<8x128xf32, #tpu.memory_space<vmem>>) attributes {dimension_semantics = [#tpu.dimension_semantics<parallel>], iteration_bounds = array<i64: 1>, scalar_prefetch = 0 : i64, scratch_operands = 0 : i64, tpu.core_type = #tpu.core_type<tc>, window_params = [{transform_indices = @transform_0, window_bounds = array<i64: 8, 9600>}, {pipeline_mode = #tpu.pipeline_mode<synchronous>, transform_indices = @transform_1, window_bounds = array<i64: 9600, 128>}, {pipeline_mode = #tpu.pipeline_mode<synchronous>, transform_indices = @transform_2, window_bounds = array<i64: 1, 128>}, {pipeline_mode = #tpu.pipeline_mode<synchronous>, transform_indices = @transform_3, window_bounds = array<i64: 128, 128>}, {pipeline_mode = #tpu.pipeline_mode<synchronous>, transform_indices = @transform_4, window_bounds = array<i64: 1, 128>}, {pipeline_mode = #tpu.pipeline_mode<synchronous>, transform_indices = @transform_5, window_bounds = array<i64: 128, 64>}, {pipeline_mode = #tpu.pipeline_mode<synchronous>, transform_indices = @transform_6, window_bounds = array<i64: 1, 64>}, {pipeline_mode = #tpu.pipeline_mode<synchronous>, transform_indices = @transform_7, window_bounds = array<i64: 64, 128>}, {pipeline_mode = #tpu.pipeline_mode<synchronous>, transform_indices = @transform_8, window_bounds = array<i64: 1, 128>}, {transform_indices = @transform_9, window_bounds = array<i64: 8, 128>}]} {
    %c0 = arith.constant 0 : index
    %c0_0 = arith.constant 0 : index
    %0 = vector.load %arg1[%c0, %c0_0] : memref<8x9600xbf16, #tpu.memory_space<vmem>>, vector<8x9600xbf16>
    %c0_1 = arith.constant 0 : index
    %c0_2 = arith.constant 0 : index
    %1 = vector.load %arg2[%c0_1, %c0_2] : memref<9600x128xbf16, #tpu.memory_space<vmem>>, vector<9600x128xbf16>
    %cst = arith.constant dense<0.000000e+00> : vector<8x128xf32>
    %2 = tpu.matmul %0, %1, %cst {dimension_numbers = #tpu.dot_dimension_numbers<[1], [0], [0], [1], [0, 0, 1, 1], [], []>} : vector<8x9600xbf16>, vector<9600x128xbf16>, vector<8x128xf32> -> vector<8x128xf32>
    %c0_3 = arith.constant 0 : index
    %c0_4 = arith.constant 0 : index
    %3 = vector.load %arg3[%c0_3, %c0_4] : memref<1x128xf32, #tpu.memory_space<vmem>>, vector<1x128xf32>
    %4 = vector.broadcast %3 : vector<1x128xf32> to vector<8x128xf32>
    %5 = arith.addf %2, %4 : vector<8x128xf32>
    %cst_5 = arith.constant 0.000000e+00 : f32
    %6 = vector.broadcast %cst_5 : f32 to vector<8x128xf32>
    %7 = arith.maximumf %5, %6 : vector<8x128xf32>
    %8 = arith.truncf %7 : vector<8x128xf32> to vector<8x128xbf16>
    %c0_6 = arith.constant 0 : index
    %c0_7 = arith.constant 0 : index
    %9 = vector.load %arg4[%c0_6, %c0_7] : memref<128x128xbf16, #tpu.memory_space<vmem>>, vector<128x128xbf16>
    %cst_8 = arith.constant dense<0.000000e+00> : vector<8x128xf32>
    %10 = tpu.matmul %8, %9, %cst_8 {dimension_numbers = #tpu.dot_dimension_numbers<[1], [0], [0], [1], [0, 0, 1, 1], [], []>} : vector<8x128xbf16>, vector<128x128xbf16>, vector<8x128xf32> -> vector<8x128xf32>
    %c0_9 = arith.constant 0 : index
    %c0_10 = arith.constant 0 : index
    %11 = vector.load %arg5[%c0_9, %c0_10] : memref<1x128xf32, #tpu.memory_space<vmem>>, vector<1x128xf32>
    %12 = vector.broadcast %11 : vector<1x128xf32> to vector<8x128xf32>
    %13 = arith.addf %10, %12 : vector<8x128xf32>
    %cst_11 = arith.constant 0.000000e+00 : f32
    %14 = vector.broadcast %cst_11 : f32 to vector<8x128xf32>
    %15 = arith.maximumf %13, %14 : vector<8x128xf32>
    %16 = arith.truncf %15 : vector<8x128xf32> to vector<8x128xbf16>
    %c0_12 = arith.constant 0 : index
    %c0_13 = arith.constant 0 : index
    %17 = vector.load %arg6[%c0_12, %c0_13] : memref<128x64xbf16, #tpu.memory_space<vmem>>, vector<128x64xbf16>
    %cst_14 = arith.constant dense<0.000000e+00> : vector<8x64xf32>
    %18 = tpu.matmul %16, %17, %cst_14 {dimension_numbers = #tpu.dot_dimension_numbers<[1], [0], [0], [1], [0, 0, 1, 1], [], []>} : vector<8x128xbf16>, vector<128x64xbf16>, vector<8x64xf32> -> vector<8x64xf32>
    %c0_15 = arith.constant 0 : index
    %c0_16 = arith.constant 0 : index
    %19 = vector.load %arg7[%c0_15, %c0_16] : memref<1x64xf32, #tpu.memory_space<vmem>>, vector<1x64xf32>
    %20 = vector.broadcast %19 : vector<1x64xf32> to vector<8x64xf32>
    %21 = arith.addf %18, %20 : vector<8x64xf32>
    %cst_17 = arith.constant 0.000000e+00 : f32
    %22 = vector.broadcast %cst_17 : f32 to vector<8x64xf32>
    %23 = arith.maximumf %21, %22 : vector<8x64xf32>
    %24 = arith.truncf %23 : vector<8x64xf32> to vector<8x64xbf16>
    %c0_18 = arith.constant 0 : index
    %c0_19 = arith.constant 0 : index
    %25 = vector.load %arg8[%c0_18, %c0_19] : memref<64x128xbf16, #tpu.memory_space<vmem>>, vector<64x128xbf16>
    %cst_20 = arith.constant dense<0.000000e+00> : vector<8x128xf32>
    %26 = tpu.matmul %24, %25, %cst_20 {dimension_numbers = #tpu.dot_dimension_numbers<[1], [0], [0], [1], [0, 0, 1, 1], [], []>} : vector<8x64xbf16>, vector<64x128xbf16>, vector<8x128xf32> -> vector<8x128xf32>
    %c0_21 = arith.constant 0 : index
    %c0_22 = arith.constant 0 : index
    %27 = vector.load %arg9[%c0_21, %c0_22] : memref<1x128xf32, #tpu.memory_space<vmem>>, vector<1x128xf32>
    %28 = vector.broadcast %27 : vector<1x128xf32> to vector<8x128xf32>
    %29 = arith.addf %26, %28 : vector<8x128xf32>
    %30 = tpu.iota {dimensions = array<i32: 1>} : vector<8x128xi32>
    %c3_i32 = arith.constant 3 : i32
    %31 = vector.broadcast %c3_i32 : i32 to vector<8x128xi32>
    %32 = arith.cmpi slt, %30, %31 : vector<8x128xi32>
    %cst_23 = arith.constant 0xFF800000 : f32
    %33 = vector.broadcast %cst_23 : f32 to vector<8x128xf32>
    %34 = arith.select %32, %29, %33 : vector<8x128xi1>, vector<8x128xf32>
    %cst_24 = arith.constant dense<0xFF800000> : vector<8xf32>
    %35 = vector.multi_reduction <maximumf>, %34, %cst_24 [1] : vector<8x128xf32> to vector<8xf32>
    %36 = vector.shape_cast %35 : vector<8xf32> to vector<8x1xf32>
    %37 = vector.broadcast %36 : vector<8x1xf32> to vector<8x128xf32>
    %38 = arith.subf %34, %37 : vector<8x128xf32>
    %39 = math.exp %38 : vector<8x128xf32>
    %cst_25 = arith.constant dense<0.000000e+00> : vector<8xf32>
    %40 = vector.multi_reduction <add>, %39, %cst_25 [1] : vector<8x128xf32> to vector<8xf32>
    %41 = vector.shape_cast %40 : vector<8xf32> to vector<8x1xf32>
    %42 = vector.broadcast %41 : vector<8x1xf32> to vector<8x128xf32>
    %43 = arith.divf %39, %42 : vector<8x128xf32>
    %c0_26 = arith.constant 0 : index
    %c0_27 = arith.constant 0 : index
    %44 = vector.load %arg10[%c0_26, %c0_27] : memref<8x128xf32, #tpu.memory_space<vmem>>, vector<8x128xf32>
    tpu.vector_store %arg10[%c0_26, %c0_27], %43 {strides = array<i32>} : memref<8x128xf32, #tpu.memory_space<vmem>>, vector<8x128xf32>,
    return
  }
  func.func @transform_0(%arg0: i32) -> (i32, i32) {
    %c0_i32 = arith.constant 0 : i32
    %c0_i32_0 = arith.constant 0 : i32
    return %arg0, %c0_i32 : i32, i32
  }
  func.func @transform_1(%arg0: i32) -> (i32, i32) {
    %c0_i32 = arith.constant 0 : i32
    %c0_i32_0 = arith.constant 0 : i32
    %c0_i32_1 = arith.constant 0 : i32
    return %c0_i32, %c0_i32_0 : i32, i32
  }
  func.func @transform_2(%arg0: i32) -> (i32, i32) {
    %c0_i32 = arith.constant 0 : i32
    %c0_i32_0 = arith.constant 0 : i32
    %c0_i32_1 = arith.constant 0 : i32
    return %c0_i32, %c0_i32_0 : i32, i32
  }
  func.func @transform_3(%arg0: i32) -> (i32, i32) {
    %c0_i32 = arith.constant 0 : i32
    %c0_i32_0 = arith.constant 0 : i32
    %c0_i32_1 = arith.constant 0 : i32
    return %c0_i32, %c0_i32_0 : i32, i32
  }
  func.func @transform_4(%arg0: i32) -> (i32, i32) {
    %c0_i32 = arith.constant 0 : i32
    %c0_i32_0 = arith.constant 0 : i32
    %c0_i32_1 = arith.constant 0 : i32
    return %c0_i32, %c0_i32_0 : i32, i32
  }
  func.func @transform_5(%arg0: i32) -> (i32, i32) {
    %c0_i32 = arith.constant 0 : i32
    %c0_i32_0 = arith.constant 0 : i32
    %c0_i32_1 = arith.constant 0 : i32
    return %c0_i32, %c0_i32_0 : i32, i32
  }
  func.func @transform_6(%arg0: i32) -> (i32, i32) {
    %c0_i32 = arith.constant 0 : i32
    %c0_i32_0 = arith.constant 0 : i32
    %c0_i32_1 = arith.constant 0 : i32
    return %c0_i32, %c0_i32_0 : i32, i32
  }
  func.func @transform_7(%arg0: i32) -> (i32, i32) {
    %c0_i32 = arith.constant 0 : i32
    %c0_i32_0 = arith.constant 0 : i32
    %c0_i32_1 = arith.constant 0 : i32
    return %c0_i32, %c0_i32_0 : i32, i32
  }
  func.func @transform_8(%arg0: i32) -> (i32, i32) {
    %c0_i32 = arith.constant 0 : i32
    %c0_i32_0 = arith.constant 0 : i32
    %c0_i32_1 = arith.constant 0 : i32
    return %c0_i32, %c0_i32_0 : i32, i32
  }
  func.func @transform_9(%arg0: i32) -> (i32, i32) {
    %c0_i32 = arith.constant 0 : i32
    %c0_i32_0 = arith.constant 0 : i32
    return %arg0, %c0_i32 : i32, i32
  }
}

</mosaic_0001>

<bundles_post_ra>
// kernel: tpu_custom_call.1
= control target key start
LH: loop header
LB: loop body
LE: loop exit
PB: predicated region body
PF: predicated region fallthrough
CT: control target
= control target key end

     0   :  { %14 = vsyncpa [#allocation3], 0  ;;  %s9918_s0 = inlined_call_operand.hbm [shape: bf16[8,9600], index: 0, kind: input, shape index: {}]   ;;  %s9919_s1 = inlined_call_operand.hbm [shape: bf16[9600,128], index: 1, kind: input, shape index: {}]   ;;  %s9920_s2 = inlined_call_operand.hbm [shape: f32[1,128], index: 2, kind: input, shape index: {}]   ;;  %s9921_s3 = inlined_call_operand.hbm [shape: bf16[128,128], index: 3, kind: input, shape index: {}]   ;;  %s9922_s4 = inlined_call_operand.hbm [shape: f32[1,128], index: 4, kind: input, shape index: {}]   ;;  %s9923_s5 = inlined_call_operand.vmem [shape: bf16[128,64], index: 5, kind: input, shape index: {}]   ;;  %s9924_s6 = inlined_call_operand.hbm [shape: f32[1,64], index: 6, kind: input, shape index: {}]   ;;  %s9925_s7 = inlined_call_operand.hbm [shape: bf16[64,128], index: 7, kind: input, shape index: {}]   ;;  %s9926_s8 = inlined_call_operand.hbm [shape: f32[1,128], index: 8, kind: input, shape index: {}]   ;;  %s9927_s9 = inlined_call_operand.hbm [shape: f32[8,128], index: 9, kind: output, shape index: {}]  }
   0x1   :  { %15 = vsyncpa [#allocation6], 0 }
   0x2   :  { %16 = vsyncpa [#allocation9], 0 }
   0x3   :  { %17 = vsyncpa [#allocation12], 0 }
   0x4   :  { %18 = vsyncpa [#allocation15], 0 }
   0x5   :  { %19 = vsyncpa [#allocation4], 0  ;;  %s9645_s30 = smov [#allocation5]   ;;  %s9435_s13 = scalar_lea.hbm %s9919_s1, 76800 }
   0x6   :  { %s35_s10 = sshll.u32 %s9645_s30, 4  ;;  %p9436_p0 = scmp.ne.s32.totalorder %s9919_s1, %s9435_s13  ;;  %s36_s10 = int_to_ptr.vmem [resolvable:$true] %s35_s10 }
   0x7   :  { %p9439_p1 = scmp.lt.u32.totalorder %s9435_s13, %s9919_s1 }
   0x9   :  { %p9441_p2 = pnand %p9439_p1, %p9436_p0 }
   0xb   :  { %9444 = shalt.err (!%p9441_p2)
}
   0xc   :  { %s9445_s18 = scalar_lea.vmem %s36_s10, 76800  ;;  %p9450_p4 = scmp.lt.s32.totalorder %s36_s10, %s36_s10 }
   0xd   :  { %p9446_p3 = scmp.ne.s32.totalorder %s36_s10, %s9445_s18  ;;  %p9451_p5 = scmp.lt.s32.totalorder %s9445_s18, %s9445_s18 }
   0xf   :  { %p9452_p6 = por %p9451_p5, %p9450_p4 }
  0x11   :  { %p9453_p7 = pnand %p9452_p6, %p9446_p3 }
  0x13   :  { %9456 = shalt.err (!%p9453_p7)
}
  0x14   :  { %s9646_s19 = smov 64   ;;  %s9647_s20 = smov 4  }
  0x15   :  { %41 = dma.hbm_to_vmem [thread:$0]  %s9919_s1, 76800, %s36_s10, [#allocation6], %s9646_s19, %s9646_s19, %s9647_s20  }
  0x16   :  { %s9648_s23 = smov [#allocation8]   ;;  %s9649_s25 = smov [#allocation11]  }
  0x17   :  { %s57_s24 = sshll.u32 %s9648_s23, 4  ;;  %s82_s26 = sshll.u32 %s9649_s25, 4  ;;  %s58_s24 = int_to_ptr.vmem [resolvable:$true] %s57_s24  ;;  %s83_s26 = int_to_ptr.vmem [resolvable:$true] %s82_s26 }
  0x18   :  { %s9457_s29 = scalar_lea.hbm %s9921_s3, 1024 }
  0x19   :  { %p9458_p8 = scmp.ne.s32.totalorder %s9921_s3, %s9457_s29  ;;  %p9461_p9 = scmp.lt.u32.totalorder %s9457_s29, %s9921_s3 }
  0x1b   :  { %p9463_p10 = pnand %p9461_p9, %p9458_p8 }
  0x1d   :  { %9466 = shalt.err (!%p9463_p10)
}
  0x1e   :  { %s9467_s1 = scalar_lea.vmem %s58_s24, 1024  ;;  %p9472_p12 = scmp.lt.s32.totalorder %s58_s24, %s58_s24 }
  0x1f   :  { %p9468_p11 = scmp.ne.s32.totalorder %s58_s24, %s9467_s1  ;;  %p9473_p13 = scmp.lt.s32.totalorder %s9467_s1, %s9467_s1 }
  0x21   :  { %p9474_p0 = por %p9473_p13, %p9472_p12 }
  0x23   :  { %p9475_p1 = pnand %p9474_p0, %p9468_p11 }
  0x25   :  { %9478 = shalt.err (!%p9475_p1)
}
  0x26   :  { %63 = dma.hbm_to_vmem [thread:$0]  %s9921_s3, 1024, %s58_s24, [#allocation9], %s9646_s19, %s9646_s19, %s9647_s20  }
  0x27   :  { %s9479_s17 = scalar_lea.hbm %s9924_s6, 16 }
  0x28   :  { %p9480_p2 = scmp.ne.s32.totalorder %s9924_s6, %s9479_s17  ;;  %p9483_p3 = scmp.lt.u32.totalorder %s9479_s17, %s9924_s6 }
  0x2a   :  { %p9485_p4 = pnand %p9483_p3, %p9480_p2 }
  0x2c   :  { %9488 = shalt.err (!%p9485_p4)
}
  0x2d   :  { %s9489_s25 = scalar_lea.vmem %s83_s26, 16  ;;  %s9493_s27 = scalar_lea.vmem %s83_s26, 32 }
  0x2e   :  { %p9490_p5 = scmp.ne.s32.totalorder %s83_s26, %s9489_s25  ;;  %p9494_p6 = scmp.lt.s32.totalorder %s83_s26, %s83_s26 }
  0x2f   :  { %p9495_p7 = scmp.lt.s32.totalorder %s9493_s27, %s9489_s25 }
  0x31   :  { %p9496_p8 = por %p9495_p7, %p9494_p6 }
  0x33   :  { %p9497_p9 = pnand %p9496_p8, %p9490_p5 }
  0x35   :  { %9500 = shalt.err (!%p9497_p9)
}
  0x36   :  { %85 = dma.hbm_to_vmem [thread:$0]  %s9924_s6, 16, %s83_s26, [#allocation12]  }
  0x37   :  { %s9650_s28 = smov [#allocation2]   ;;  %s9651_s30 = smov [#allocation7]  }
  0x38   :  { %s26_s29 = sshll.u32 %s9650_s28, 4  ;;  %s48_s11 = sshll.u32 %s9651_s30, 4  ;;  %s27_s29 = int_to_ptr.vmem [resolvable:$true] %s26_s29  ;;  %s49_s11 = int_to_ptr.vmem [resolvable:$true] %s48_s11 }
  0x39   :  { %s9501_s1 = scalar_lea.hbm %s9918_s0, 4800 }
  0x3a   :  { %p9502_p10 = scmp.ne.s32.totalorder %s9918_s0, %s9501_s1  ;;  %p9505_p11 = scmp.lt.u32.totalorder %s9501_s1, %s9918_s0 }
  0x3c   :  { %p9507_p12 = pnand %p9505_p11, %p9502_p10 }
  0x3e   :  { %9510 = shalt.err (!%p9507_p12)
}
  0x3f   :  { %s9511_s6 = scalar_lea.vmem %s27_s29, 4800  ;;  %p9516_p0 = scmp.lt.s32.totalorder %s27_s29, %s27_s29 }
  0x40   :  { %p9512_p13 = scmp.ne.s32.totalorder %s27_s29, %s9511_s6  ;;  %p9517_p1 = scmp.lt.s32.totalorder %s9511_s6, %s9511_s6 }
  0x42   :  { %p9518_p2 = por %p9517_p1, %p9516_p0 }
  0x44   :  { %p9519_p3 = pnand %p9518_p2, %p9512_p13 }
  0x46   :  { %9522 = shalt.err (!%p9519_p3)
}
  0x47   :  { %29 = dma.hbm_to_vmem [thread:$0]  %s9918_s0, 4800, %s27_s29, [#allocation3]  }
  0x48   :  { %s9523_s22 = scalar_lea.hbm %s9920_s2, 16 }
  0x49   :  { %p9524_p4 = scmp.ne.s32.totalorder %s9920_s2, %s9523_s22  ;;  %p9527_p5 = scmp.lt.u32.totalorder %s9523_s22, %s9920_s2 }
  0x4b   :  { %p9529_p6 = pnand %p9527_p5, %p9524_p4 }
  0x4d   :  { %9532 = shalt.err (!%p9529_p6)
}
  0x4e   :  { %s9533_s24 = scalar_lea.vmem %s49_s11, 16  ;;  %s9537_s28 = scalar_lea.vmem %s49_s11, 32 }
  0x4f   :  { %p9534_p7 = scmp.ne.s32.totalorder %s49_s11, %s9533_s24  ;;  %p9538_p8 = scmp.lt.s32.totalorder %s49_s11, %s49_s11 }
  0x50   :  { %p9539_p9 = scmp.lt.s32.totalorder %s9537_s28, %s9533_s24 }
  0x52   :  { %p9540_p10 = por %p9539_p9, %p9538_p8 }
  0x54   :  { %p9541_p11 = pnand %p9540_p10, %p9534_p7 }
  0x56   :  { %9544 = shalt.err (!%p9541_p11)
}
  0x57   :  { %51 = dma.hbm_to_vmem [thread:$0]  %s9920_s2, 16, %s49_s11, [#allocation6]  }
  0x58   :  { %s9652_s30 = smov [#allocation10]   ;;  %s9653_s13 = smov [#allocation13]  }
  0x59   :  { %s70_s12 = sshll.u32 %s9652_s30, 4  ;;  %s91_s1 = sshll.u32 %s9653_s13, 4  ;;  %s71_s12 = int_to_ptr.vmem [resolvable:$true] %s70_s12  ;;  %s92_s1 = int_to_ptr.vmem [resolvable:$true] %s91_s1 }
  0x5a   :  { %s9545_s15 = scalar_lea.hbm %s9922_s4, 16 }
  0x5b   :  { %p9546_p12 = scmp.ne.s32.totalorder %s9922_s4, %s9545_s15  ;;  %p9549_p13 = scmp.lt.u32.totalorder %s9545_s15, %s9922_s4 }
  0x5d   :  { %p9551_p0 = pnand %p9549_p13, %p9546_p12 }
  0x5f   :  { %9554 = shalt.err (!%p9551_p0)
}
  0x60   :  { %s9555_s2 = scalar_lea.vmem %s71_s12, 16  ;;  %s9559_s11 = scalar_lea.vmem %s71_s12, 32 }
  0x61   :  { %p9556_p1 = scmp.ne.s32.totalorder %s71_s12, %s9555_s2  ;;  %p9560_p2 = scmp.lt.s32.totalorder %s71_s12, %s71_s12 }
  0x62   :  { %p9561_p3 = scmp.lt.s32.totalorder %s9559_s11, %s9555_s2 }
  0x64   :  { %p9562_p4 = por %p9561_p3, %p9560_p2 }
  0x66   :  { %p9563_p5 = pnand %p9562_p4, %p9556_p1 }
  0x68   :  { %9566 = shalt.err (!%p9563_p5)
}
  0x69   :  { %73 = dma.hbm_to_vmem [thread:$0]  %s9922_s4, 16, %s71_s12, [#allocation9]  }
  0x6a   :  { %s9567_s25 = scalar_lea.hbm %s9925_s7, 512 }
  0x6b   :  { %p9568_p6 = scmp.ne.s32.totalorder %s9925_s7, %s9567_s25  ;;  %p9571_p7 = scmp.lt.u32.totalorder %s9567_s25, %s9925_s7 }
  0x6d   :  { %p9573_p8 = pnand %p9571_p7, %p9568_p6 }
  0x6f   :  { %9576 = shalt.err (!%p9573_p8)
}
  0x70   :  { %s9577_s0 = scalar_lea.vmem %s92_s1, 512  ;;  %p9582_p10 = scmp.lt.s32.totalorder %s92_s1, %s92_s1 }
  0x71   :  { %p9578_p9 = scmp.ne.s32.totalorder %s92_s1, %s9577_s0  ;;  %p9583_p11 = scmp.lt.s32.totalorder %s9577_s0, %s9577_s0 }
  0x73   :  { %p9584_p12 = por %p9583_p11, %p9582_p10 }
  0x75   :  { %p9585_p13 = pnand %p9584_p12, %p9578_p9 }
  0x77   :  { %9588 = shalt.err (!%p9585_p13)
}
  0x78   :  { %97 = dma.hbm_to_vmem [thread:$0]  %s9925_s7, 512, %s92_s1, [#allocation12], %s9646_s19, %s9646_s19, %s9647_s20  }
  0x79   :  { %s9654_s30 = smov [#allocation14]   ;;  %s9589_s14 = scalar_lea.hbm %s9926_s8, 16 }
  0x7a   :  { %s104_s12 = sshll.u32 %s9654_s30, 4  ;;  %p9590_p0 = scmp.ne.s32.totalorder %s9926_s8, %s9589_s14  ;;  %s105_s12 = int_to_ptr.vmem [resolvable:$true] %s104_s12 }
  0x7b   :  { %p9593_p1 = scmp.lt.u32.totalorder %s9589_s14, %s9926_s8 }
  0x7d   :  { %p9595_p2 = pnand %p9593_p1, %p9590_p0 }
  0x7f   :  { %9598 = shalt.err (!%p9595_p2)
}
  0x80   :  { %s9599_s17 = scalar_lea.vmem %s105_s12, 16  ;;  %s9603_s7 = scalar_lea.vmem %s105_s12, 32 }
  0x81   :  { %p9600_p3 = scmp.ne.s32.totalorder %s105_s12, %s9599_s17  ;;  %p9604_p4 = scmp.lt.s32.totalorder %s105_s12, %s105_s12 }
  0x82   :  { %p9605_p5 = scmp.lt.s32.totalorder %s9603_s7, %s9599_s17 }
  0x84   :  { %p9606_p6 = por %p9605_p5, %p9604_p4 }
  0x86   :  { %p9607_p7 = pnand %p9606_p6, %p9600_p3 }
  0x88   :  { %9610 = shalt.err (!%p9607_p7)
}
  0x89   :  { %107 = dma.hbm_to_vmem [thread:$0]  %s9926_s8, 16, %s105_s12, [#allocation15]  }
  0x8a   :  { %9633 = dma.done.wait [#allocation3], 4800  }
  0x8b   :  { %9634 = vsyncadd [#allocation3], 4294962496 }
  0x8c   :  { %9635 = dma.done.wait [#allocation6], 76816  }
  0x8d   :  { %9636 = vsyncadd [#allocation6], 4294890480 }
  0x8e   :  { %9637 = dma.done.wait [#allocation9], 1040  }
  0x8f   :  { %9638 = vsyncadd [#allocation9], 4294966256 }
  0x90   :  { %9639 = dma.done.wait [#allocation12], 528  }
  0x91   :  { %9640 = vsyncadd [#allocation12], 4294966768 }
  0x92   :  { %9641 = dma.done.wait [#allocation15], 16  }
  0x93   :  { %9642 = vsyncadd [#allocation15], 4294967280  ;;  %v8736_v0 = vld [vmem:[#allocation5 + $0x40] sm:$0xff]   ;;  %v8740_v4 = vld [vmem:[#allocation5 + $0x48] sm:$0xff]   ;;  %vm9656_vm0 = vmmov 0   ;;  %vm7028_vm1 = vcmask 523264  }
  0x94   :  { %v8737_v1 = vld [vmem:[#allocation5] sm:$0xff]   ;;  %7805 = vmatprep.subr.bf16.mxu0 %v8736_v0  ;;  %v8741_v5 = vld [vmem:[#allocation5 + $0x8] sm:$0xff]   ;;  %v8744_v8 = vld [vmem:[#allocation5 + $0x50] sm:$0xff]  }
  0x95   :  { %v8738_v2 = vld [vmem:[#allocation5 + $0xc0] sm:$0xff]   ;;  %7806 = vmatpush3.bf16.msra.mxu0 %v8737_v1  ;;  %v8742_v6 = vld [vmem:[#allocation5 + $0xc8] sm:$0xff]   ;;  %v8745_v9 = vld [vmem:[#allocation5 + $0x10] sm:$0xff]  }
  0x96   :  { %v8739_v3 = vld [vmem:[#allocation5 + $0x80] sm:$0xff]   ;;  %7827 = vmatprep.subr.bf16.mxu1 %v8738_v2  ;;  %7807 = vmatprep.subr.bf16.mxu0 %v8740_v4  ;;  %v8743_v7 = vld [vmem:[#allocation5 + $0x88] sm:$0xff]   ;;  %v8746_v10 = vld [vmem:[#allocation5 + $0xd0] sm:$0xff]  }
  0x97   :  { %7828 = vmatpush3.bf16.msra.mxu1 %v8739_v3  ;;  %v8747_v11 = vld [vmem:[#allocation5 + $0x90] sm:$0xff]   ;;  %v8748_v12 = vld [vmem:[#allocation5 + $0x58] sm:$0xff]   ;;  %v8752_v16 = vld [vmem:[#allocation5 + $0x60] sm:$0xff]  }
  0x98   :  { %7829 = vmatprep.subr.bf16.mxu1 %v8742_v6  ;;  %v8749_v13 = vld [vmem:[#allocation5 + $0x18] sm:$0xff]   ;;  %v8753_v17 = vld [vmem:[#allocation5 + $0x20] sm:$0xff]   ;;  %v8756_v20 = vld [vmem:[#allocation5 + $0x68] sm:$0xff]  }
  0x99   :  { %7808 = vmatpush3.bf16.msra.mxu0 %v8741_v5  ;;  %v8750_v14 = vld [vmem:[#allocation5 + $0xd8] sm:$0xff]   ;;  %v8754_v18 = vld [vmem:[#allocation5 + $0xe0] sm:$0xff]   ;;  %v8757_v21 = vld [vmem:[#allocation5 + $0x28] sm:$0xff]  }
  0x9a   :  { %7809 = vmatprep.subr.bf16.mxu0 %v8744_v8  ;;  %v8751_v15 = vld [vmem:[#allocation5 + $0x98] sm:$0xff]   ;;  %v8755_v19 = vld [vmem:[#allocation5 + $0xa0] sm:$0xff]   ;;  %v8758_v22 = vld [vmem:[#allocation5 + $0xe8] sm:$0xff]  }
  0x9b   :  { %7830 = vmatpush3.bf16.msra.mxu1 %v8743_v7  ;;  %v8759_v23 = vld [vmem:[#allocation5 + $0xa8] sm:$0xff]   ;;  %v8760_v24 = vld [vmem:[#allocation5 + $0x70] sm:$0xff]   ;;  %v8764_v28 = vld [vmem:[#allocation5 + $0x78] sm:$0xff]  }
  0x9c   :  { %7831 = vmatprep.subr.bf16.mxu1 %v8746_v10  ;;  %v8761_v25 = vld [vmem:[#allocation5 + $0x30] sm:$0xff]   ;;  %v8765_v29 = vld [vmem:[#allocation5 + $0x38] sm:$0xff]   ;;  %v8770_v35 = vld [vmem:[#allocation5 + $0x140] sm:$0xff]  }
  0x9d   :  { %7810 = vmatpush3.bf16.msra.mxu0 %v8745_v9  ;;  %v8762_v26 = vld [vmem:[#allocation5 + $0xf0] sm:$0xff]   ;;  %v8766_v30 = vld [vmem:[#allocation5 + $0xf8] sm:$0xff]   ;;  %v8773_v39 = vld [vmem:[#allocation5 + $0x100] sm:$0xff]  }
  0x9e   :  { %7811 = vmatprep.subr.bf16.mxu0 %v8748_v12  ;;  %v8763_v27 = vld [vmem:[#allocation5 + $0xb0] sm:$0xff]   ;;  %v8769_v34 = vld [vmem:[#allocation5 + $0xb8] sm:$0xff]   ;;  %v8774_v40 = vld [vmem:[#allocation5 + $0x1c0] sm:$0xff]  }
  0x9f   :  { %7832 = vmatpush3.bf16.msra.mxu1 %v8747_v11  ;;  %v133_v31 = vld [vmem:[#allocation2] sm:$0xff]  ;;  %v134_v36 = vld [vmem:[#allocation2 + $0x8] sm:$0xff]  ;;  %v8776_v42 = vld [vmem:[#allocation5 + $0x148] sm:$0xff]  }
  0xa0   :  { %7833 = vmatprep.subr.bf16.mxu1 %v8750_v14  ;;  %v7106_v32 = vcombine.low %v133_v31, %v133_v31  ;;  %v7107_v33 = vcombine.high %v133_v31, %v133_v31  ;;  %v7108_v37 = vcombine.low %v134_v36, %v134_v36  ;;  %v7109_v38 = vcombine.high %v134_v36, %v134_v36  ;;  %v8775_v41 = vld [vmem:[#allocation5 + $0x180] sm:$0xff]   ;;  %v8777_v43 = vld [vmem:[#allocation5 + $0x108] sm:$0xff]   ;;  %v8780_v46 = vld [vmem:[#allocation5 + $0x150] sm:$0xff]  }
  0xa1   :  { %7812 = vmatpush3.bf16.msra.mxu0 %v8749_v13  ;;  %v8778_v44 = vld [vmem:[#allocation5 + $0x1c8] sm:$0xff]   ;;  %v8781_v47 = vld [vmem:[#allocation5 + $0x110] sm:$0xff]   ;;  %v8784_v50 = vld [vmem:[#allocation5 + $0x158] sm:$0xff]  }
  0xa2   :  { %7813 = vmatprep.subr.bf16.mxu0 %v8752_v16  ;;  %5273 = vmatprep.mubr.bf16.mxu0 %v7107_v33  ;;  %v8779_v45 = vld [vmem:[#allocation5 + $0x188] sm:$0xff]   ;;  %v8782_v48 = vld [vmem:[#allocation5 + $0x1d0] sm:$0xff]   ;;  %v8785_v51 = vld [vmem:[#allocation5 + $0x118] sm:$0xff]  }
  0xa3   :  { %7834 = vmatpush3.bf16.msra.mxu1 %v8751_v15  ;;  %5313 = vmatprep.mubr.bf16.mxu1 %v7109_v38  ;;  %v8783_v49 = vld [vmem:[#allocation5 + $0x190] sm:$0xff]   ;;  %v8786_v52 = vld [vmem:[#allocation5 + $0x1d8] sm:$0xff]   ;;  %v8788_v54 = vld [vmem:[#allocation5 + $0x160] sm:$0xff]  }
  0xa4   :  { %7835 = vmatprep.subr.bf16.mxu1 %v8754_v18  ;;  %v8787_v53 = vld [vmem:[#allocation5 + $0x198] sm:$0xff]   ;;  %v8789_v55 = vld [vmem:[#allocation5 + $0x120] sm:$0xff]   ;;  %v8792_v58 = vld [vmem:[#allocation5 + $0x168] sm:$0xff]  }
  0xa5   :  { %7814 = vmatpush3.bf16.msra.mxu0 %v8753_v17  ;;  %v8790_v56 = vld [vmem:[#allocation5 + $0x1e0] sm:$0xff]   ;;  %v8793_v59 = vld [vmem:[#allocation5 + $0x128] sm:$0xff]   ;;  %v8796_v62 = vld [vmem:[#allocation5 + $0x170] sm:$0xff]  }
  0xa6   :  { %7815 = vmatprep.subr.bf16.mxu0 %v8756_v20  ;;  %v8791_v57 = vld [vmem:[#allocation5 + $0x1a0] sm:$0xff]   ;;  %v8794_v60 = vld [vmem:[#allocation5 + $0x1e8] sm:$0xff]   ;;  %v8797_v63 = vld [vmem:[#allocation5 + $0x130] sm:$0xff]  }
  0xa7   :  { %7836 = vmatpush3.bf16.msra.mxu1 %v8755_v19  ;;  %v8795_v61 = vld [vmem:[#allocation5 + $0x1a8] sm:$0xff]   ;;  %v8798_v0 = vld [vmem:[#allocation5 + $0x1f0] sm:$0xff]   ;;  %v8800_v2 = vld [vmem:[#allocation5 + $0x178] sm:$0xff]  }
  0xa8   :  { %7837 = vmatprep.subr.bf16.mxu1 %v8758_v22  ;;  %v8799_v1 = vld [vmem:[#allocation5 + $0x1b0] sm:$0xff]   ;;  %v8801_v3 = vld [vmem:[#allocation5 + $0x138] sm:$0xff]   ;;  %v135_v5 = vld [vmem:[#allocation2 + $0x10] sm:$0xff] }
  0xa9   :  { %7816 = vmatpush3.bf16.msra.mxu0 %v8757_v21  ;;  %v8802_v4 = vld [vmem:[#allocation5 + $0x1f8] sm:$0xff]   ;;  %v7110_v6 = vcombine.low %v135_v5, %v135_v5  ;;  %v7111_v7 = vcombine.high %v135_v5, %v135_v5  ;;  %v8806_v9 = vld [vmem:[#allocation5 + $0x240] sm:$0xff]   ;;  %v136_v10 = vld [vmem:[#allocation2 + $0x18] sm:$0xff] }
  0xaa   :  { %7817 = vmatprep.subr.bf16.mxu0 %v8760_v24  ;;  %v8805_v8 = vld [vmem:[#allocation5 + $0x1b8] sm:$0xff]   ;;  %v7112_v11 = vcombine.low %v136_v10, %v136_v10  ;;  %v7113_v12 = vcombine.high %v136_v10, %v136_v10  ;;  %v8809_v13 = vld [vmem:[#allocation5 + $0x200] sm:$0xff]   ;;  %v8812_v16 = vld [vmem:[#allocation5 + $0x248] sm:$0xff]  }
  0xab   :  { %7838 = vmatpush3.bf16.msra.mxu1 %v8759_v23  ;;  %v8810_v14 = vld [vmem:[#allocation5 + $0x2c0] sm:$0xff]   ;;  %v8813_v17 = vld [vmem:[#allocation5 + $0x208] sm:$0xff]   ;;  %v8816_v20 = vld [vmem:[#allocation5 + $0x250] sm:$0xff]  }
  0xac   :  { %7839 = vmatprep.subr.bf16.mxu1 %v8762_v26  ;;  %v8811_v15 = vld [vmem:[#allocation5 + $0x280] sm:$0xff]   ;;  %v8814_v18 = vld [vmem:[#allocation5 + $0x2c8] sm:$0xff]   ;;  %v8817_v21 = vld [vmem:[#allocation5 + $0x210] sm:$0xff]  }
  0xad   :  { %7818 = vmatpush3.bf16.msra.mxu0 %v8761_v25  ;;  %v8815_v19 = vld [vmem:[#allocation5 + $0x288] sm:$0xff]   ;;  %v8818_v22 = vld [vmem:[#allocation5 + $0x2d0] sm:$0xff]   ;;  %v8820_v24 = vld [vmem:[#allocation5 + $0x258] sm:$0xff]  }
  0xae   :  { %7819 = vmatprep.subr.bf16.mxu0 %v8764_v28  ;;  %v8819_v23 = vld [vmem:[#allocation5 + $0x290] sm:$0xff]   ;;  %v8821_v25 = vld [vmem:[#allocation5 + $0x218] sm:$0xff]   ;;  %v8824_v28 = vld [vmem:[#allocation5 + $0x260] sm:$0xff]  }
  0xaf   :  { %7840 = vmatpush3.bf16.msra.mxu1 %v8763_v27  ;;  %v8822_v26 = vld [vmem:[#allocation5 + $0x2d8] sm:$0xff]   ;;  %v8827_v31 = vld [vmem:[#allocation5 + $0x2a0] sm:$0xff]   ;;  %v8829_v33 = vld [vmem:[#allocation5 + $0x228] sm:$0xff]  }
  0xb0   :  { %7841 = vmatprep.subr.bf16.mxu1 %v8766_v30  ;;  %v8823_v27 = vld [vmem:[#allocation5 + $0x298] sm:$0xff]   ;;  %v8826_v30 = vld [vmem:[#allocation5 + $0x2e0] sm:$0xff]   ;;  %v8832_v36 = vld [vmem:[#allocation5 + $0x270] sm:$0xff]  }
  0xb1   :  { %7820 = vmatpush3.bf16.msra.mxu0 %v8765_v29  ;;  %v8825_v29 = vld [vmem:[#allocation5 + $0x220] sm:$0xff]   ;;  %v8834_v38 = vld [vmem:[#allocation5 + $0x2f0] sm:$0xff]  }
  0xb2   :  { %7849 = vmatprep.subr.bf16.mxu0 %v8770_v35  ;;  %v8831_v35 = vld [vmem:[#allocation5 + $0x2a8] sm:$0xff]   ;;  %v8863_v5 = vld [vmem:[#allocation5 + $0x3a0] sm:$0xff]   ;;  %v8868_v10 = vld [vmem:[#allocation5 + $0x370] sm:$0xff]  }
  0xb3   :  { %7842 = vmatpush3.bf16.msra.mxu1 %v8769_v34  ;;  %v8830_v34 = vld [vmem:[#allocation5 + $0x2e8] sm:$0xff]  }
  0xb4   :  { %5274 = vmatmul.mubr.bf16.vlgmr.msra.gmra.mrb[0].mxu0 %v7106_v32  ;;  %7871 = vmatprep.subr.bf16.mxu1 %v8774_v40  ;;  %v8828_v32 = vld [vmem:[#allocation5 + $0x268] sm:$0xff]   ;;  %v8836_v40 = vld [vmem:[#allocation5 + $0x278] sm:$0xff]  }
  0xb5   :  { %7850 = vmatpush3.bf16.msra.mxu0 %v8773_v39  ;;  %5353 = vmatprep.mubr.bf16.mxu0 %v7111_v7  ;;  %v8835_v39 = vld [vmem:[#allocation5 + $0x2b0] sm:$0xff]   ;;  %v8865_v7 = vld [vmem:[#allocation5 + $0x328] sm:$0xff]  }
  0xb6   :  { %5314 = vmatmul.mubr.bf16.vlgmr.msra.gmra.mrb[0].mxu1 %v7108_v37  ;;  %7851 = vmatprep.subr.bf16.mxu0 %v8776_v42  ;;  %v8833_v37 = vld [vmem:[#allocation5 + $0x230] sm:$0xff]   ;;  %v8838_v42 = vld [vmem:[#allocation5 + $0x2f8] sm:$0xff]  }
  0xb7   :  { %7872 = vmatpush3.bf16.msra.mxu1 %v8775_v41  ;;  %5393 = vmatprep.mubr.bf16.mxu1 %v7113_v12  ;;  %v8837_v41 = vld [vmem:[#allocation5 + $0x238] sm:$0xff]   ;;  %v8870_v12 = vld [vmem:[#allocation5 + $0x3f0] sm:$0xff]  }
  0xb8   :  { %7873 = vmatprep.subr.bf16.mxu1 %v8778_v44 }
  0xb9   :  { %7852 = vmatpush3.bf16.msra.mxu0 %v8777_v43  ;;  %v137_v43 = vld [vmem:[#allocation2 + $0x20] sm:$0xff] }
  0xba   :  { %7853 = vmatprep.subr.bf16.mxu0 %v8780_v46  ;;  %v7114_v44 = vcombine.low %v137_v43, %v137_v43  ;;  %v8841_v46 = vld [vmem:[#allocation5 + $0x2b8] sm:$0xff]  }
  0xbb   :  { %7874 = vmatpush3.bf16.msra.mxu1 %v8779_v45  ;;  %v7115_v45 = vcombine.high %v137_v43, %v137_v43  ;;  %v8899_v43 = vld [vmem:[#allocation5 + $0x4a0] sm:$0xff]  }
  0xbc   :  { %7875 = vmatprep.subr.bf16.mxu1 %v8782_v48  ;;  %v138_v48 = vld [vmem:[#allocation2 + $0x28] sm:$0xff] }
  0xbd   :  { %7854 = vmatpush3.bf16.msra.mxu0 %v8781_v47  ;;  %v8842_v47 = vld [vmem:[#allocation5 + $0x340] sm:$0xff]  }
  0xbe   :  { %7855 = vmatprep.subr.bf16.mxu0 %v8784_v50  ;;  %v7117_v50 = vcombine.high %v138_v48, %v138_v48 }
  0xbf   :  { %7876 = vmatpush3.bf16.msra.mxu1 %v8783_v49  ;;  %v7116_v49 = vcombine.low %v138_v48, %v138_v48  ;;  %v8904_v48 = vld [vmem:[#allocation5 + $0x470] sm:$0xff]  }
  0xc0   :  { %7877 = vmatprep.subr.bf16.mxu1 %v8786_v52  ;;  %v8846_v52 = vld [vmem:[#allocation5 + $0x3c0] sm:$0xff]  }
  0xc1   :  { %7856 = vmatpush3.bf16.msra.mxu0 %v8785_v51  ;;  %v8845_v51 = vld [vmem:[#allocation5 + $0x300] sm:$0xff]  }
  0xc2   :  { %7857 = vmatprep.subr.bf16.mxu0 %v8788_v54  ;;  %v8848_v54 = vld [vmem:[#allocation5 + $0x348] sm:$0xff]  }
  0xc3   :  { %7878 = vmatpush3.bf16.msra.mxu1 %v8787_v53  ;;  %v8847_v53 = vld [vmem:[#allocation5 + $0x380] sm:$0xff]  }
  0xc4   :  { %7879 = vmatprep.subr.bf16.mxu1 %v8790_v56  ;;  %v8850_v56 = vld [vmem:[#allocation5 + $0x3c8] sm:$0xff]  }
  0xc5   :  { %7858 = vmatpush3.bf16.msra.mxu0 %v8789_v55  ;;  %v8849_v55 = vld [vmem:[#allocation5 + $0x308] sm:$0xff]  }
  0xc6   :  { %7859 = vmatprep.subr.bf16.mxu0 %v8792_v58  ;;  %v8852_v58 = vld [vmem:[#allocation5 + $0x350] sm:$0xff]  }
  0xc7   :  { %7880 = vmatpush3.bf16.msra.mxu1 %v8791_v57  ;;  %v8851_v57 = vld [vmem:[#allocation5 + $0x388] sm:$0xff]  }
  0xc8   :  { %7881 = vmatprep.subr.bf16.mxu1 %v8794_v60  ;;  %v8854_v60 = vld [vmem:[#allocation5 + $0x3d0] sm:$0xff]  }
  0xc9   :  { %7860 = vmatpush3.bf16.msra.mxu0 %v8793_v59  ;;  %v8853_v59 = vld [vmem:[#allocation5 + $0x310] sm:$0xff]  }
  0xca   :  { %7861 = vmatprep.subr.bf16.mxu0 %v8796_v62  ;;  %v8856_v62 = vld [vmem:[#allocation5 + $0x358] sm:$0xff]  }
  0xcb   :  { %7882 = vmatpush3.bf16.msra.mxu1 %v8795_v61  ;;  %v8855_v61 = vld [vmem:[#allocation5 + $0x390] sm:$0xff]  }
  0xcc   :  { %7883 = vmatprep.subr.bf16.mxu1 %v8798_v0  ;;  %v8858_v0 = vld [vmem:[#allocation5 + $0x3d8] sm:$0xff]  }
  0xcd   :  { %7862 = vmatpush3.bf16.msra.mxu0 %v8797_v63  ;;  %v8857_v63 = vld [vmem:[#allocation5 + $0x318] sm:$0xff]  }
  0xce   :  { %7863 = vmatprep.subr.bf16.mxu0 %v8800_v2  ;;  %v8860_v2 = vld [vmem:[#allocation5 + $0x360] sm:$0xff]  }
  0xcf   :  { %7884 = vmatpush3.bf16.msra.mxu1 %v8799_v1  ;;  %v8859_v1 = vld [vmem:[#allocation5 + $0x398] sm:$0xff]  }
  0xd0   :  { %7885 = vmatprep.subr.bf16.mxu1 %v8802_v4  ;;  %v8862_v4 = vld [vmem:[#allocation5 + $0x3e0] sm:$0xff]  }
  0xd1   :  { %7864 = vmatpush3.bf16.msra.mxu0 %v8801_v3  ;;  %v8861_v3 = vld [vmem:[#allocation5 + $0x320] sm:$0xff]  }
  0xd2   :  { %7893 = vmatprep.subr.bf16.mxu0 %v8806_v9  ;;  %v8867_v9 = vld [vmem:[#allocation5 + $0x3a8] sm:$0xff]  }
  0xd3   :  { %7886 = vmatpush3.bf16.msra.mxu1 %v8805_v8  ;;  %v8866_v8 = vld [vmem:[#allocation5 + $0x3e8] sm:$0xff]  }
  0xd4   :  { %5354 = vmatmul.mubr.bf16.vlgmr.msra.gmra.mrb[4].mxu0 %v7110_v6  ;;  %7915 = vmatprep.subr.bf16.mxu1 %v8810_v14  ;;  %v8864_v6 = vld [vmem:[#allocation5 + $0x368] sm:$0xff]   ;;  %v8872_v14 = vld [vmem:[#allocation5 + $0x378] sm:$0xff]  }
  0xd5   :  { %7894 = vmatpush3.bf16.msra.mxu0 %v8809_v13  ;;  %5433 = vmatprep.mubr.bf16.mxu0 %v7115_v45  ;;  %v8871_v13 = vld [vmem:[#allocation5 + $0x3b0] sm:$0xff]   ;;  %v8901_v45 = vld [vmem:[#allocation5 + $0x428] sm:$0xff]  }
  0xd6   :  { %5394 = vmatmul.mubr.bf16.vlgmr.msra.gmra.mrb[4].mxu1 %v7112_v11  ;;  %7895 = vmatprep.subr.bf16.mxu0 %v8812_v16  ;;  %v8869_v11 = vld [vmem:[#allocation5 + $0x330] sm:$0xff]   ;;  %v8874_v16 = vld [vmem:[#allocation5 + $0x3f8] sm:$0xff]  }
  0xd7   :  { %7916 = vmatpush3.bf16.msra.mxu1 %v8811_v15  ;;  %5473 = vmatprep.mubr.bf16.mxu1 %v7117_v50  ;;  %v8873_v15 = vld [vmem:[#allocation5 + $0x338] sm:$0xff]   ;;  %v8906_v50 = vld [vmem:[#allocation5 + $0x4f0] sm:$0xff]  }
  0xd8   :  { %7917 = vmatprep.subr.bf16.mxu1 %v8814_v18 }
  0xd9   :  { %7896 = vmatpush3.bf16.msra.mxu0 %v8813_v17  ;;  %v139_v17 = vld [vmem:[#allocation2 + $0x30] sm:$0xff] }
  0xda   :  { %7897 = vmatprep.subr.bf16.mxu0 %v8816_v20  ;;  %v7118_v18 = vcombine.low %v139_v17, %v139_v17  ;;  %v8877_v20 = vld [vmem:[#allocation5 + $0x3b8] sm:$0xff]  }
  0xdb   :  { %7918 = vmatpush3.bf16.msra.mxu1 %v8815_v19  ;;  %v7119_v19 = vcombine.high %v139_v17, %v139_v17  ;;  %v8935_v17 = vld [vmem:[#allocation5 + $0x5a0] sm:$0xff]  }
  0xdc   :  { %7919 = vmatprep.subr.bf16.mxu1 %v8818_v22  ;;  %v140_v22 = vld [vmem:[#allocation2 + $0x38] sm:$0xff] }
  0xdd   :  { %7898 = vmatpush3.bf16.msra.mxu0 %v8817_v21  ;;  %v8878_v21 = vld [vmem:[#allocation5 + $0x440] sm:$0xff]  }
  0xde   :  { %7899 = vmatprep.subr.bf16.mxu0 %v8820_v24  ;;  %v7121_v24 = vcombine.high %v140_v22, %v140_v22 }
  0xdf   :  { %7920 = vmatpush3.bf16.msra.mxu1 %v8819_v23  ;;  %v7120_v23 = vcombine.low %v140_v22, %v140_v22  ;;  %v8940_v22 = vld [vmem:[#allocation5 + $0x570] sm:$0xff]  }
  0xe0   :  { %7921 = vmatprep.subr.bf16.mxu1 %v8822_v26  ;;  %v8882_v26 = vld [vmem:[#allocation5 + $0x4c0] sm:$0xff]  }
  0xe1   :  { %7900 = vmatpush3.bf16.msra.mxu0 %v8821_v25  ;;  %v8881_v25 = vld [vmem:[#allocation5 + $0x400] sm:$0xff]  }
  0xe2   :  { %7901 = vmatprep.subr.bf16.mxu0 %v8824_v28  ;;  %v8884_v28 = vld [vmem:[#allocation5 + $0x448] sm:$0xff]  }
  0xe3   :  { %7922 = vmatpush3.bf16.msra.mxu1 %v8823_v27  ;;  %v8883_v27 = vld [vmem:[#allocation5 + $0x480] sm:$0xff]  }
  0xe4   :  { %7923 = vmatprep.subr.bf16.mxu1 %v8826_v30  ;;  %v8886_v30 = vld [vmem:[#allocation5 + $0x4c8] sm:$0xff]  }
  0xe5   :  { %7902 = vmatpush3.bf16.msra.mxu0 %v8825_v29  ;;  %v8885_v29 = vld [vmem:[#allocation5 + $0x408] sm:$0xff]  }
  0xe6   :  { %7903 = vmatprep.subr.bf16.mxu0 %v8828_v32  ;;  %v8888_v32 = vld [vmem:[#allocation5 + $0x450] sm:$0xff]  }
  0xe7   :  { %7924 = vmatpush3.bf16.msra.mxu1 %v8827_v31  ;;  %v8887_v31 = vld [vmem:[#allocation5 + $0x488] sm:$0xff]  }
  0xe8   :  { %7925 = vmatprep.subr.bf16.mxu1 %v8830_v34  ;;  %v8890_v34 = vld [vmem:[#allocation5 + $0x4d0] sm:$0xff]  }
  0xe9   :  { %7904 = vmatpush3.bf16.msra.mxu0 %v8829_v33  ;;  %v8889_v33 = vld [vmem:[#allocation5 + $0x410] sm:$0xff]  }
  0xea   :  { %7905 = vmatprep.subr.bf16.mxu0 %v8832_v36  ;;  %v8892_v36 = vld [vmem:[#allocation5 + $0x458] sm:$0xff]  }
  0xeb   :  { %7926 = vmatpush3.bf16.msra.mxu1 %v8831_v35  ;;  %v8891_v35 = vld [vmem:[#allocation5 + $0x490] sm:$0xff]  }
  0xec   :  { %7927 = vmatprep.subr.bf16.mxu1 %v8834_v38  ;;  %v8894_v38 = vld [vmem:[#allocation5 + $0x4d8] sm:$0xff]  }
  0xed   :  { %7906 = vmatpush3.bf16.msra.mxu0 %v8833_v37  ;;  %v8893_v37 = vld [vmem:[#allocation5 + $0x418] sm:$0xff]  }
  0xee   :  { %7907 = vmatprep.subr.bf16.mxu0 %v8836_v40  ;;  %v8896_v40 = vld [vmem:[#allocation5 + $0x460] sm:$0xff]  }
  0xef   :  { %7928 = vmatpush3.bf16.msra.mxu1 %v8835_v39  ;;  %v8895_v39 = vld [vmem:[#allocation5 + $0x498] sm:$0xff]  }
  0xf0   :  { %7929 = vmatprep.subr.bf16.mxu1 %v8838_v42  ;;  %v8898_v42 = vld [vmem:[#allocation5 + $0x4e0] sm:$0xff]  }
  0xf1   :  { %7908 = vmatpush3.bf16.msra.mxu0 %v8837_v41  ;;  %v8897_v41 = vld [vmem:[#allocation5 + $0x420] sm:$0xff]  }
  0xf2   :  { %7937 = vmatprep.subr.bf16.mxu0 %v8842_v47  ;;  %v8903_v47 = vld [vmem:[#allocation5 + $0x4a8] sm:$0xff]  }
  0xf3   :  { %7930 = vmatpush3.bf16.msra.mxu1 %v8841_v46  ;;  %v8902_v46 = vld [vmem:[#allocation5 + $0x4e8] sm:$0xff]  }
  0xf4   :  { %5434 = vmatmul.mubr.bf16.vlgmr.msra.gmra.mrb[8].mxu0 %v7114_v44  ;;  %7959 = vmatprep.subr.bf16.mxu1 %v8846_v52  ;;  %v8900_v44 = vld [vmem:[#allocation5 + $0x468] sm:$0xff]   ;;  %v8908_v52 = vld [vmem:[#allocation5 + $0x478] sm:$0xff]  }
  0xf5   :  { %7938 = vmatpush3.bf16.msra.mxu0 %v8845_v51  ;;  %5513 = vmatprep.mubr.bf16.mxu0 %v7119_v19  ;;  %v8907_v51 = vld [vmem:[#allocation5 + $0x4b0] sm:$0xff]   ;;  %v8937_v19 = vld [vmem:[#allocation5 + $0x528] sm:$0xff]  }
  0xf6   :  { %5474 = vmatmul.mubr.bf16.vlgmr.msra.gmra.mrb[8].mxu1 %v7116_v49  ;;  %7939 = vmatprep.subr.bf16.mxu0 %v8848_v54  ;;  %v8905_v49 = vld [vmem:[#allocation5 + $0x430] sm:$0xff]   ;;  %v8910_v54 = vld [vmem:[#allocation5 + $0x4f8] sm:$0xff]  }
  0xf7   :  { %7960 = vmatpush3.bf16.msra.mxu1 %v8847_v53  ;;  %5553 = vmatprep.mubr.bf16.mxu1 %v7121_v24  ;;  %v8909_v53 = vld [vmem:[#allocation5 + $0x438] sm:$0xff]   ;;  %v8942_v24 = vld [vmem:[#allocation5 + $0x5f0] sm:$0xff]  }
  0xf8   :  { %7961 = vmatprep.subr.bf16.mxu1 %v8850_v56 }
  0xf9   :  { %7940 = vmatpush3.bf16.msra.mxu0 %v8849_v55  ;;  %v141_v55 = vld [vmem:[#allocation2 + $0x40] sm:$0xff] }
  0xfa   :  { %7941 = vmatprep.subr.bf16.mxu0 %v8852_v58  ;;  %v7122_v56 = vcombine.low %v141_v55, %v141_v55  ;;  %v8913_v58 = vld [vmem:[#allocation5 + $0x4b8] sm:$0xff]  }
  0xfb   :  { %7962 = vmatpush3.bf16.msra.mxu1 %v8851_v57  ;;  %v7123_v57 = vcombine.high %v141_v55, %v141_v55  ;;  %v8971_v55 = vld [vmem:[#allocation5 + $0x6a0] sm:$0xff]  }
  0xfc   :  { %7963 = vmatprep.subr.bf16.mxu1 %v8854_v60  ;;  %v142_v60 = vld [vmem:[#allocation2 + $0x48] sm:$0xff] }
  0xfd   :  { %7942 = vmatpush3.bf16.msra.mxu0 %v8853_v59  ;;  %v8914_v59 = vld [vmem:[#allocation5 + $0x540] sm:$0xff]  }
  0xfe   :  { %7943 = vmatprep.subr.bf16.mxu0 %v8856_v62  ;;  %v7125_v62 = vcombine.high %v142_v60, %v142_v60 }
  0xff   :  { %7964 = vmatpush3.bf16.msra.mxu1 %v8855_v61  ;;  %v7124_v61 = vcombine.low %v142_v60, %v142_v60  ;;  %v8976_v60 = vld [vmem:[#allocation5 + $0x670] sm:$0xff]  }
 0x100   :  { %7965 = vmatprep.subr.bf16.mxu1 %v8858_v0  ;;  %v8918_v0 = vld [vmem:[#allocation5 + $0x5c0] sm:$0xff]  }
 0x101   :  { %7944 = vmatpush3.bf16.msra.mxu0 %v8857_v63  ;;  %v8917_v63 = vld [vmem:[#allocation5 + $0x500] sm:$0xff]  }
 0x102   :  { %7945 = vmatprep.subr.bf16.mxu0 %v8860_v2  ;;  %v8920_v2 = vld [vmem:[#allocation5 + $0x548] sm:$0xff]  }
 0x103   :  { %7966 = vmatpush3.bf16.msra.mxu1 %v8859_v1  ;;  %v8919_v1 = vld [vmem:[#allocation5 + $0x580] sm:$0xff]  }
 0x104   :  { %7967 = vmatprep.subr.bf16.mxu1 %v8862_v4  ;;  %v8922_v4 = vld [vmem:[#allocation5 + $0x5c8] sm:$0xff]  }
 0x105   :  { %7946 = vmatpush3.bf16.msra.mxu0 %v8861_v3  ;;  %v8921_v3 = vld [vmem:[#allocation5 + $0x508] sm:$0xff]  }
 0x106   :  { %7947 = vmatprep.subr.bf16.mxu0 %v8864_v6  ;;  %v8924_v6 = vld [vmem:[#allocation5 + $0x550] sm:$0xff]  }
 0x107   :  { %7968 = vmatpush3.bf16.msra.mxu1 %v8863_v5  ;;  %v8923_v5 = vld [vmem:[#allocation5 + $0x588] sm:$0xff]  }
 0x108   :  { %7969 = vmatprep.subr.bf16.mxu1 %v8866_v8  ;;  %v8926_v8 = vld [vmem:[#allocation5 + $0x5d0] sm:$0xff]  }
 0x109   :  { %7948 = vmatpush3.bf16.msra.mxu0 %v8865_v7  ;;  %v8925_v7 = vld [vmem:[#allocation5 + $0x510] sm:$0xff]  }
 0x10a   :  { %7949 = vmatprep.subr.bf16.mxu0 %v8868_v10  ;;  %v8928_v10 = vld [vmem:[#allocation5 + $0x558] sm:$0xff]  }
 0x10b   :  { %7970 = vmatpush3.bf16.msra.mxu1 %v8867_v9  ;;  %v8927_v9 = vld [vmem:[#allocation5 + $0x590] sm:$0xff]  }
 0x10c   :  { %7971 = vmatprep.subr.bf16.mxu1 %v8870_v12  ;;  %v8930_v12 = vld [vmem:[#allocation5 + $0x5d8] sm:$0xff]  }
 0x10d   :  { %7950 = vmatpush3.bf16.msra.mxu0 %v8869_v11  ;;  %v8929_v11 = vld [vmem:[#allocation5 + $0x518] sm:$0xff]  }
 0x10e   :  { %7951 = vmatprep.subr.bf16.mxu0 %v8872_v14  ;;  %v8932_v14 = vld [vmem:[#allocation5 + $0x560] sm:$0xff]  }
 0x10f   :  { %7972 = vmatpush3.bf16.msra.mxu1 %v8871_v13  ;;  %v8931_v13 = vld [vmem:[#allocation5 + $0x598] sm:$0xff]  }
 0x110   :  { %7973 = vmatprep.subr.bf16.mxu1 %v8874_v16  ;;  %v8934_v16 = vld [vmem:[#allocation5 + $0x5e0] sm:$0xff]  }
 0x111   :  { %7952 = vmatpush3.bf16.msra.mxu0 %v8873_v15  ;;  %v8933_v15 = vld [vmem:[#allocation5 + $0x520] sm:$0xff]  }
 0x112   :  { %7981 = vmatprep.subr.bf16.mxu0 %v8878_v21  ;;  %v8939_v21 = vld [vmem:[#allocation5 + $0x5a8] sm:$0xff]  }
 0x113   :  { %7974 = vmatpush3.bf16.msra.mxu1 %v8877_v20  ;;  %v8938_v20 = vld [vmem:[#allocation5 + $0x5e8] sm:$0xff]  }
 0x114   :  { %5514 = vmatmul.mubr.bf16.vlgmr.msra.gmra.mrb[12].mxu0 %v7118_v18  ;;  %8003 = vmatprep.subr.bf16.mxu1 %v8882_v26  ;;  %v8936_v18 = vld [vmem:[#allocation5 + $0x568] sm:$0xff]   ;;  %v8944_v26 = vld [vmem:[#allocation5 + $0x578] sm:$0xff]  }
 0x115   :  { %7982 = vmatpush3.bf16.msra.mxu0 %v8881_v25  ;;  %5593 = vmatprep.mubr.bf16.mxu0 %v7123_v57  ;;  %v8943_v25 = vld [vmem:[#allocation5 + $0x5b0] sm:$0xff]   ;;  %v8973_v57 = vld [vmem:[#allocation5 + $0x628] sm:$0xff]  }
 0x116   :  { %5554 = vmatmul.mubr.bf16.vlgmr.msra.gmra.mrb[12].mxu1 %v7120_v23  ;;  %7983 = vmatprep.subr.bf16.mxu0 %v8884_v28  ;;  %v8941_v23 = vld [vmem:[#allocation5 + $0x530] sm:$0xff]   ;;  %v8946_v28 = vld [vmem:[#allocation5 + $0x5f8] sm:$0xff]  }
 0x117   :  { %8004 = vmatpush3.bf16.msra.mxu1 %v8883_v27  ;;  %5633 = vmatprep.mubr.bf16.mxu1 %v7125_v62  ;;  %v8945_v27 = vld [vmem:[#allocation5 + $0x538] sm:$0xff]   ;;  %v8978_v62 = vld [vmem:[#allocation5 + $0x6f0] sm:$0xff]  }
 0x118   :  { %8005 = vmatprep.subr.bf16.mxu1 %v8886_v30 }
 0x119   :  { %7984 = vmatpush3.bf16.msra.mxu0 %v8885_v29  ;;  %v143_v29 = vld [vmem:[#allocation2 + $0x50] sm:$0xff] }
 0x11a   :  { %7985 = vmatprep.subr.bf16.mxu0 %v8888_v32  ;;  %v7126_v30 = vcombine.low %v143_v29, %v143_v29  ;;  %v8949_v32 = vld [vmem:[#allocation5 + $0x5b8] sm:$0xff]  }
 0x11b   :  { %8006 = vmatpush3.bf16.msra.mxu1 %v8887_v31  ;;  %v7127_v31 = vcombine.high %v143_v29, %v143_v29  ;;  %v9006_v29 = vld [vmem:[#allocation5 + $0x7e0] sm:$0xff]  }
 0x11c   :  { %8007 = vmatprep.subr.bf16.mxu1 %v8890_v34  ;;  %v144_v34 = vld [vmem:[#allocation2 + $0x58] sm:$0xff] }
 0x11d   :  { %7986 = vmatpush3.bf16.msra.mxu0 %v8889_v33  ;;  %v8950_v33 = vld [vmem:[#allocation5 + $0x640] sm:$0xff]  }
 0x11e   :  { %7987 = vmatprep.subr.bf16.mxu0 %v8892_v36  ;;  %v7129_v36 = vcombine.high %v144_v34, %v144_v34 }
 0x11f   :  { %8008 = vmatpush3.bf16.msra.mxu1 %v8891_v35  ;;  %v7128_v35 = vcombine.low %v144_v34, %v144_v34 }
 0x120   :  { %8009 = vmatprep.subr.bf16.mxu1 %v8894_v38  ;;  %v8954_v38 = vld [vmem:[#allocation5 + $0x6c0] sm:$0xff]  }
 0x121   :  { %7988 = vmatpush3.bf16.msra.mxu0 %v8893_v37  ;;  %v8953_v37 = vld [vmem:[#allocation5 + $0x600] sm:$0xff]  }
 0x122   :  { %7989 = vmatprep.subr.bf16.mxu0 %v8896_v40  ;;  %v8956_v40 = vld [vmem:[#allocation5 + $0x648] sm:$0xff]  }
 0x123   :  { %8010 = vmatpush3.bf16.msra.mxu1 %v8895_v39  ;;  %v8955_v39 = vld [vmem:[#allocation5 + $0x680] sm:$0xff]  }
 0x124   :  { %8011 = vmatprep.subr.bf16.mxu1 %v8898_v42  ;;  %v8958_v42 = vld [vmem:[#allocation5 + $0x6c8] sm:$0xff]  }
 0x125   :  { %7990 = vmatpush3.bf16.msra.mxu0 %v8897_v41  ;;  %v8957_v41 = vld [vmem:[#allocation5 + $0x608] sm:$0xff]  }
 0x126   :  { %7991 = vmatprep.subr.bf16.mxu0 %v8900_v44  ;;  %v8960_v44 = vld [vmem:[#allocation5 + $0x650] sm:$0xff]  }
 0x127   :  { %8012 = vmatpush3.bf16.msra.mxu1 %v8899_v43  ;;  %v8959_v43 = vld [vmem:[#allocation5 + $0x688] sm:$0xff]  }
 0x128   :  { %8013 = vmatprep.subr.bf16.mxu1 %v8902_v46  ;;  %v8962_v46 = vld [vmem:[#allocation5 + $0x6d0] sm:$0xff]  }
 0x129   :  { %7992 = vmatpush3.bf16.msra.mxu0 %v8901_v45  ;;  %v8961_v45 = vld [vmem:[#allocation5 + $0x610] sm:$0xff]  }
 0x12a   :  { %7993 = vmatprep.subr.bf16.mxu0 %v8904_v48  ;;  %v8964_v48 = vld [vmem:[#allocation5 + $0x658] sm:$0xff]  }
 0x12b   :  { %8014 = vmatpush3.bf16.msra.mxu1 %v8903_v47  ;;  %v8963_v47 = vld [vmem:[#allocation5 + $0x690] sm:$0xff]  }
 0x12c   :  { %8015 = vmatprep.subr.bf16.mxu1 %v8906_v50  ;;  %v8966_v50 = vld [vmem:[#allocation5 + $0x6d8] sm:$0xff]  }
 0x12d   :  { %7994 = vmatpush3.bf16.msra.mxu0 %v8905_v49  ;;  %v8965_v49 = vld [vmem:[#allocation5 + $0x618] sm:$0xff]  }
 0x12e   :  { %7995 = vmatprep.subr.bf16.mxu0 %v8908_v52  ;;  %v8968_v52 = vld [vmem:[#allocation5 + $0x660] sm:$0xff]  }
 0x12f   :  { %8016 = vmatpush3.bf16.msra.mxu1 %v8907_v51  ;;  %v8967_v51 = vld [vmem:[#allocation5 + $0x698] sm:$0xff]  }
 0x130   :  { %8017 = vmatprep.subr.bf16.mxu1 %v8910_v54  ;;  %v8970_v54 = vld [vmem:[#allocation5 + $0x6e0] sm:$0xff]  }
 0x131   :  { %7996 = vmatpush3.bf16.msra.mxu0 %v8909_v53  ;;  %v8969_v53 = vld [vmem:[#allocation5 + $0x620] sm:$0xff]  }
 0x132   :  { %8025 = vmatprep.subr.bf16.mxu0 %v8914_v59  ;;  %v8975_v59 = vld [vmem:[#allocation5 + $0x6a8] sm:$0xff]  }
 0x133   :  { %8018 = vmatpush3.bf16.msra.mxu1 %v8913_v58  ;;  %v8974_v58 = vld [vmem:[#allocation5 + $0x6e8] sm:$0xff]  }
 0x134   :  { %5594 = vmatmul.mubr.bf16.vlgmr.msra.gmra.mrb[16].mxu0 %v7122_v56  ;;  %8047 = vmatprep.subr.bf16.mxu1 %v8918_v0  ;;  %v8972_v56 = vld [vmem:[#allocation5 + $0x668] sm:$0xff]   ;;  %v8980_v0 = vld [vmem:[#allocation5 + $0x678] sm:$0xff]  }
 0x135   :  { %8026 = vmatpush3.bf16.msra.mxu0 %v8917_v63  ;;  %5673 = vmatprep.mubr.bf16.mxu0 %v7127_v31  ;;  %v8979_v63 = vld [vmem:[#allocation5 + $0x6b0] sm:$0xff]   ;;  %v9007_v31 = vld [vmem:[#allocation5 + $0x7a0] sm:$0xff]  }
 0x136   :  { %5634 = vmatmul.mubr.bf16.vlgmr.msra.gmra.mrb[16].mxu1 %v7124_v61  ;;  %8027 = vmatprep.subr.bf16.mxu0 %v8920_v2  ;;  %v8977_v61 = vld [vmem:[#allocation5 + $0x630] sm:$0xff]   ;;  %v8982_v2 = vld [vmem:[#allocation5 + $0x6f8] sm:$0xff]  }
 0x137   :  { %8048 = vmatpush3.bf16.msra.mxu1 %v8919_v1  ;;  %5713 = vmatprep.mubr.bf16.mxu1 %v7129_v36  ;;  %v8981_v1 = vld [vmem:[#allocation5 + $0x638] sm:$0xff]  }
 0x138   :  { %8049 = vmatprep.subr.bf16.mxu1 %v8922_v4 }
 0x139   :  { %8028 = vmatpush3.bf16.msra.mxu0 %v8921_v3  ;;  %v145_v3 = vld [vmem:[#allocation2 + $0x60] sm:$0xff] }
 0x13a   :  { %8029 = vmatprep.subr.bf16.mxu0 %v8924_v6  ;;  %v7130_v4 = vcombine.low %v145_v3, %v145_v3  ;;  %v8985_v6 = vld [vmem:[#allocation5 + $0x6b8] sm:$0xff]  }
 0x13b   :  { %8050 = vmatpush3.bf16.msra.mxu1 %v8923_v5  ;;  %v7131_v5 = vcombine.high %v145_v3, %v145_v3  ;;  %v9030_v3 = vld [vmem:[#allocation5 + $0x8c8] sm:$0xff]  }
 0x13c   :  { %8051 = vmatprep.subr.bf16.mxu1 %v8926_v8  ;;  %v146_v8 = vld [vmem:[#allocation2 + $0x68] sm:$0xff] }
 0x13d   :  { %8030 = vmatpush3.bf16.msra.mxu0 %v8925_v7  ;;  %v8986_v7 = vld [vmem:[#allocation5 + $0x740] sm:$0xff]  }
 0x13e   :  { %8031 = vmatprep.subr.bf16.mxu0 %v8928_v10  ;;  %v7133_v10 = vcombine.high %v146_v8, %v146_v8 }
 0x13f   :  { %8052 = vmatpush3.bf16.msra.mxu1 %v8927_v9  ;;  %v7132_v9 = vcombine.low %v146_v8, %v146_v8  ;;  %v9035_v8 = vld [vmem:[#allocation5 + $0x890] sm:$0xff]  }
 0x140   :  { %8053 = vmatprep.subr.bf16.mxu1 %v8930_v12  ;;  %v8990_v12 = vld [vmem:[#allocation5 + $0x7c0] sm:$0xff]  }
 0x141   :  { %8032 = vmatpush3.bf16.msra.mxu0 %v8929_v11  ;;  %v8989_v11 = vld [vmem:[#allocation5 + $0x700] sm:$0xff]  }
 0x142   :  { %8033 = vmatprep.subr.bf16.mxu0 %v8932_v14  ;;  %v8992_v14 = vld [vmem:[#allocation5 + $0x748] sm:$0xff]  }
 0x143   :  { %8054 = vmatpush3.bf16.msra.mxu1 %v8931_v13  ;;  %v8991_v13 = vld [vmem:[#allocation5 + $0x780] sm:$0xff]  }
 0x144   :  { %8055 = vmatprep.subr.bf16.mxu1 %v8934_v16  ;;  %v8994_v16 = vld [vmem:[#allocation5 + $0x7c8] sm:$0xff]  }
 0x145   :  { %8034 = vmatpush3.bf16.msra.mxu0 %v8933_v15  ;;  %v8993_v15 = vld [vmem:[#allocation5 + $0x708] sm:$0xff]  }
 0x146   :  { %8035 = vmatprep.subr.bf16.mxu0 %v8936_v18  ;;  %v8996_v18 = vld [vmem:[#allocation5 + $0x750] sm:$0xff]  }
 0x147   :  { %8056 = vmatpush3.bf16.msra.mxu1 %v8935_v17  ;;  %v8995_v17 = vld [vmem:[#allocation5 + $0x788] sm:$0xff]  }
 0x148   :  { %8057 = vmatprep.subr.bf16.mxu1 %v8938_v20  ;;  %v8998_v20 = vld [vmem:[#allocation5 + $0x7d0] sm:$0xff]  }
 0x149   :  { %8036 = vmatpush3.bf16.msra.mxu0 %v8937_v19  ;;  %v8997_v19 = vld [vmem:[#allocation5 + $0x710] sm:$0xff]  }
 0x14a   :  { %8037 = vmatprep.subr.bf16.mxu0 %v8940_v22  ;;  %v9000_v22 = vld [vmem:[#allocation5 + $0x758] sm:$0xff]  }
 0x14b   :  { %8058 = vmatpush3.bf16.msra.mxu1 %v8939_v21  ;;  %v8999_v21 = vld [vmem:[#allocation5 + $0x790] sm:$0xff]  }
 0x14c   :  { %8059 = vmatprep.subr.bf16.mxu1 %v8942_v24  ;;  %v9002_v24 = vld [vmem:[#allocation5 + $0x7d8] sm:$0xff]  }
 0x14d   :  { %8038 = vmatpush3.bf16.msra.mxu0 %v8941_v23  ;;  %v9001_v23 = vld [vmem:[#allocation5 + $0x718] sm:$0xff]  }
 0x14e   :  { %8039 = vmatprep.subr.bf16.mxu0 %v8944_v26  ;;  %v9004_v26 = vld [vmem:[#allocation5 + $0x760] sm:$0xff]  }
 0x14f   :  { %8060 = vmatpush3.bf16.msra.mxu1 %v8943_v25  ;;  %v9003_v25 = vld [vmem:[#allocation5 + $0x798] sm:$0xff]  }
 0x150   :  { %8061 = vmatprep.subr.bf16.mxu1 %v8946_v28 }
 0x151   :  { %8040 = vmatpush3.bf16.msra.mxu0 %v8945_v27  ;;  %v9005_v27 = vld [vmem:[#allocation5 + $0x720] sm:$0xff]  }
 0x152   :  { %8069 = vmatprep.subr.bf16.mxu0 %v8950_v33 }
 0x153   :  { %8062 = vmatpush3.bf16.msra.mxu1 %v8949_v32  ;;  %v7105_v32 = vld [vmem:[#allocation7] ss:$0 sm:$0xff] }
 0x154   :  { %5674 = vmatmul.mubr.bf16.vlgmr.msra.gmra.mrb[20].mxu0 %v7126_v30  ;;  %8091 = vmatprep.subr.bf16.mxu1 %v8954_v38  ;;  %v9009_v38 = vld [vmem:[#allocation5 + $0x728] sm:$0xff]  }
 0x155   :  { %8070 = vmatpush3.bf16.msra.mxu0 %v8953_v37  ;;  %5753 = vmatprep.mubr.bf16.mxu0 %v7131_v5  ;;  %v9032_v5 = vld [vmem:[#allocation5 + $0x850] sm:$0xff]  }
 0x156   :  { %5714 = vmatmul.mubr.bf16.vlgmr.msra.gmra.mrb[20].mxu1 %v7128_v35  ;;  %8071 = vmatprep.subr.bf16.mxu0 %v8956_v40  ;;  %v9008_v35 = vld [vmem:[#allocation5 + $0x768] sm:$0xff]  }
 0x157   :  { %8092 = vmatpush3.bf16.msra.mxu1 %v8955_v39  ;;  %5793 = vmatprep.mubr.bf16.mxu1 %v7133_v10  ;;  %v9037_v10 = vld [vmem:[#allocation5 + $0x818] sm:$0xff]  }
 0x158   :  { %8093 = vmatprep.subr.bf16.mxu1 %v8958_v42 }
 0x159   :  { %8072 = vmatpush3.bf16.msra.mxu0 %v8957_v41  ;;  %v9010_v41 = vld [vmem:[#allocation5 + $0x7e8] sm:$0xff]  }
 0x15a   :  { %8073 = vmatprep.subr.bf16.mxu0 %v8960_v44 }
 0x15b   :  { %8094 = vmatpush3.bf16.msra.mxu1 %v8959_v43  ;;  %v9011_v43 = vld [vmem:[#allocation5 + $0x7a8] sm:$0xff]  }
 0x15c   :  { %8095 = vmatprep.subr.bf16.mxu1 %v8962_v46 }
 0x15d   :  { %8074 = vmatpush3.bf16.msra.mxu0 %v8961_v45  ;;  %v9012_v45 = vld [vmem:[#allocation5 + $0x770] sm:$0xff]  }
 0x15e   :  { %8075 = vmatprep.subr.bf16.mxu0 %v8964_v48  ;;  %v9013_v48 = vld [vmem:[#allocation5 + $0x730] sm:$0xff]  }
 0x15f   :  { %8096 = vmatpush3.bf16.msra.mxu1 %v8963_v47 }
 0x160   :  { %8097 = vmatprep.subr.bf16.mxu1 %v8966_v50  ;;  %v9015_v50 = vld [vmem:[#allocation5 + $0x7b0] sm:$0xff]  }
 0x161   :  { %8076 = vmatpush3.bf16.msra.mxu0 %v8965_v49  ;;  %v9014_v49 = vld [vmem:[#allocation5 + $0x7f0] sm:$0xff]  }
 0x162   :  { %8077 = vmatprep.subr.bf16.mxu0 %v8968_v52  ;;  %v9017_v52 = vld [vmem:[#allocation5 + $0x738] sm:$0xff]  }
 0x163   :  { %8098 = vmatpush3.bf16.msra.mxu1 %v8967_v51  ;;  %v9016_v51 = vld [vmem:[#allocation5 + $0x778] sm:$0xff]  }
 0x164   :  { %8099 = vmatprep.subr.bf16.mxu1 %v8970_v54  ;;  %v147_v54 = vld [vmem:[#allocation2 + $0x70] sm:$0xff] }
 0x165   :  { %8078 = vmatpush3.bf16.msra.mxu0 %v8969_v53  ;;  %v9018_v53 = vld [vmem:[#allocation5 + $0x7f8] sm:$0xff]  }
 0x166   :  { %8079 = vmatprep.subr.bf16.mxu0 %v8972_v56  ;;  %v7135_v56 = vcombine.high %v147_v54, %v147_v54 }
 0x167   :  { %8100 = vmatpush3.bf16.msra.mxu1 %v8971_v55  ;;  %v7134_v55 = vcombine.low %v147_v54, %v147_v54  ;;  %v9067_v54 = vld [vmem:[#allocation5 + $0x988] sm:$0xff]  }
 0x168   :  { %8101 = vmatprep.subr.bf16.mxu1 %v8974_v58  ;;  %v9022_v58 = vld [vmem:[#allocation5 + $0x840] sm:$0xff]  }
 0x169   :  { %8080 = vmatpush3.bf16.msra.mxu0 %v8973_v57  ;;  %v9021_v57 = vld [vmem:[#allocation5 + $0x7b8] sm:$0xff]  }
 0x16a   :  { %8081 = vmatprep.subr.bf16.mxu0 %v8976_v60 }
 0x16b   :  { %8102 = vmatpush3.bf16.msra.mxu1 %v8975_v59  ;;  %v148_v59 = vld [vmem:[#allocation2 + $0x78] sm:$0xff] }
 0x16c   :  { %8103 = vmatprep.subr.bf16.mxu1 %v8978_v62  ;;  %v7136_v60 = vcombine.low %v148_v59, %v148_v59  ;;  %v9025_v62 = vld [vmem:[#allocation5 + $0x800] sm:$0xff]  }
 0x16d   :  { %8082 = vmatpush3.bf16.msra.mxu0 %v8977_v61  ;;  %v7137_v61 = vcombine.high %v148_v59, %v148_v59  ;;  %v9072_v59 = vld [vmem:[#allocation5 + $0x958] sm:$0xff]  }
 0x16e   :  { %8083 = vmatprep.subr.bf16.mxu0 %v8980_v0  ;;  %v9027_v0 = vld [vmem:[#allocation5 + $0x880] sm:$0xff]  }
 0x16f   :  { %8104 = vmatpush3.bf16.msra.mxu1 %v8979_v63  ;;  %v9026_v63 = vld [vmem:[#allocation5 + $0x8c0] sm:$0xff]  }
 0x170   :  { %8105 = vmatprep.subr.bf16.mxu1 %v8982_v2  ;;  %v9029_v2 = vld [vmem:[#allocation5 + $0x808] sm:$0xff]  }
 0x171   :  { %8084 = vmatpush3.bf16.msra.mxu0 %v8981_v1  ;;  %v9028_v1 = vld [vmem:[#allocation5 + $0x848] sm:$0xff]  }
 0x172   :  { %8113 = vmatprep.subr.bf16.mxu0 %v8986_v7  ;;  %v9034_v7 = vld [vmem:[#allocation5 + $0x8d0] sm:$0xff]  }
 0x173   :  { %8106 = vmatpush3.bf16.msra.mxu1 %v8985_v6  ;;  %v9033_v6 = vld [vmem:[#allocation5 + $0x810] sm:$0xff]  }
 0x174   :  { %5754 = vmatmul.mubr.bf16.vlgmr.msra.gmra.mrb[24].mxu0 %v7130_v4  ;;  %8135 = vmatprep.subr.bf16.mxu1 %v8990_v12  ;;  %v9031_v4 = vld [vmem:[#allocation5 + $0x888] sm:$0xff]   ;;  %v9039_v12 = vld [vmem:[#allocation5 + $0x898] sm:$0xff]  }
 0x175   :  { %8114 = vmatpush3.bf16.msra.mxu0 %v8989_v11  ;;  %5833 = vmatprep.mubr.bf16.mxu0 %v7135_v56  ;;  %v9038_v11 = vld [vmem:[#allocation5 + $0x8d8] sm:$0xff]   ;;  %v9069_v56 = vld [vmem:[#allocation5 + $0x910] sm:$0xff]  }
 0x176   :  { %5794 = vmatmul.mubr.bf16.vlgmr.msra.gmra.mrb[24].mxu1 %v7132_v9  ;;  %8115 = vmatprep.subr.bf16.mxu0 %v8992_v14  ;;  %v9036_v9 = vld [vmem:[#allocation5 + $0x858] sm:$0xff]  }
 0x177   :  { %8136 = vmatpush3.bf16.msra.mxu1 %v8991_v13  ;;  %5873 = vmatprep.mubr.bf16.mxu1 %v7137_v61  ;;  %v9040_v13 = vld [vmem:[#allocation5 + $0x860] sm:$0xff]   ;;  %v9074_v61 = vld [vmem:[#allocation5 + $0x9d8] sm:$0xff]  }
 0x178   :  { %8137 = vmatprep.subr.bf16.mxu1 %v8994_v16 }
 0x179   :  { %8116 = vmatpush3.bf16.msra.mxu0 %v8993_v15  ;;  %v9041_v15 = vld [vmem:[#allocation5 + $0x820] sm:$0xff]  }
 0x17a   :  { %8117 = vmatprep.subr.bf16.mxu0 %v8996_v18 }
 0x17b   :  { %8138 = vmatpush3.bf16.msra.mxu1 %v8995_v17  ;;  %v9042_v17 = vld [vmem:[#allocation5 + $0x8e0] sm:$0xff]  }
 0x17c   :  { %8139 = vmatprep.subr.bf16.mxu1 %v8998_v20  ;;  %v9043_v20 = vld [vmem:[#allocation5 + $0x8a0] sm:$0xff]  }
 0x17d   :  { %8118 = vmatpush3.bf16.msra.mxu0 %v8997_v19 }
 0x17e   :  { %8119 = vmatprep.subr.bf16.mxu0 %v9000_v22 }
 0x17f   :  { %8140 = vmatpush3.bf16.msra.mxu1 %v8999_v21 }
 0x180   :  { %8141 = vmatprep.subr.bf16.mxu1 %v9002_v24 }
 0x181   :  { %8120 = vmatpush3.bf16.msra.mxu0 %v9001_v23  ;;  %v9044_v23 = vld [vmem:[#allocation5 + $0x868] sm:$0xff]  }
 0x182   :  { %8121 = vmatprep.subr.bf16.mxu0 %v9004_v26 }
 0x183   :  { %8142 = vmatpush3.bf16.msra.mxu1 %v9003_v25  ;;  %v9045_v25 = vld [vmem:[#allocation5 + $0x828] sm:$0xff]  }
 0x184   :  { %8143 = vmatprep.subr.bf16.mxu1 %v9006_v29 }
 0x185   :  { %8122 = vmatpush3.bf16.msra.mxu0 %v9005_v27 }
 0x186   :  { %8123 = vmatprep.subr.bf16.mxu0 %v9008_v35  ;;  %v9050_v35 = vld [vmem:[#allocation5 + $0x8f0] sm:$0xff]  }
 0x187   :  { %v7821_v28 = vpop.f32.mrb[0].mxu0  ;;  %8144 = vmatpush3.bf16.msra.mxu1 %v9007_v31 }
 0x188   :  { %v7822_v30 = vpop.f32.mrb[1].mxu0  ;;  %8145 = vmatprep.subr.bf16.mxu1 %v9010_v41 }
 0x189   :  { %v7823_v33 = vadd.f32 %v7822_v30, %v7821_v28  ;;  %v7824_v34 = vpop.f32.mrb[2].mxu0  ;;  %v7843_v36 = vpop.f32.mrb[0].mxu1  ;;  %8124 = vmatpush3.bf16.msra.mxu0 %v9009_v38  ;;  %v9046_v28 = vld [vmem:[#allocation5 + $0x8e8] sm:$0xff]   ;;  %v9053_v38 = vld [vmem:[#allocation5 + $0x838] sm:$0xff]  }
 0x18a   :  { %v7825_v39 = vpop.f32.mrb[3].mxu0  ;;  %v7844_v40 = vpop.f32.mrb[1].mxu1  ;;  %8125 = vmatprep.subr.bf16.mxu0 %v9012_v45  ;;  %v9047_v30 = vld [vmem:[#allocation5 + $0x8a8] sm:$0xff]   ;;  %v9049_v34 = vld [vmem:[#allocation5 + $0x830] sm:$0xff]   ;;  %v150_v45 = vld [vmem:[#allocation2 + $0x88] sm:$0xff] }
 0x18b   :  { %v5276_v37 = vadd.f32 %v7823_v33, %v7105_v32  ;;  %v7845_v42 = vadd.f32 %v7844_v40, %v7843_v36  ;;  %v7846_v44 = vpop.f32.mrb[2].mxu1  ;;  %8146 = vmatpush3.bf16.msra.mxu1 %v9011_v43  ;;  %v9048_v33 = vld [vmem:[#allocation5 + $0x870] sm:$0xff]   ;;  %v9054_v39 = vld [vmem:[#allocation5 + $0x8f8] sm:$0xff]  }
 0x18c   :  { %v7847_v46 = vpop.f32.mrb[3].mxu1  ;;  %8147 = vmatprep.subr.bf16.mxu1 %v9014_v49  ;;  %v9051_v36 = vld [vmem:[#allocation5 + $0x8b0] sm:$0xff]   ;;  %v9057_v43 = vld [vmem:[#allocation5 + $0x8b8] sm:$0xff]   ;;  %v9058_v44 = vld [vmem:[#allocation5 + $0x940] sm:$0xff]  }
 0x18d   :  { %v9813_v47 = vadd.f32 %v7845_v42, %v5276_v37  ;;  %8126 = vmatpush3.bf16.msra.mxu0 %v9013_v48  ;;  %v9052_v37 = vld [vmem:[#allocation5 + $0x878] sm:$0xff]   ;;  %v7140_v46 = vcombine.low %v150_v45, %v150_v45  ;;  %v9061_v48 = vld [vmem:[#allocation5 + $0x900] sm:$0xff]  }
 0x18e   :  { %8127 = vmatprep.subr.bf16.mxu0 %v9016_v51  ;;  %v149_v40 = vld [vmem:[#allocation2 + $0x80] sm:$0xff]  ;;  %v9062_v49 = vld [vmem:[#allocation5 + $0x9c0] sm:$0xff]   ;;  %v9064_v51 = vld [vmem:[#allocation5 + $0x948] sm:$0xff]  }
 0x18f   :  { %8148 = vmatpush3.bf16.msra.mxu1 %v9015_v50  ;;  %v7138_v41 = vcombine.low %v149_v40, %v149_v40  ;;  %v7139_v42 = vcombine.high %v149_v40, %v149_v40  ;;  %v9063_v50 = vld [vmem:[#allocation5 + $0x980] sm:$0xff]   ;;  %v9103_v40 = vld [vmem:[#allocation5 + $0xa88] sm:$0xff]  }
 0x190   :  { %8149 = vmatprep.subr.bf16.mxu1 %v9018_v53  ;;  %v9066_v53 = vld [vmem:[#allocation5 + $0x9c8] sm:$0xff]  }
 0x191   :  { %8128 = vmatpush3.bf16.msra.mxu0 %v9017_v52  ;;  %v9065_v52 = vld [vmem:[#allocation5 + $0x908] sm:$0xff]  }
 0x192   :  { %8157 = vmatprep.subr.bf16.mxu0 %v9022_v58  ;;  %v9071_v58 = vld [vmem:[#allocation5 + $0x990] sm:$0xff]  }
 0x193   :  { %8150 = vmatpush3.bf16.msra.mxu1 %v9021_v57  ;;  %v9070_v57 = vld [vmem:[#allocation5 + $0x9d0] sm:$0xff]  }
 0x194   :  { %5834 = vmatmul.mubr.bf16.vlgmr.msra.gmra.mrb[28].mxu0 %v7134_v55  ;;  %8179 = vmatprep.subr.bf16.mxu1 %v9026_v63  ;;  %v9068_v55 = vld [vmem:[#allocation5 + $0x950] sm:$0xff]   ;;  %v9076_v63 = vld [vmem:[#allocation5 + $0x960] sm:$0xff]  }
 0x195   :  { %8158 = vmatpush3.bf16.msra.mxu0 %v9025_v62  ;;  %5913 = vmatprep.mubr.bf16.mxu0 %v7139_v42  ;;  %v9075_v62 = vld [vmem:[#allocation5 + $0x998] sm:$0xff]   ;;  %v9105_v42 = vld [vmem:[#allocation5 + $0xa10] sm:$0xff]  }
 0x196   :  { %5874 = vmatmul.mubr.bf16.vlgmr.msra.gmra.mrb[28].mxu1 %v7136_v60  ;;  %8159 = vmatprep.subr.bf16.mxu0 %v9028_v1  ;;  %v9073_v60 = vld [vmem:[#allocation5 + $0x918] sm:$0xff]   ;;  %v9077_v1 = vld [vmem:[#allocation5 + $0x920] sm:$0xff]  }
 0x197   :  { %8180 = vmatpush3.bf16.msra.mxu1 %v9027_v0 }
 0x198   :  { %8181 = vmatprep.subr.bf16.mxu1 %v9030_v3  ;;  %v9078_v3 = vld [vmem:[#allocation5 + $0x9e0] sm:$0xff]  }
 0x199   :  { %8160 = vmatpush3.bf16.msra.mxu0 %v9029_v2 }
 0x19a   :  { %8161 = vmatprep.subr.bf16.mxu0 %v9032_v5 }
 0x19b   :  { %8182 = vmatpush3.bf16.msra.mxu1 %v9031_v4 }
 0x19c   :  { %8183 = vmatprep.subr.bf16.mxu1 %v9034_v7 }
 0x19d   :  { %8162 = vmatpush3.bf16.msra.mxu0 %v9033_v6  ;;  %v9079_v6 = vld [vmem:[#allocation5 + $0x9a0] sm:$0xff]  }
 0x19e   :  { %8163 = vmatprep.subr.bf16.mxu0 %v9036_v9  ;;  %v9080_v9 = vld [vmem:[#allocation5 + $0x968] sm:$0xff]  }
 0x19f   :  { %8184 = vmatpush3.bf16.msra.mxu1 %v9035_v8 }
 0x1a0   :  { %8185 = vmatprep.subr.bf16.mxu1 %v9038_v11  ;;  %v9081_v11 = vld [vmem:[#allocation5 + $0x928] sm:$0xff]  }
 0x1a1   :  { %8164 = vmatpush3.bf16.msra.mxu0 %v9037_v10 }
 0x1a2   :  { %8165 = vmatprep.subr.bf16.mxu0 %v9040_v13 }
 0x1a3   :  { %8186 = vmatpush3.bf16.msra.mxu1 %v9039_v12 }
 0x1a4   :  { %8187 = vmatprep.subr.bf16.mxu1 %v9042_v17 }
 0x1a5   :  { %8166 = vmatpush3.bf16.msra.mxu0 %v9041_v15 }
 0x1a6   :  { %8167 = vmatprep.subr.bf16.mxu0 %v9044_v23  ;;  %v9088_v23 = vld [vmem:[#allocation5 + $0x978] sm:$0xff]  }
 0x1a7   :  { %v7865_v14 = vpop.f32.mrb[4].mxu0  ;;  %8188 = vmatpush3.bf16.msra.mxu1 %v9043_v20  ;;  %v9085_v20 = vld [vmem:[#allocation5 + $0x930] sm:$0xff]  }
 0x1a8   :  { %v7866_v16 = vpop.f32.mrb[5].mxu0  ;;  %8189 = vmatprep.subr.bf16.mxu1 %v9046_v28 }
 0x1a9   :  { %v7867_v18 = vadd.f32 %v7866_v16, %v7865_v14  ;;  %v7868_v19 = vpop.f32.mrb[6].mxu0  ;;  %v7887_v21 = vpop.f32.mrb[4].mxu1  ;;  %8168 = vmatpush3.bf16.msra.mxu0 %v9045_v25  ;;  %v9082_v14 = vld [vmem:[#allocation5 + $0x9e8] sm:$0xff]   ;;  %v9090_v25 = vld [vmem:[#allocation5 + $0x9f8] sm:$0xff]  }
 0x1aa   :  { %v7869_v24 = vpop.f32.mrb[7].mxu0  ;;  %v7888_v26 = vpop.f32.mrb[5].mxu1  ;;  %8169 = vmatprep.subr.bf16.mxu0 %v9048_v33  ;;  %v9083_v16 = vld [vmem:[#allocation5 + $0x9a8] sm:$0xff]   ;;  %v9084_v19 = vld [vmem:[#allocation5 + $0x970] sm:$0xff]  }
 0x1ab   :  { %v5356_v22 = vadd.f32 %v7867_v18, %v9813_v47  ;;  %v7889_v27 = vadd.f32 %v7888_v26, %v7887_v21  ;;  %v7890_v29 = vpop.f32.mrb[6].mxu1  ;;  %8190 = vmatpush3.bf16.msra.mxu1 %v9047_v30  ;;  %v7141_v47 = vcombine.high %v150_v45, %v150_v45  ;;  %v9086_v21 = vld [vmem:[#allocation5 + $0x9f0] sm:$0xff]   ;;  %v9089_v24 = vld [vmem:[#allocation5 + $0x938] sm:$0xff]   ;;  %v151_v26 = vld [vmem:[#allocation2 + $0x90] sm:$0xff] }
 0x1ac   :  { %v7891_v31 = vpop.f32.mrb[7].mxu1  ;;  %8191 = vmatprep.subr.bf16.mxu1 %v9050_v35  ;;  %v7143_v28 = vcombine.high %v151_v26, %v151_v26  ;;  %v9093_v29 = vld [vmem:[#allocation5 + $0x9b8] sm:$0xff]   ;;  %v9094_v30 = vld [vmem:[#allocation5 + $0xa40] sm:$0xff]  }
 0x1ad   :  { %v9816_v32 = vadd.f32 %v7889_v27, %v5356_v22  ;;  %8170 = vmatpush3.bf16.msra.mxu0 %v9049_v34  ;;  %5953 = vmatprep.mubr.bf16.mxu1 %v7141_v47  ;;  %v9087_v22 = vld [vmem:[#allocation5 + $0x9b0] sm:$0xff]   ;;  %v7142_v27 = vcombine.low %v151_v26, %v151_v26  ;;  %v9097_v34 = vld [vmem:[#allocation5 + $0xa00] sm:$0xff]   ;;  %v9108_v45 = vld [vmem:[#allocation5 + $0xa58] sm:$0xff]  }
 0x1ae   :  { %8171 = vmatprep.subr.bf16.mxu0 %v9052_v37  ;;  %v152_v31 = vld [vmem:[#allocation2 + $0x98] sm:$0xff]  ;;  %v9098_v35 = vld [vmem:[#allocation5 + $0xac0] sm:$0xff]   ;;  %v9110_v47 = vld [vmem:[#allocation5 + $0xad8] sm:$0xff]  }
 0x1af   :  { %8192 = vmatpush3.bf16.msra.mxu1 %v9051_v36  ;;  %v7145_v33 = vcombine.high %v152_v31, %v152_v31  ;;  %v9099_v36 = vld [vmem:[#allocation5 + $0xa80] sm:$0xff]   ;;  %v9100_v37 = vld [vmem:[#allocation5 + $0xa48] sm:$0xff]  }
 0x1b0   :  { %8193 = vmatprep.subr.bf16.mxu1 %v9054_v39  ;;  %v9102_v39 = vld [vmem:[#allocation5 + $0xac8] sm:$0xff]  }
 0x1b1   :  { %8172 = vmatpush3.bf16.msra.mxu0 %v9053_v38  ;;  %v9101_v38 = vld [vmem:[#allocation5 + $0xa08] sm:$0xff]  }
 0x1b2   :  { %8201 = vmatprep.subr.bf16.mxu0 %v9058_v44  ;;  %v9107_v44 = vld [vmem:[#allocation5 + $0xa90] sm:$0xff]   ;;  %v9139_v26 = vld [vmem:[#allocation5 + $0xb88] sm:$0xff]  }
 0x1b3   :  { %8194 = vmatpush3.bf16.msra.mxu1 %v9057_v43  ;;  %v9106_v43 = vld [vmem:[#allocation5 + $0xad0] sm:$0xff]  }
 0x1b4   :  { %5914 = vmatmul.mubr.bf16.vlgmr.msra.gmra.mrb[32].mxu0 %v7138_v41  ;;  %8223 = vmatprep.subr.bf16.mxu1 %v9062_v49  ;;  %v9104_v41 = vld [vmem:[#allocation5 + $0xa50] sm:$0xff]   ;;  %v9112_v49 = vld [vmem:[#allocation5 + $0xa60] sm:$0xff]  }
 0x1b5   :  { %8202 = vmatpush3.bf16.msra.mxu0 %v9061_v48  ;;  %5993 = vmatprep.mubr.bf16.mxu0 %v7143_v28  ;;  %v9111_v48 = vld [vmem:[#allocation5 + $0xa98] sm:$0xff]   ;;  %v9141_v28 = vld [vmem:[#allocation5 + $0xb10] sm:$0xff]  }
 0x1b6   :  { %5954 = vmatmul.mubr.bf16.vlgmr.msra.gmra.mrb[32].mxu1 %v7140_v46  ;;  %8203 = vmatprep.subr.bf16.mxu0 %v9064_v51  ;;  %v9109_v46 = vld [vmem:[#allocation5 + $0xa18] sm:$0xff]  }
 0x1b7   :  { %8224 = vmatpush3.bf16.msra.mxu1 %v9063_v50  ;;  %6033 = vmatprep.mubr.bf16.mxu1 %v7145_v33  ;;  %v9113_v50 = vld [vmem:[#allocation5 + $0xa20] sm:$0xff]   ;;  %v9146_v33 = vld [vmem:[#allocation5 + $0xbd8] sm:$0xff]  }
 0x1b8   :  { %8225 = vmatprep.subr.bf16.mxu1 %v9066_v53 }
 0x1b9   :  { %8204 = vmatpush3.bf16.msra.mxu0 %v9065_v52  ;;  %v9114_v52 = vld [vmem:[#allocation5 + $0xae0] sm:$0xff]  }
 0x1ba   :  { %8205 = vmatprep.subr.bf16.mxu0 %v9068_v55 }
 0x1bb   :  { %8226 = vmatpush3.bf16.msra.mxu1 %v9067_v54  ;;  %v9115_v54 = vld [vmem:[#allocation5 + $0xaa0] sm:$0xff]  }
 0x1bc   :  { %8227 = vmatprep.subr.bf16.mxu1 %v9070_v57  ;;  %v9116_v57 = vld [vmem:[#allocation5 + $0xa68] sm:$0xff]  }
 0x1bd   :  { %8206 = vmatpush3.bf16.msra.mxu0 %v9069_v56 }
 0x1be   :  { %8207 = vmatprep.subr.bf16.mxu0 %v9072_v59 }
 0x1bf   :  { %8228 = vmatpush3.bf16.msra.mxu1 %v9071_v58 }
 0x1c0   :  { %8229 = vmatprep.subr.bf16.mxu1 %v9074_v61 }
 0x1c1   :  { %8208 = vmatpush3.bf16.msra.mxu0 %v9073_v60  ;;  %v9117_v60 = vld [vmem:[#allocation5 + $0xa28] sm:$0xff]  }
 0x1c2   :  { %8209 = vmatprep.subr.bf16.mxu0 %v9076_v63  ;;  %v9118_v63 = vld [vmem:[#allocation5 + $0xae8] sm:$0xff]  }
 0x1c3   :  { %8230 = vmatpush3.bf16.msra.mxu1 %v9075_v62 }
 0x1c4   :  { %8231 = vmatprep.subr.bf16.mxu1 %v9078_v3  ;;  %v9120_v3 = vld [vmem:[#allocation5 + $0xa70] sm:$0xff]  }
 0x1c5   :  { %8210 = vmatpush3.bf16.msra.mxu0 %v9077_v1  ;;  %v9119_v1 = vld [vmem:[#allocation5 + $0xaa8] sm:$0xff]  }
 0x1c6   :  { %8211 = vmatprep.subr.bf16.mxu0 %v9080_v9  ;;  %v9124_v9 = vld [vmem:[#allocation5 + $0xa78] sm:$0xff]  }
 0x1c7   :  { %v7909_v0 = vpop.f32.mrb[8].mxu0  ;;  %8232 = vmatpush3.bf16.msra.mxu1 %v9079_v6  ;;  %v9121_v6 = vld [vmem:[#allocation5 + $0xa30] sm:$0xff]  }
 0x1c8   :  { %v7910_v2 = vpop.f32.mrb[9].mxu0  ;;  %8233 = vmatprep.subr.bf16.mxu1 %v9082_v14 }
 0x1c9   :  { %v7911_v4 = vadd.f32 %v7910_v2, %v7909_v0  ;;  %v7912_v5 = vpop.f32.mrb[10].mxu0  ;;  %v7931_v7 = vpop.f32.mrb[8].mxu1  ;;  %8212 = vmatpush3.bf16.msra.mxu0 %v9081_v11  ;;  %v9126_v11 = vld [vmem:[#allocation5 + $0xaf8] sm:$0xff]  }
 0x1ca   :  { %v7913_v10 = vpop.f32.mrb[11].mxu0  ;;  %v7932_v12 = vpop.f32.mrb[9].mxu1  ;;  %8213 = vmatprep.subr.bf16.mxu0 %v9084_v19 }
 0x1cb   :  { %v5436_v8 = vadd.f32 %v7911_v4, %v9816_v32  ;;  %v7933_v13 = vadd.f32 %v7932_v12, %v7931_v7  ;;  %v7934_v15 = vpop.f32.mrb[10].mxu1  ;;  %8234 = vmatpush3.bf16.msra.mxu1 %v9083_v16  ;;  %v7144_v32 = vcombine.low %v152_v31, %v152_v31  ;;  %v9122_v7 = vld [vmem:[#allocation5 + $0xaf0] sm:$0xff]   ;;  %v9125_v10 = vld [vmem:[#allocation5 + $0xa38] sm:$0xff]   ;;  %v9130_v16 = vld [vmem:[#allocation5 + $0xb40] sm:$0xff]  }
 0x1cc   :  { %v7935_v17 = vpop.f32.mrb[11].mxu1  ;;  %8235 = vmatprep.subr.bf16.mxu1 %v9086_v21  ;;  %v153_v12 = vld [vmem:[#allocation2 + $0xa0] sm:$0xff]  ;;  %v9134_v21 = vld [vmem:[#allocation5 + $0xbc0] sm:$0xff]  }
 0x1cd   :  { %v9819_v18 = vadd.f32 %v7933_v13, %v5436_v8  ;;  %8214 = vmatpush3.bf16.msra.mxu0 %v9085_v20  ;;  %v9123_v8 = vld [vmem:[#allocation5 + $0xab0] sm:$0xff]   ;;  %v7146_v13 = vcombine.low %v153_v12, %v153_v12  ;;  %v7147_v14 = vcombine.high %v153_v12, %v153_v12  ;;  %v9129_v15 = vld [vmem:[#allocation5 + $0xab8] sm:$0xff]   ;;  %v9133_v20 = vld [vmem:[#allocation5 + $0xb00] sm:$0xff]  }
 0x1ce   :  { %8215 = vmatprep.subr.bf16.mxu0 %v9088_v23  ;;  %v154_v17 = vld [vmem:[#allocation2 + $0xa8] sm:$0xff]  ;;  %v9136_v23 = vld [vmem:[#allocation5 + $0xb48] sm:$0xff]  }
 0x1cf   :  { %8236 = vmatpush3.bf16.msra.mxu1 %v9087_v22  ;;  %v7149_v19 = vcombine.high %v154_v17, %v154_v17  ;;  %v9135_v22 = vld [vmem:[#allocation5 + $0xb80] sm:$0xff]   ;;  %v9144_v31 = vld [vmem:[#allocation5 + $0xb58] sm:$0xff]   ;;  %v9175_v12 = vld [vmem:[#allocation5 + $0xc88] sm:$0xff]  }
 0x1d0   :  { %8237 = vmatprep.subr.bf16.mxu1 %v9090_v25  ;;  %v9138_v25 = vld [vmem:[#allocation5 + $0xbc8] sm:$0xff]  }
 0x1d1   :  { %8216 = vmatpush3.bf16.msra.mxu0 %v9089_v24  ;;  %v9137_v24 = vld [vmem:[#allocation5 + $0xb08] sm:$0xff]  }
 0x1d2   :  { %8245 = vmatprep.subr.bf16.mxu0 %v9094_v30  ;;  %v9143_v30 = vld [vmem:[#allocation5 + $0xb90] sm:$0xff]  }
 0x1d3   :  { %8238 = vmatpush3.bf16.msra.mxu1 %v9093_v29  ;;  %v9142_v29 = vld [vmem:[#allocation5 + $0xbd0] sm:$0xff]  }
 0x1d4   :  { %5994 = vmatmul.mubr.bf16.vlgmr.msra.gmra.mrb[36].mxu0 %v7142_v27  ;;  %8267 = vmatprep.subr.bf16.mxu1 %v9098_v35  ;;  %v9140_v27 = vld [vmem:[#allocation5 + $0xb50] sm:$0xff]   ;;  %v9148_v35 = vld [vmem:[#allocation5 + $0xb60] sm:$0xff]  }
 0x1d5   :  { %8246 = vmatpush3.bf16.msra.mxu0 %v9097_v34  ;;  %6073 = vmatprep.mubr.bf16.mxu0 %v7147_v14  ;;  %v9147_v34 = vld [vmem:[#allocation5 + $0xb98] sm:$0xff]   ;;  %v9177_v14 = vld [vmem:[#allocation5 + $0xc10] sm:$0xff]  }
 0x1d6   :  { %6034 = vmatmul.mubr.bf16.vlgmr.msra.gmra.mrb[36].mxu1 %v7144_v32  ;;  %8247 = vmatprep.subr.bf16.mxu0 %v9100_v37  ;;  %v9145_v32 = vld [vmem:[#allocation5 + $0xb18] sm:$0xff]   ;;  %v9149_v37 = vld [vmem:[#allocation5 + $0xb20] sm:$0xff]  }
 0x1d7   :  { %8268 = vmatpush3.bf16.msra.mxu1 %v9099_v36  ;;  %6113 = vmatprep.mubr.bf16.mxu1 %v7149_v19  ;;  %v9182_v19 = vld [vmem:[#allocation5 + $0xcd8] sm:$0xff]  }
 0x1d8   :  { %8269 = vmatprep.subr.bf16.mxu1 %v9102_v39  ;;  %v9150_v39 = vld [vmem:[#allocation5 + $0xbe0] sm:$0xff]  }
 0x1d9   :  { %8248 = vmatpush3.bf16.msra.mxu0 %v9101_v38 }
 0x1da   :  { %8249 = vmatprep.subr.bf16.mxu0 %v9104_v41 }
 0x1db   :  { %8270 = vmatpush3.bf16.msra.mxu1 %v9103_v40 }
 0x1dc   :  { %8271 = vmatprep.subr.bf16.mxu1 %v9106_v43 }
 0x1dd   :  { %8250 = vmatpush3.bf16.msra.mxu0 %v9105_v42  ;;  %v9151_v42 = vld [vmem:[#allocation5 + $0xba0] sm:$0xff]  }
 0x1de   :  { %8251 = vmatprep.subr.bf16.mxu0 %v9108_v45  ;;  %v9152_v45 = vld [vmem:[#allocation5 + $0xb68] sm:$0xff]  }
 0x1df   :  { %8272 = vmatpush3.bf16.msra.mxu1 %v9107_v44 }
 0x1e0   :  { %8273 = vmatprep.subr.bf16.mxu1 %v9110_v47  ;;  %v9153_v47 = vld [vmem:[#allocation5 + $0xb28] sm:$0xff]  }
 0x1e1   :  { %8252 = vmatpush3.bf16.msra.mxu0 %v9109_v46 }
 0x1e2   :  { %8253 = vmatprep.subr.bf16.mxu0 %v9112_v49 }
 0x1e3   :  { %8274 = vmatpush3.bf16.msra.mxu1 %v9111_v48 }
 0x1e4   :  { %8275 = vmatprep.subr.bf16.mxu1 %v9114_v52  ;;  %v9155_v52 = vld [vmem:[#allocation5 + $0xba8] sm:$0xff]  }
 0x1e5   :  { %8254 = vmatpush3.bf16.msra.mxu0 %v9113_v50  ;;  %v9154_v50 = vld [vmem:[#allocation5 + $0xbe8] sm:$0xff]  }
 0x1e6   :  { %8255 = vmatprep.subr.bf16.mxu0 %v9116_v57  ;;  %v9158_v57 = vld [vmem:[#allocation5 + $0xbf0] sm:$0xff]  }
 0x1e7   :  { %v7953_v51 = vpop.f32.mrb[12].mxu0  ;;  %8276 = vmatpush3.bf16.msra.mxu1 %v9115_v54 }
 0x1e8   :  { %v7954_v53 = vpop.f32.mrb[13].mxu0  ;;  %8277 = vmatprep.subr.bf16.mxu1 %v9118_v63 }
 0x1e9   :  { %v7955_v55 = vadd.f32 %v7954_v53, %v7953_v51  ;;  %v7956_v56 = vpop.f32.mrb[14].mxu0  ;;  %v7975_v58 = vpop.f32.mrb[12].mxu1  ;;  %8256 = vmatpush3.bf16.msra.mxu0 %v9117_v60  ;;  %v9161_v60 = vld [vmem:[#allocation5 + $0xb38] sm:$0xff]  }
 0x1ea   :  { %v7957_v61 = vpop.f32.mrb[15].mxu0  ;;  %v7976_v62 = vpop.f32.mrb[13].mxu1  ;;  %8257 = vmatprep.subr.bf16.mxu0 %v9120_v3  ;;  %v9157_v56 = vld [vmem:[#allocation5 + $0xb30] sm:$0xff]  }
 0x1eb   :  { %v5516_v59 = vadd.f32 %v7955_v55, %v9819_v18  ;;  %v7977_v0 = vadd.f32 %v7976_v62, %v7975_v58  ;;  %v7978_v2 = vpop.f32.mrb[14].mxu1  ;;  %8278 = vmatpush3.bf16.msra.mxu1 %v9119_v1  ;;  %v7148_v18 = vcombine.low %v154_v17, %v154_v17  ;;  %v9156_v55 = vld [vmem:[#allocation5 + $0xb70] sm:$0xff]   ;;  %v9162_v61 = vld [vmem:[#allocation5 + $0xbf8] sm:$0xff]   ;;  %v155_v62 = vld [vmem:[#allocation2 + $0xb0] sm:$0xff] }
 0x1ec   :  { %v7979_v4 = vpop.f32.mrb[15].mxu1  ;;  %8279 = vmatprep.subr.bf16.mxu1 %v9122_v7  ;;  %v9159_v58 = vld [vmem:[#allocation5 + $0xbb0] sm:$0xff]   ;;  %v7150_v63 = vcombine.low %v155_v62, %v155_v62  ;;  %v9165_v1 = vld [vmem:[#allocation5 + $0xbb8] sm:$0xff]   ;;  %v9166_v2 = vld [vmem:[#allocation5 + $0xc40] sm:$0xff]  }
 0x1ed   :  { %v9822_v5 = vadd.f32 %v7977_v0, %v5516_v59  ;;  %8258 = vmatpush3.bf16.msra.mxu0 %v9121_v6  ;;  %v9160_v59 = vld [vmem:[#allocation5 + $0xb78] sm:$0xff]   ;;  %v7151_v0 = vcombine.high %v155_v62, %v155_v62  ;;  %v156_v3 = vld [vmem:[#allocation2 + $0xb8] sm:$0xff]  ;;  %v9169_v6 = vld [vmem:[#allocation5 + $0xc00] sm:$0xff]  }
 0x1ee   :  { %8259 = vmatprep.subr.bf16.mxu0 %v9124_v9  ;;  %v7152_v4 = vcombine.low %v156_v3, %v156_v3  ;;  %v9170_v7 = vld [vmem:[#allocation5 + $0xcc0] sm:$0xff]   ;;  %v9172_v9 = vld [vmem:[#allocation5 + $0xc48] sm:$0xff]   ;;  %v9180_v17 = vld [vmem:[#allocation5 + $0xc58] sm:$0xff]  }
 0x1ef   :  { %8280 = vmatpush3.bf16.msra.mxu1 %v9123_v8  ;;  %v9171_v8 = vld [vmem:[#allocation5 + $0xc80] sm:$0xff]   ;;  %v9211_v62 = vld [vmem:[#allocation5 + $0xd88] sm:$0xff]  }
 0x1f0   :  { %8281 = vmatprep.subr.bf16.mxu1 %v9126_v11  ;;  %v9174_v11 = vld [vmem:[#allocation5 + $0xcc8] sm:$0xff]  }
 0x1f1   :  { %8260 = vmatpush3.bf16.msra.mxu0 %v9125_v10  ;;  %v9173_v10 = vld [vmem:[#allocation5 + $0xc08] sm:$0xff]  }
 0x1f2   :  { %8289 = vmatprep.subr.bf16.mxu0 %v9130_v16  ;;  %v9179_v16 = vld [vmem:[#allocation5 + $0xc90] sm:$0xff]  }
 0x1f3   :  { %8282 = vmatpush3.bf16.msra.mxu1 %v9129_v15  ;;  %v9178_v15 = vld [vmem:[#allocation5 + $0xcd0] sm:$0xff]  }
 0x1f4   :  { %6074 = vmatmul.mubr.bf16.vlgmr.msra.gmra.mrb[40].mxu0 %v7146_v13  ;;  %8311 = vmatprep.subr.bf16.mxu1 %v9134_v21  ;;  %v9176_v13 = vld [vmem:[#allocation5 + $0xc50] sm:$0xff]   ;;  %v9184_v21 = vld [vmem:[#allocation5 + $0xc60] sm:$0xff]  }
 0x1f5   :  { %8290 = vmatpush3.bf16.msra.mxu0 %v9133_v20  ;;  %6153 = vmatprep.mubr.bf16.mxu0 %v7151_v0  ;;  %v9183_v20 = vld [vmem:[#allocation5 + $0xc98] sm:$0xff]   ;;  %v9213_v0 = vld [vmem:[#allocation5 + $0xd10] sm:$0xff]  }
 0x1f6   :  { %6114 = vmatmul.mubr.bf16.vlgmr.msra.gmra.mrb[40].mxu1 %v7148_v18  ;;  %8291 = vmatprep.subr.bf16.mxu0 %v9136_v23  ;;  %v9181_v18 = vld [vmem:[#allocation5 + $0xc18] sm:$0xff]   ;;  %v9185_v23 = vld [vmem:[#allocation5 + $0xc20] sm:$0xff]  }
 0x1f7   :  { %8312 = vmatpush3.bf16.msra.mxu1 %v9135_v22 }
 0x1f8   :  { %8313 = vmatprep.subr.bf16.mxu1 %v9138_v25  ;;  %v9186_v25 = vld [vmem:[#allocation5 + $0xce0] sm:$0xff]  }
 0x1f9   :  { %8292 = vmatpush3.bf16.msra.mxu0 %v9137_v24 }
 0x1fa   :  { %8293 = vmatprep.subr.bf16.mxu0 %v9140_v27 }
 0x1fb   :  { %8314 = vmatpush3.bf16.msra.mxu1 %v9139_v26 }
 0x1fc   :  { %8315 = vmatprep.subr.bf16.mxu1 %v9142_v29 }
 0x1fd   :  { %8294 = vmatpush3.bf16.msra.mxu0 %v9141_v28  ;;  %v9187_v28 = vld [vmem:[#allocation5 + $0xca0] sm:$0xff]  }
 0x1fe   :  { %8295 = vmatprep.subr.bf16.mxu0 %v9144_v31  ;;  %v9188_v31 = vld [vmem:[#allocation5 + $0xc68] sm:$0xff]  }
 0x1ff   :  { %8316 = vmatpush3.bf16.msra.mxu1 %v9143_v30 }
 0x200   :  { %8317 = vmatprep.subr.bf16.mxu1 %v9146_v33  ;;  %v9189_v33 = vld [vmem:[#allocation5 + $0xc28] sm:$0xff]  }
 0x201   :  { %8296 = vmatpush3.bf16.msra.mxu0 %v9145_v32 }
 0x202   :  { %8297 = vmatprep.subr.bf16.mxu0 %v9148_v35 }
 0x203   :  { %8318 = vmatpush3.bf16.msra.mxu1 %v9147_v34 }
 0x204   :  { %8319 = vmatprep.subr.bf16.mxu1 %v9150_v39 }
 0x205   :  { %8298 = vmatpush3.bf16.msra.mxu0 %v9149_v37 }
 0x206   :  { %8299 = vmatprep.subr.bf16.mxu0 %v9152_v45  ;;  %v9196_v45 = vld [vmem:[#allocation5 + $0xc78] sm:$0xff]  }
 0x207   :  { %v7997_v36 = vpop.f32.mrb[16].mxu0  ;;  %8320 = vmatpush3.bf16.msra.mxu1 %v9151_v42  ;;  %v9193_v42 = vld [vmem:[#allocation5 + $0xc30] sm:$0xff]  }
 0x208   :  { %v7998_v38 = vpop.f32.mrb[17].mxu0  ;;  %8321 = vmatprep.subr.bf16.mxu1 %v9154_v50 }
 0x209   :  { %v7999_v40 = vadd.f32 %v7998_v38, %v7997_v36  ;;  %v8000_v41 = vpop.f32.mrb[18].mxu0  ;;  %v8019_v43 = vpop.f32.mrb[16].mxu1  ;;  %8300 = vmatpush3.bf16.msra.mxu0 %v9153_v47  ;;  %v9190_v36 = vld [vmem:[#allocation5 + $0xce8] sm:$0xff]   ;;  %v9198_v47 = vld [vmem:[#allocation5 + $0xcf8] sm:$0xff]  }
 0x20a   :  { %v8001_v46 = vpop.f32.mrb[19].mxu0  ;;  %v8020_v48 = vpop.f32.mrb[17].mxu1  ;;  %8301 = vmatprep.subr.bf16.mxu0 %v9156_v55  ;;  %v9191_v38 = vld [vmem:[#allocation5 + $0xca8] sm:$0xff]   ;;  %v9192_v41 = vld [vmem:[#allocation5 + $0xc70] sm:$0xff]  }
 0x20b   :  { %v5596_v44 = vadd.f32 %v7999_v40, %v9822_v5  ;;  %v8021_v49 = vadd.f32 %v8020_v48, %v8019_v43  ;;  %v8022_v51 = vpop.f32.mrb[18].mxu1  ;;  %8322 = vmatpush3.bf16.msra.mxu1 %v9155_v52  ;;  %v7153_v5 = vcombine.high %v156_v3, %v156_v3  ;;  %v9194_v43 = vld [vmem:[#allocation5 + $0xcf0] sm:$0xff]   ;;  %v9197_v46 = vld [vmem:[#allocation5 + $0xc38] sm:$0xff]   ;;  %v9202_v52 = vld [vmem:[#allocation5 + $0xd40] sm:$0xff]  }
 0x20c   :  { %v8023_v53 = vpop.f32.mrb[19].mxu1  ;;  %8323 = vmatprep.subr.bf16.mxu1 %v9158_v57  ;;  %v157_v48 = vld [vmem:[#allocation2 + $0xc0] sm:$0xff]  ;;  %v9206_v57 = vld [vmem:[#allocation5 + $0xdc0] sm:$0xff]  }
 0x20d   :  { %v9825_v54 = vadd.f32 %v8021_v49, %v5596_v44  ;;  %8302 = vmatpush3.bf16.msra.mxu0 %v9157_v56  ;;  %6193 = vmatprep.mubr.bf16.mxu1 %v7153_v5  ;;  %v9195_v44 = vld [vmem:[#allocation5 + $0xcb0] sm:$0xff]   ;;  %v7154_v49 = vcombine.low %v157_v48, %v157_v48  ;;  %v7155_v50 = vcombine.high %v157_v48, %v157_v48  ;;  %v9201_v51 = vld [vmem:[#allocation5 + $0xcb8] sm:$0xff]   ;;  %v9205_v56 = vld [vmem:[#allocation5 + $0xd00] sm:$0xff]  }
 0x20e   :  { %8303 = vmatprep.subr.bf16.mxu0 %v9160_v59  ;;  %v158_v53 = vld [vmem:[#allocation2 + $0xc8] sm:$0xff]  ;;  %v9208_v59 = vld [vmem:[#allocation5 + $0xd48] sm:$0xff]  }
 0x20f   :  { %8324 = vmatpush3.bf16.msra.mxu1 %v9159_v58  ;;  %v7157_v55 = vcombine.high %v158_v53, %v158_v53  ;;  %v9207_v58 = vld [vmem:[#allocation5 + $0xd80] sm:$0xff]   ;;  %v9216_v3 = vld [vmem:[#allocation5 + $0xd58] sm:$0xff]   ;;  %v9247_v48 = vld [vmem:[#allocation5 + $0xe88] sm:$0xff]  }
 0x210   :  { %8325 = vmatprep.subr.bf16.mxu1 %v9162_v61  ;;  %v9210_v61 = vld [vmem:[#allocation5 + $0xdc8] sm:$0xff]   ;;  %v9218_v5 = vld [vmem:[#allocation5 + $0xdd8] sm:$0xff]  }
 0x211   :  { %8304 = vmatpush3.bf16.msra.mxu0 %v9161_v60  ;;  %v9209_v60 = vld [vmem:[#allocation5 + $0xd08] sm:$0xff]  }
 0x212   :  { %8333 = vmatprep.subr.bf16.mxu0 %v9166_v2  ;;  %v9215_v2 = vld [vmem:[#allocation5 + $0xd90] sm:$0xff]  }
 0x213   :  { %8326 = vmatpush3.bf16.msra.mxu1 %v9165_v1  ;;  %v9214_v1 = vld [vmem:[#allocation5 + $0xdd0] sm:$0xff]  }
 0x214   :  { %6154 = vmatmul.mubr.bf16.vlgmr.msra.gmra.mrb[44].mxu0 %v7150_v63  ;;  %8355 = vmatprep.subr.bf16.mxu1 %v9170_v7  ;;  %v9212_v63 = vld [vmem:[#allocation5 + $0xd50] sm:$0xff]   ;;  %v9220_v7 = vld [vmem:[#allocation5 + $0xd60] sm:$0xff]  }
 0x215   :  { %8334 = vmatpush3.bf16.msra.mxu0 %v9169_v6  ;;  %6233 = vmatprep.mubr.bf16.mxu0 %v7155_v50  ;;  %v9219_v6 = vld [vmem:[#allocation5 + $0xd98] sm:$0xff]   ;;  %v9249_v50 = vld [vmem:[#allocation5 + $0xe10] sm:$0xff]  }
 0x216   :  { %6194 = vmatmul.mubr.bf16.vlgmr.msra.gmra.mrb[44].mxu1 %v7152_v4  ;;  %8335 = vmatprep.subr.bf16.mxu0 %v9172_v9  ;;  %v9217_v4 = vld [vmem:[#allocation5 + $0xd18] sm:$0xff]  }
 0x217   :  { %8356 = vmatpush3.bf16.msra.mxu1 %v9171_v8  ;;  %6273 = vmatprep.mubr.bf16.mxu1 %v7157_v55  ;;  %v9221_v8 = vld [vmem:[#allocation5 + $0xd20] sm:$0xff]   ;;  %v9254_v55 = vld [vmem:[#allocation5 + $0xed8] sm:$0xff]  }
 0x218   :  { %8357 = vmatprep.subr.bf16.mxu1 %v9174_v11 }
 0x219   :  { %8336 = vmatpush3.bf16.msra.mxu0 %v9173_v10  ;;  %v9222_v10 = vld [vmem:[#allocation5 + $0xde0] sm:$0xff]  }
 0x21a   :  { %8337 = vmatprep.subr.bf16.mxu0 %v9176_v13 }
 0x21b   :  { %8358 = vmatpush3.bf16.msra.mxu1 %v9175_v12  ;;  %v9223_v12 = vld [vmem:[#allocation5 + $0xda0] sm:$0xff]  }
 0x21c   :  { %8359 = vmatprep.subr.bf16.mxu1 %v9178_v15  ;;  %v9224_v15 = vld [vmem:[#allocation5 + $0xd68] sm:$0xff]  }
 0x21d   :  { %8338 = vmatpush3.bf16.msra.mxu0 %v9177_v14 }
 0x21e   :  { %8339 = vmatprep.subr.bf16.mxu0 %v9180_v17 }
 0x21f   :  { %8360 = vmatpush3.bf16.msra.mxu1 %v9179_v16 }
 0x220   :  { %8361 = vmatprep.subr.bf16.mxu1 %v9182_v19 }
 0x221   :  { %8340 = vmatpush3.bf16.msra.mxu0 %v9181_v18  ;;  %v9225_v18 = vld [vmem:[#allocation5 + $0xd28] sm:$0xff]  }
 0x222   :  { %8341 = vmatprep.subr.bf16.mxu0 %v9184_v21  ;;  %v9226_v21 = vld [vmem:[#allocation5 + $0xde8] sm:$0xff]  }
 0x223   :  { %8362 = vmatpush3.bf16.msra.mxu1 %v9183_v20 }
 0x224   :  { %8363 = vmatprep.subr.bf16.mxu1 %v9186_v25  ;;  %v9228_v25 = vld [vmem:[#allocation5 + $0xd70] sm:$0xff]  }
 0x225   :  { %8342 = vmatpush3.bf16.msra.mxu0 %v9185_v23  ;;  %v9227_v23 = vld [vmem:[#allocation5 + $0xda8] sm:$0xff]  }
 0x226   :  { %8343 = vmatprep.subr.bf16.mxu0 %v9188_v31  ;;  %v9232_v31 = vld [vmem:[#allocation5 + $0xd78] sm:$0xff]  }
 0x227   :  { %v8041_v22 = vpop.f32.mrb[20].mxu0  ;;  %8364 = vmatpush3.bf16.msra.mxu1 %v9187_v28  ;;  %v9229_v28 = vld [vmem:[#allocation5 + $0xd30] sm:$0xff]  }
 0x228   :  { %v8042_v24 = vpop.f32.mrb[21].mxu0  ;;  %8365 = vmatprep.subr.bf16.mxu1 %v9190_v36 }
 0x229   :  { %v8043_v26 = vadd.f32 %v8042_v24, %v8041_v22  ;;  %v8044_v27 = vpop.f32.mrb[22].mxu0  ;;  %v8063_v29 = vpop.f32.mrb[20].mxu1  ;;  %8344 = vmatpush3.bf16.msra.mxu0 %v9189_v33  ;;  %v9234_v33 = vld [vmem:[#allocation5 + $0xdf8] sm:$0xff]  }
 0x22a   :  { %v8045_v32 = vpop.f32.mrb[23].mxu0  ;;  %v8064_v34 = vpop.f32.mrb[21].mxu1  ;;  %8345 = vmatprep.subr.bf16.mxu0 %v9192_v41 }
 0x22b   :  { %v5676_v30 = vadd.f32 %v8043_v26, %v9825_v54  ;;  %v8065_v35 = vadd.f32 %v8064_v34, %v8063_v29  ;;  %v8066_v37 = vpop.f32.mrb[22].mxu1  ;;  %8366 = vmatpush3.bf16.msra.mxu1 %v9191_v38  ;;  %v7156_v54 = vcombine.low %v158_v53, %v158_v53  ;;  %v9230_v29 = vld [vmem:[#allocation5 + $0xdf0] sm:$0xff]   ;;  %v9233_v32 = vld [vmem:[#allocation5 + $0xd38] sm:$0xff]   ;;  %v159_v34 = vld [vmem:[#allocation2 + $0xd0] sm:$0xff] }
 0x22c   :  { %v8067_v39 = vpop.f32.mrb[23].mxu1  ;;  %8367 = vmatprep.subr.bf16.mxu1 %v9194_v43  ;;  %v7159_v36 = vcombine.high %v159_v34, %v159_v34  ;;  %v9237_v37 = vld [vmem:[#allocation5 + $0xdb8] sm:$0xff]   ;;  %v9238_v38 = vld [vmem:[#allocation5 + $0xe40] sm:$0xff]  }
 0x22d   :  { %v9828_v40 = vadd.f32 %v8065_v35, %v5676_v30  ;;  %8346 = vmatpush3.bf16.msra.mxu0 %v9193_v42  ;;  %v9231_v30 = vld [vmem:[#allocation5 + $0xdb0] sm:$0xff]   ;;  %v7158_v35 = vcombine.low %v159_v34, %v159_v34  ;;  %v9241_v42 = vld [vmem:[#allocation5 + $0xe00] sm:$0xff]   ;;  %v9252_v53 = vld [vmem:[#allocation5 + $0xe58] sm:$0xff]  }
 0x22e   :  { %8347 = vmatprep.subr.bf16.mxu0 %v9196_v45  ;;  %v160_v39 = vld [vmem:[#allocation2 + $0xd8] sm:$0xff]  ;;  %v9242_v43 = vld [vmem:[#allocation5 + $0xec0] sm:$0xff]  }
 0x22f   :  { %8368 = vmatpush3.bf16.msra.mxu1 %v9195_v44  ;;  %v7161_v41 = vcombine.high %v160_v39, %v160_v39  ;;  %v9243_v44 = vld [vmem:[#allocation5 + $0xe80] sm:$0xff]   ;;  %v9244_v45 = vld [vmem:[#allocation5 + $0xe48] sm:$0xff]  }
 0x230   :  { %8369 = vmatprep.subr.bf16.mxu1 %v9198_v47  ;;  %v9246_v47 = vld [vmem:[#allocation5 + $0xec8] sm:$0xff]  }
 0x231   :  { %8348 = vmatpush3.bf16.msra.mxu0 %v9197_v46  ;;  %v9245_v46 = vld [vmem:[#allocation5 + $0xe08] sm:$0xff]  }
 0x232   :  { %8377 = vmatprep.subr.bf16.mxu0 %v9202_v52  ;;  %v9251_v52 = vld [vmem:[#allocation5 + $0xe90] sm:$0xff]   ;;  %v9283_v34 = vld [vmem:[#allocation5 + $0xf88] sm:$0xff]  }
 0x233   :  { %8370 = vmatpush3.bf16.msra.mxu1 %v9201_v51  ;;  %v9250_v51 = vld [vmem:[#allocation5 + $0xed0] sm:$0xff]  }
 0x234   :  { %6234 = vmatmul.mubr.bf16.vlgmr.msra.gmra.mrb[48].mxu0 %v7154_v49  ;;  %8399 = vmatprep.subr.bf16.mxu1 %v9206_v57  ;;  %v9248_v49 = vld [vmem:[#allocation5 + $0xe50] sm:$0xff]   ;;  %v9256_v57 = vld [vmem:[#allocation5 + $0xe60] sm:$0xff]  }
 0x235   :  { %8378 = vmatpush3.bf16.msra.mxu0 %v9205_v56  ;;  %6313 = vmatprep.mubr.bf16.mxu0 %v7159_v36  ;;  %v9255_v56 = vld [vmem:[#allocation5 + $0xe98] sm:$0xff]   ;;  %v9285_v36 = vld [vmem:[#allocation5 + $0xf10] sm:$0xff]  }
 0x236   :  { %6274 = vmatmul.mubr.bf16.vlgmr.msra.gmra.mrb[48].mxu1 %v7156_v54  ;;  %8379 = vmatprep.subr.bf16.mxu0 %v9208_v59  ;;  %v9253_v54 = vld [vmem:[#allocation5 + $0xe18] sm:$0xff]  }
 0x237   :  { %8400 = vmatpush3.bf16.msra.mxu1 %v9207_v58  ;;  %6353 = vmatprep.mubr.bf16.mxu1 %v7161_v41  ;;  %v9257_v58 = vld [vmem:[#allocation5 + $0xe20] sm:$0xff]   ;;  %v9290_v41 = vld [vmem:[#allocation5 + $0xfd8] sm:$0xff]  }
 0x238   :  { %8401 = vmatprep.subr.bf16.mxu1 %v9210_v61 }
 0x239   :  { %8380 = vmatpush3.bf16.msra.mxu0 %v9209_v60  ;;  %v9258_v60 = vld [vmem:[#allocation5 + $0xee0] sm:$0xff]  }
 0x23a   :  { %8381 = vmatprep.subr.bf16.mxu0 %v9212_v63 }
 0x23b   :  { %8402 = vmatpush3.bf16.msra.mxu1 %v9211_v62  ;;  %v9259_v62 = vld [vmem:[#allocation5 + $0xea0] sm:$0xff]  }
 0x23c   :  { %8403 = vmatprep.subr.bf16.mxu1 %v9214_v1  ;;  %v9260_v1 = vld [vmem:[#allocation5 + $0xe68] sm:$0xff]  }
 0x23d   :  { %8382 = vmatpush3.bf16.msra.mxu0 %v9213_v0 }
 0x23e   :  { %8383 = vmatprep.subr.bf16.mxu0 %v9216_v3 }
 0x23f   :  { %8404 = vmatpush3.bf16.msra.mxu1 %v9215_v2 }
 0x240   :  { %8405 = vmatprep.subr.bf16.mxu1 %v9218_v5 }
 0x241   :  { %8384 = vmatpush3.bf16.msra.mxu0 %v9217_v4  ;;  %v9261_v4 = vld [vmem:[#allocation5 + $0xe28] sm:$0xff]  }
 0x242   :  { %8385 = vmatprep.subr.bf16.mxu0 %v9220_v7  ;;  %v9262_v7 = vld [vmem:[#allocation5 + $0xee8] sm:$0xff]  }
 0x243   :  { %8406 = vmatpush3.bf16.msra.mxu1 %v9219_v6 }
 0x244   :  { %8407 = vmatprep.subr.bf16.mxu1 %v9222_v10 }
 0x245   :  { %8386 = vmatpush3.bf16.msra.mxu0 %v9221_v8 }
 0x246   :  { %8387 = vmatprep.subr.bf16.mxu0 %v9224_v15  ;;  %v9266_v15 = vld [vmem:[#allocation5 + $0xef0] sm:$0xff]  }
 0x247   :  { %v8085_v9 = vpop.f32.mrb[24].mxu0  ;;  %8408 = vmatpush3.bf16.msra.mxu1 %v9223_v12  ;;  %v9264_v12 = vld [vmem:[#allocation5 + $0xe70] sm:$0xff]  }
 0x248   :  { %v8086_v11 = vpop.f32.mrb[25].mxu0  ;;  %8409 = vmatprep.subr.bf16.mxu1 %v9226_v21 }
 0x249   :  { %v8087_v13 = vadd.f32 %v8086_v11, %v8085_v9  ;;  %v8088_v14 = vpop.f32.mrb[26].mxu0  ;;  %v8107_v16 = vpop.f32.mrb[24].mxu1  ;;  %8388 = vmatpush3.bf16.msra.mxu0 %v9225_v18  ;;  %v9263_v9 = vld [vmem:[#allocation5 + $0xea8] sm:$0xff]   ;;  %v9269_v18 = vld [vmem:[#allocation5 + $0xe38] sm:$0xff]  }
 0x24a   :  { %v8089_v19 = vpop.f32.mrb[27].mxu0  ;;  %v8108_v20 = vpop.f32.mrb[25].mxu1  ;;  %8389 = vmatprep.subr.bf16.mxu0 %v9228_v25  ;;  %v9265_v14 = vld [vmem:[#allocation5 + $0xe30] sm:$0xff]   ;;  %v162_v25 = vld [vmem:[#allocation2 + $0xe8] sm:$0xff] }
 0x24b   :  { %v5756_v17 = vadd.f32 %v8087_v13, %v9828_v40  ;;  %v8109_v22 = vadd.f32 %v8108_v20, %v8107_v16  ;;  %v8110_v24 = vpop.f32.mrb[26].mxu1  ;;  %8410 = vmatpush3.bf16.msra.mxu1 %v9227_v23  ;;  %v7160_v40 = vcombine.low %v160_v39, %v160_v39  ;;  %v9267_v16 = vld [vmem:[#allocation5 + $0xeb0] sm:$0xff]   ;;  %v9270_v19 = vld [vmem:[#allocation5 + $0xef8] sm:$0xff]  }
 0x24c   :  { %v8111_v26 = vpop.f32.mrb[27].mxu1  ;;  %8411 = vmatprep.subr.bf16.mxu1 %v9230_v29  ;;  %v161_v20 = vld [vmem:[#allocation2 + $0xe0] sm:$0xff]  ;;  %v9274_v24 = vld [vmem:[#allocation5 + $0xf40] sm:$0xff]  }
 0x24d   :  { %v9831_v27 = vadd.f32 %v8109_v22, %v5756_v17  ;;  %8390 = vmatpush3.bf16.msra.mxu0 %v9229_v28  ;;  %v9268_v17 = vld [vmem:[#allocation5 + $0xe78] sm:$0xff]   ;;  %v7162_v21 = vcombine.low %v161_v20, %v161_v20  ;;  %v7163_v22 = vcombine.high %v161_v20, %v161_v20  ;;  %v7164_v26 = vcombine.low %v162_v25, %v162_v25  ;;  %v9277_v28 = vld [vmem:[#allocation5 + $0xf00] sm:$0xff]   ;;  %v9319_v20 = vld [vmem:[#allocation5 + $0x1088] sm:$0xff]  }
 0x24e   :  { %8391 = vmatprep.subr.bf16.mxu0 %v9232_v31  ;;  %v9273_v23 = vld [vmem:[#allocation5 + $0xeb8] sm:$0xff]   ;;  %v9278_v29 = vld [vmem:[#allocation5 + $0xfc0] sm:$0xff]   ;;  %v9280_v31 = vld [vmem:[#allocation5 + $0xf48] sm:$0xff]  }
 0x24f   :  { %8412 = vmatpush3.bf16.msra.mxu1 %v9231_v30  ;;  %v9279_v30 = vld [vmem:[#allocation5 + $0xf80] sm:$0xff]   ;;  %v9288_v39 = vld [vmem:[#allocation5 + $0xf58] sm:$0xff]  }
 0x250   :  { %8413 = vmatprep.subr.bf16.mxu1 %v9234_v33  ;;  %v9282_v33 = vld [vmem:[#allocation5 + $0xfc8] sm:$0xff]  }
 0x251   :  { %8392 = vmatpush3.bf16.msra.mxu0 %v9233_v32  ;;  %v9281_v32 = vld [vmem:[#allocation5 + $0xf08] sm:$0xff]  }
 0x252   :  { %8421 = vmatprep.subr.bf16.mxu0 %v9238_v38  ;;  %v9287_v38 = vld [vmem:[#allocation5 + $0xf90] sm:$0xff]  }
 0x253   :  { %8414 = vmatpush3.bf16.msra.mxu1 %v9237_v37  ;;  %v9286_v37 = vld [vmem:[#allocation5 + $0xfd0] sm:$0xff]  }
 0x254   :  { %6314 = vmatmul.mubr.bf16.vlgmr.msra.gmra.mrb[52].mxu0 %v7158_v35  ;;  %8443 = vmatprep.subr.bf16.mxu1 %v9242_v43  ;;  %v9284_v35 = vld [vmem:[#allocation5 + $0xf50] sm:$0xff]   ;;  %v9292_v43 = vld [vmem:[#allocation5 + $0xf60] sm:$0xff]  }
 0x255   :  { %8422 = vmatpush3.bf16.msra.mxu0 %v9241_v42  ;;  %6393 = vmatprep.mubr.bf16.mxu0 %v7163_v22  ;;  %v9291_v42 = vld [vmem:[#allocation5 + $0xf98] sm:$0xff]   ;;  %v9321_v22 = vld [vmem:[#allocation5 + $0x1010] sm:$0xff]  }
 0x256   :  { %6354 = vmatmul.mubr.bf16.vlgmr.msra.gmra.mrb[52].mxu1 %v7160_v40  ;;  %8423 = vmatprep.subr.bf16.mxu0 %v9244_v45  ;;  %v9289_v40 = vld [vmem:[#allocation5 + $0xf18] sm:$0xff]   ;;  %v9293_v45 = vld [vmem:[#allocation5 + $0xf20] sm:$0xff]  }
 0x257   :  { %8444 = vmatpush3.bf16.msra.mxu1 %v9243_v44 }
 0x258   :  { %8445 = vmatprep.subr.bf16.mxu1 %v9246_v47  ;;  %v9294_v47 = vld [vmem:[#allocation5 + $0xfe0] sm:$0xff]  }
 0x259   :  { %8424 = vmatpush3.bf16.msra.mxu0 %v9245_v46 }
 0x25a   :  { %8425 = vmatprep.subr.bf16.mxu0 %v9248_v49 }
 0x25b   :  { %8446 = vmatpush3.bf16.msra.mxu1 %v9247_v48 }
 0x25c   :  { %8447 = vmatprep.subr.bf16.mxu1 %v9250_v51 }
 0x25d   :  { %8426 = vmatpush3.bf16.msra.mxu0 %v9249_v50  ;;  %v9295_v50 = vld [vmem:[#allocation5 + $0xfa0] sm:$0xff]  }
 0x25e   :  { %8427 = vmatprep.subr.bf16.mxu0 %v9252_v53  ;;  %v9296_v53 = vld [vmem:[#allocation5 + $0xf68] sm:$0xff]  }
 0x25f   :  { %8448 = vmatpush3.bf16.msra.mxu1 %v9251_v52 }
 0x260   :  { %8449 = vmatprep.subr.bf16.mxu1 %v9254_v55  ;;  %v9297_v55 = vld [vmem:[#allocation5 + $0xf28] sm:$0xff]  }
 0x261   :  { %8428 = vmatpush3.bf16.msra.mxu0 %v9253_v54 }
 0x262   :  { %8429 = vmatprep.subr.bf16.mxu0 %v9256_v57 }
 0x263   :  { %8450 = vmatpush3.bf16.msra.mxu1 %v9255_v56 }
 0x264   :  { %8451 = vmatprep.subr.bf16.mxu1 %v9258_v60  ;;  %v9299_v60 = vld [vmem:[#allocation5 + $0xfa8] sm:$0xff]  }
 0x265   :  { %8430 = vmatpush3.bf16.msra.mxu0 %v9257_v58  ;;  %v9298_v58 = vld [vmem:[#allocation5 + $0xfe8] sm:$0xff]  }
 0x266   :  { %8431 = vmatprep.subr.bf16.mxu0 %v9260_v1  ;;  %v9302_v1 = vld [vmem:[#allocation5 + $0xff0] sm:$0xff]  }
 0x267   :  { %v8129_v59 = vpop.f32.mrb[28].mxu0  ;;  %8452 = vmatpush3.bf16.msra.mxu1 %v9259_v62 }
 0x268   :  { %v8130_v61 = vpop.f32.mrb[29].mxu0  ;;  %8453 = vmatprep.subr.bf16.mxu1 %v9262_v7 }
 0x269   :  { %v8131_v63 = vadd.f32 %v8130_v61, %v8129_v59  ;;  %v8132_v0 = vpop.f32.mrb[30].mxu0  ;;  %v8151_v2 = vpop.f32.mrb[28].mxu1  ;;  %8432 = vmatpush3.bf16.msra.mxu0 %v9261_v4  ;;  %v9305_v4 = vld [vmem:[#allocation5 + $0xf38] sm:$0xff]  }
 0x26a   :  { %v8133_v5 = vpop.f32.mrb[31].mxu0  ;;  %v8152_v6 = vpop.f32.mrb[29].mxu1  ;;  %8433 = vmatprep.subr.bf16.mxu0 %v9264_v12  ;;  %v9301_v0 = vld [vmem:[#allocation5 + $0xf30] sm:$0xff]  }
 0x26b   :  { %v5836_v3 = vadd.f32 %v8131_v63, %v9831_v27  ;;  %v8153_v8 = vadd.f32 %v8152_v6, %v8151_v2  ;;  %v8154_v10 = vpop.f32.mrb[30].mxu1  ;;  %8454 = vmatpush3.bf16.msra.mxu1 %v9263_v9  ;;  %v7165_v27 = vcombine.high %v162_v25, %v162_v25  ;;  %v9300_v63 = vld [vmem:[#allocation5 + $0xf70] sm:$0xff]   ;;  %v9306_v5 = vld [vmem:[#allocation5 + $0xff8] sm:$0xff]   ;;  %v163_v6 = vld [vmem:[#allocation2 + $0xf0] sm:$0xff] }
 0x26c   :  { %v8155_v13 = vpop.f32.mrb[31].mxu1  ;;  %8455 = vmatprep.subr.bf16.mxu1 %v9266_v15  ;;  %v9303_v2 = vld [vmem:[#allocation5 + $0xfb0] sm:$0xff]   ;;  %v7166_v7 = vcombine.low %v163_v6, %v163_v6  ;;  %v9309_v9 = vld [vmem:[#allocation5 + $0xfb8] sm:$0xff]   ;;  %v9310_v10 = vld [vmem:[#allocation5 + $0x1040] sm:$0xff]  }
 0x26d   :  { %v9834_v11 = vadd.f32 %v8153_v8, %v5836_v3  ;;  %8434 = vmatpush3.bf16.msra.mxu0 %v9265_v14  ;;  %6433 = vmatprep.mubr.bf16.mxu1 %v7165_v27  ;;  %v9304_v3 = vld [vmem:[#allocation5 + $0xf78] sm:$0xff]   ;;  %v7167_v8 = vcombine.high %v163_v6, %v163_v6  ;;  %v9313_v14 = vld [vmem:[#allocation5 + $0x1000] sm:$0xff]   ;;  %v9355_v6 = vld [vmem:[#allocation5 + $0x1188] sm:$0xff]  }
 0x26e   :  { %8435 = vmatprep.subr.bf16.mxu0 %v9268_v17  ;;  %v9314_v15 = vld [vmem:[#allocation5 + $0x10c0] sm:$0xff]   ;;  %v9316_v17 = vld [vmem:[#allocation5 + $0x1048] sm:$0xff]   ;;  %v9324_v25 = vld [vmem:[#allocation5 + $0x1058] sm:$0xff]  }
 0x26f   :  { %8456 = vmatpush3.bf16.msra.mxu1 %v9267_v16  ;;  %v9315_v16 = vld [vmem:[#allocation5 + $0x1080] sm:$0xff]   ;;  %v9326_v27 = vld [vmem:[#allocation5 + $0x10d8] sm:$0xff]  }
 0x270   :  { %8457 = vmatprep.subr.bf16.mxu1 %v9270_v19  ;;  %v9318_v19 = vld [vmem:[#allocation5 + $0x10c8] sm:$0xff]  }
 0x271   :  { %8436 = vmatpush3.bf16.msra.mxu0 %v9269_v18  ;;  %v9317_v18 = vld [vmem:[#allocation5 + $0x1008] sm:$0xff]  }
 0x272   :  { %8465 = vmatprep.subr.bf16.mxu0 %v9274_v24  ;;  %v9323_v24 = vld [vmem:[#allocation5 + $0x1090] sm:$0xff]  }
 0x273   :  { %8458 = vmatpush3.bf16.msra.mxu1 %v9273_v23  ;;  %v9322_v23 = vld [vmem:[#allocation5 + $0x10d0] sm:$0xff]  }
 0x274   :  { %6394 = vmatmul.mubr.bf16.vlgmr.msra.gmra.mrb[56].mxu0 %v7162_v21  ;;  %8487 = vmatprep.subr.bf16.mxu1 %v9278_v29  ;;  %v9320_v21 = vld [vmem:[#allocation5 + $0x1050] sm:$0xff]   ;;  %v9328_v29 = vld [vmem:[#allocation5 + $0x1060] sm:$0xff]  }
 0x275   :  { %8466 = vmatpush3.bf16.msra.mxu0 %v9277_v28  ;;  %6473 = vmatprep.mubr.bf16.mxu0 %v7167_v8  ;;  %v9327_v28 = vld [vmem:[#allocation5 + $0x1098] sm:$0xff]   ;;  %v9357_v8 = vld [vmem:[#allocation5 + $0x1110] sm:$0xff]  }
 0x276   :  { %6434 = vmatmul.mubr.bf16.vlgmr.msra.gmra.mrb[56].mxu1 %v7164_v26  ;;  %8467 = vmatprep.subr.bf16.mxu0 %v9280_v31  ;;  %v9325_v26 = vld [vmem:[#allocation5 + $0x1018] sm:$0xff]  }
 0x277   :  { %8488 = vmatpush3.bf16.msra.mxu1 %v9279_v30  ;;  %v9329_v30 = vld [vmem:[#allocation5 + $0x1020] sm:$0xff]  }
 0x278   :  { %8489 = vmatprep.subr.bf16.mxu1 %v9282_v33 }
 0x279   :  { %8468 = vmatpush3.bf16.msra.mxu0 %v9281_v32  ;;  %v9330_v32 = vld [vmem:[#allocation5 + $0x10e0] sm:$0xff]  }
 0x27a   :  { %8469 = vmatprep.subr.bf16.mxu0 %v9284_v35 }
 0x27b   :  { %8490 = vmatpush3.bf16.msra.mxu1 %v9283_v34  ;;  %v9331_v34 = vld [vmem:[#allocation5 + $0x10a0] sm:$0xff]  }
 0x27c   :  { %8491 = vmatprep.subr.bf16.mxu1 %v9286_v37  ;;  %v9332_v37 = vld [vmem:[#allocation5 + $0x1068] sm:$0xff]  }
 0x27d   :  { %8470 = vmatpush3.bf16.msra.mxu0 %v9285_v36 }
 0x27e   :  { %8471 = vmatprep.subr.bf16.mxu0 %v9288_v39 }
 0x27f   :  { %8492 = vmatpush3.bf16.msra.mxu1 %v9287_v38 }
 0x280   :  { %8493 = vmatprep.subr.bf16.mxu1 %v9290_v41 }
 0x281   :  { %8472 = vmatpush3.bf16.msra.mxu0 %v9289_v40  ;;  %v9333_v40 = vld [vmem:[#allocation5 + $0x1028] sm:$0xff]  }
 0x282   :  { %8473 = vmatprep.subr.bf16.mxu0 %v9292_v43  ;;  %v9334_v43 = vld [vmem:[#allocation5 + $0x10e8] sm:$0xff]  }
 0x283   :  { %8494 = vmatpush3.bf16.msra.mxu1 %v9291_v42 }
 0x284   :  { %8495 = vmatprep.subr.bf16.mxu1 %v9294_v47  ;;  %v9336_v47 = vld [vmem:[#allocation5 + $0x1070] sm:$0xff]  }
 0x285   :  { %8474 = vmatpush3.bf16.msra.mxu0 %v9293_v45  ;;  %v9335_v45 = vld [vmem:[#allocation5 + $0x10a8] sm:$0xff]  }
 0x286   :  { %8475 = vmatprep.subr.bf16.mxu0 %v9296_v53  ;;  %v9340_v53 = vld [vmem:[#allocation5 + $0x1078] sm:$0xff]  }
 0x287   :  { %v8173_v44 = vpop.f32.mrb[32].mxu0  ;;  %8496 = vmatpush3.bf16.msra.mxu1 %v9295_v50  ;;  %v9337_v50 = vld [vmem:[#allocation5 + $0x1030] sm:$0xff]  }
 0x288   :  { %v8174_v46 = vpop.f32.mrb[33].mxu0  ;;  %8497 = vmatprep.subr.bf16.mxu1 %v9298_v58 }
 0x289   :  { %v8175_v48 = vadd.f32 %v8174_v46, %v8173_v44  ;;  %v8176_v49 = vpop.f32.mrb[34].mxu0  ;;  %v8195_v51 = vpop.f32.mrb[32].mxu1  ;;  %8476 = vmatpush3.bf16.msra.mxu0 %v9297_v55  ;;  %v9342_v55 = vld [vmem:[#allocation5 + $0x10f8] sm:$0xff]  }
 0x28a   :  { %v8177_v54 = vpop.f32.mrb[35].mxu0  ;;  %v8196_v56 = vpop.f32.mrb[33].mxu1  ;;  %8477 = vmatprep.subr.bf16.mxu0 %v9300_v63 }
 0x28b   :  { %v5916_v52 = vadd.f32 %v8175_v48, %v9834_v11  ;;  %v8197_v57 = vadd.f32 %v8196_v56, %v8195_v51  ;;  %v8198_v59 = vpop.f32.mrb[34].mxu1  ;;  %8498 = vmatpush3.bf16.msra.mxu1 %v9299_v60  ;;  %v164_v11 = vld [vmem:[#allocation2 + $0xf8] sm:$0xff]  ;;  %v9341_v54 = vld [vmem:[#allocation5 + $0x1038] sm:$0xff]   ;;  %v9346_v60 = vld [vmem:[#allocation5 + $0x1140] sm:$0xff]  }
 0x28c   :  { %v8199_v61 = vpop.f32.mrb[35].mxu1  ;;  %8499 = vmatprep.subr.bf16.mxu1 %v9302_v1  ;;  %v7168_v12 = vcombine.low %v164_v11, %v164_v11  ;;  %v7169_v13 = vcombine.high %v164_v11, %v164_v11  ;;  %v9338_v51 = vld [vmem:[#allocation5 + $0x10f0] sm:$0xff]   ;;  %v9345_v59 = vld [vmem:[#allocation5 + $0x10b8] sm:$0xff]   ;;  %v9350_v1 = vld [vmem:[#allocation5 + $0x11c0] sm:$0xff]  }
 0x28d   :  { %v9837_v62 = vadd.f32 %v8197_v57, %v5916_v52  ;;  %8478 = vmatpush3.bf16.msra.mxu0 %v9301_v0  ;;  %v9339_v52 = vld [vmem:[#allocation5 + $0x10b0] sm:$0xff]   ;;  %v166_v61 = vld [vmem:[#allocation2 + $0x108] sm:$0xff] }
 0x28e   :  { %8479 = vmatprep.subr.bf16.mxu0 %v9304_v3  ;;  %6513 = vmatprep.mubr.bf16.mxu1 %v7169_v13  ;;  %v165_v56 = vld [vmem:[#allocation2 + $0x100] sm:$0xff]  ;;  %v7173_v63 = vcombine.high %v166_v61, %v166_v61  ;;  %v9349_v0 = vld [vmem:[#allocation5 + $0x1100] sm:$0xff]   ;;  %v9352_v3 = vld [vmem:[#allocation5 + $0x1148] sm:$0xff]  }
 0x28f   :  { %8500 = vmatpush3.bf16.msra.mxu1 %v9303_v2  ;;  %v7170_v57 = vcombine.low %v165_v56, %v165_v56  ;;  %v7171_v58 = vcombine.high %v165_v56, %v165_v56  ;;  %v9351_v2 = vld [vmem:[#allocation5 + $0x1180] sm:$0xff]   ;;  %v9360_v11 = vld [vmem:[#allocation5 + $0x1158] sm:$0xff]   ;;  %v9390_v56 = vld [vmem:[#allocation5 + $0x1250] sm:$0xff]  }
 0x290   :  { %8501 = vmatprep.subr.bf16.mxu1 %v9306_v5  ;;  %v9354_v5 = vld [vmem:[#allocation5 + $0x11c8] sm:$0xff]   ;;  %v9362_v13 = vld [vmem:[#allocation5 + $0x11d8] sm:$0xff]  }
 0x291   :  { %8480 = vmatpush3.bf16.msra.mxu0 %v9305_v4  ;;  %v9353_v4 = vld [vmem:[#allocation5 + $0x1108] sm:$0xff]  }
 0x292   :  { %8509 = vmatprep.subr.bf16.mxu0 %v9310_v10  ;;  %v9359_v10 = vld [vmem:[#allocation5 + $0x1190] sm:$0xff]  }
 0x293   :  { %8502 = vmatpush3.bf16.msra.mxu1 %v9309_v9  ;;  %v9358_v9 = vld [vmem:[#allocation5 + $0x11d0] sm:$0xff]  }
 0x294   :  { %6474 = vmatmul.mubr.bf16.vlgmr.msra.gmra.mrb[60].mxu0 %v7166_v7  ;;  %8531 = vmatprep.subr.bf16.mxu1 %v9314_v15  ;;  %v9356_v7 = vld [vmem:[#allocation5 + $0x1150] sm:$0xff]   ;;  %v9364_v15 = vld [vmem:[#allocation5 + $0x1160] sm:$0xff]  }
 0x295   :  { %8510 = vmatpush3.bf16.msra.mxu0 %v9313_v14  ;;  %6553 = vmatprep.mubr.bf16.mxu0 %v7171_v58  ;;  %v9363_v14 = vld [vmem:[#allocation5 + $0x1198] sm:$0xff]   ;;  %v9392_v58 = vld [vmem:[#allocation5 + $0x1290] sm:$0xff]  }
 0x296   :  { %6514 = vmatmul.mubr.bf16.vlgmr.msra.gmra.mrb[60].mxu1 %v7168_v12  ;;  %8511 = vmatprep.subr.bf16.mxu0 %v9316_v17  ;;  %v9361_v12 = vld [vmem:[#allocation5 + $0x1118] sm:$0xff]  }
 0x297   :  { %8532 = vmatpush3.bf16.msra.mxu1 %v9315_v16  ;;  %6593 = vmatprep.mubr.bf16.mxu1 %v7173_v63  ;;  %v9365_v16 = vld [vmem:[#allocation5 + $0x1120] sm:$0xff]  }
 0x298   :  { %8533 = vmatprep.subr.bf16.mxu1 %v9318_v19  ;;  %v9397_v63 = vld [vmem:[#allocation5 + $0x1220] sm:$0xff]  }
 0x299   :  { %8512 = vmatpush3.bf16.msra.mxu0 %v9317_v18  ;;  %v9366_v18 = vld [vmem:[#allocation5 + $0x11e0] sm:$0xff]  }
 0x29a   :  { %8513 = vmatprep.subr.bf16.mxu0 %v9320_v21 }
 0x29b   :  { %8534 = vmatpush3.bf16.msra.mxu1 %v9319_v20  ;;  %v9367_v20 = vld [vmem:[#allocation5 + $0x11a0] sm:$0xff]  }
 0x29c   :  { %8535 = vmatprep.subr.bf16.mxu1 %v9322_v23  ;;  %v9368_v23 = vld [vmem:[#allocation5 + $0x1168] sm:$0xff]  }
 0x29d   :  { %8514 = vmatpush3.bf16.msra.mxu0 %v9321_v22 }
 0x29e   :  { %8515 = vmatprep.subr.bf16.mxu0 %v9324_v25 }
 0x29f   :  { %8536 = vmatpush3.bf16.msra.mxu1 %v9323_v24 }
 0x2a0   :  { %8537 = vmatprep.subr.bf16.mxu1 %v9326_v27 }
 0x2a1   :  { %8516 = vmatpush3.bf16.msra.mxu0 %v9325_v26  ;;  %v9369_v26 = vld [vmem:[#allocation5 + $0x1128] sm:$0xff]  }
 0x2a2   :  { %8517 = vmatprep.subr.bf16.mxu0 %v9328_v29  ;;  %v9370_v29 = vld [vmem:[#allocation5 + $0x11e8] sm:$0xff]  }
 0x2a3   :  { %8538 = vmatpush3.bf16.msra.mxu1 %v9327_v28 }
 0x2a4   :  { %8539 = vmatprep.subr.bf16.mxu1 %v9330_v32 }
 0x2a5   :  { %8518 = vmatpush3.bf16.msra.mxu0 %v9329_v30 }
 0x2a6   :  { %8519 = vmatprep.subr.bf16.mxu0 %v9332_v37  ;;  %v9374_v37 = vld [vmem:[#allocation5 + $0x11f0] sm:$0xff]  }
 0x2a7   :  { %v8217_v31 = vpop.f32.mrb[36].mxu0  ;;  %8540 = vmatpush3.bf16.msra.mxu1 %v9331_v34  ;;  %v9372_v34 = vld [vmem:[#allocation5 + $0x1170] sm:$0xff]  }
 0x2a8   :  { %v8218_v33 = vpop.f32.mrb[37].mxu0  ;;  %8541 = vmatprep.subr.bf16.mxu1 %v9334_v43 }
 0x2a9   :  { %v8219_v35 = vadd.f32 %v8218_v33, %v8217_v31  ;;  %v8220_v36 = vpop.f32.mrb[38].mxu0  ;;  %v8239_v38 = vpop.f32.mrb[36].mxu1  ;;  %8520 = vmatpush3.bf16.msra.mxu0 %v9333_v40  ;;  %v9371_v31 = vld [vmem:[#allocation5 + $0x11a8] sm:$0xff]   ;;  %v9377_v40 = vld [vmem:[#allocation5 + $0x1138] sm:$0xff]  }
 0x2aa   :  { %v8221_v41 = vpop.f32.mrb[39].mxu0  ;;  %v8240_v42 = vpop.f32.mrb[37].mxu1  ;;  %8521 = vmatprep.subr.bf16.mxu0 %v9336_v47  ;;  %v9373_v36 = vld [vmem:[#allocation5 + $0x1130] sm:$0xff]  }
 0x2ab   :  { %v5996_v39 = vadd.f32 %v8219_v35, %v9837_v62  ;;  %v8241_v44 = vadd.f32 %v8240_v42, %v8239_v38  ;;  %v8242_v46 = vpop.f32.mrb[38].mxu1  ;;  %8542 = vmatpush3.bf16.msra.mxu1 %v9335_v45  ;;  %v7172_v62 = vcombine.low %v166_v61, %v166_v61  ;;  %v9375_v38 = vld [vmem:[#allocation5 + $0x11b0] sm:$0xff]   ;;  %v9378_v41 = vld [vmem:[#allocation5 + $0x11f8] sm:$0xff]   ;;  %v167_v42 = vld [vmem:[#allocation2 + $0x110] sm:$0xff] }
 0x2ac   :  { %v8243_v48 = vpop.f32.mrb[39].mxu1  ;;  %8543 = vmatprep.subr.bf16.mxu1 %v9338_v51  ;;  %v7174_v43 = vcombine.low %v167_v42, %v167_v42  ;;  %v9381_v45 = vld [vmem:[#allocation5 + $0x11b8] sm:$0xff]   ;;  %v9382_v46 = vld [vmem:[#allocation5 + $0x1240] sm:$0xff]   ;;  %v168_v47 = vld [vmem:[#allocation2 + $0x118] sm:$0xff]  ;;  %v9655_v51 = vmov 0.0  }
 0x2ad   :  { %v9840_v49 = vadd.f32 %v8241_v44, %v5996_v39  ;;  %8522 = vmatpush3.bf16.msra.mxu0 %v9337_v50  ;;  %v9376_v39 = vld [vmem:[#allocation5 + $0x1178] sm:$0xff]   ;;  %v7175_v44 = vcombine.high %v167_v42, %v167_v42  ;;  %v7176_v48 = vcombine.low %v168_v47, %v168_v47  ;;  %v9385_v50 = vld [vmem:[#allocation5 + $0x1200] sm:$0xff]  }
 0x2ae   :  { %8523 = vmatprep.subr.bf16.mxu0 %v9340_v53  ;;  %v9387_v53 = vld [vmem:[#allocation5 + $0x1248] sm:$0xff]   ;;  %v9396_v61 = vld [vmem:[#allocation5 + $0x1260] sm:$0xff]  }
 0x2af   :  { %8544 = vmatpush3.bf16.msra.mxu1 %v9339_v52  ;;  %v9386_v52 = vld [vmem:[#allocation5 + $0x1280] sm:$0xff]  }
 0x2b0   :  { %8545 = vmatprep.subr.bf16.mxu1 %v9342_v55  ;;  %v9389_v55 = vld [vmem:[#allocation5 + $0x1288] sm:$0xff]  }
 0x2b1   :  { %8524 = vmatpush3.bf16.msra.mxu0 %v9341_v54  ;;  %v9388_v54 = vld [vmem:[#allocation5 + $0x1208] sm:$0xff]  }
 0x2b2   :  { %8553 = vmatprep.subr.bf16.mxu0 %v9346_v60  ;;  %v9394_v60 = vld [vmem:[#allocation5 + $0x1218] sm:$0xff]  }
 0x2b3   :  { %8546 = vmatpush3.bf16.msra.mxu1 %v9345_v59  ;;  %v9393_v59 = vld [vmem:[#allocation5 + $0x1258] sm:$0xff]  }
 0x2b4   :  { %6554 = vmatmul.mubr.bf16.vlgmr.msra.gmra.mrb[64].mxu0 %v7170_v57  ;;  %8575 = vmatprep.subr.bf16.mxu1 %v9350_v1  ;;  %v9391_v57 = vld [vmem:[#allocation5 + $0x1210] sm:$0xff]   ;;  %v9399_v1 = vld [vmem:[#allocation5 + $0x1268] sm:$0xff]  }
 0x2b5   :  { %8554 = vmatpush3.bf16.msra.mxu0 %v9349_v0  ;;  %6633 = vmatprep.mubr.bf16.mxu0 %v7175_v44 }
 0x2b6   :  { %6594 = vmatmul.mubr.bf16.vlgmr.msra.gmra.mrb[64].mxu1 %v7172_v62  ;;  %8555 = vmatprep.subr.bf16.mxu0 %v9352_v3  ;;  %v9395_v62 = vld [vmem:[#allocation5 + $0x1298] sm:$0xff]  }
 0x2b7   :  { %8576 = vmatpush3.bf16.msra.mxu1 %v9351_v2  ;;  %v9398_v2 = vld [vmem:[#allocation5 + $0x12a0] sm:$0xff]  }
 0x2b8   :  { %8577 = vmatprep.subr.bf16.mxu1 %v9354_v5 }
 0x2b9   :  { %8556 = vmatpush3.bf16.msra.mxu0 %v9353_v4 }
 0x2ba   :  { %8557 = vmatprep.subr.bf16.mxu0 %v9356_v7  ;;  %v9400_v7 = vld [vmem:[#allocation5 + $0x1228] sm:$0xff]  }
 0x2bb   :  { %8578 = vmatpush3.bf16.msra.mxu1 %v9355_v6 }
 0x2bc   :  { %8579 = vmatprep.subr.bf16.mxu1 %v9358_v9  ;;  %v9401_v9 = vld [vmem:[#allocation5 + $0x12a8] sm:$0xff]  }
 0x2bd   :  { %8558 = vmatpush3.bf16.msra.mxu0 %v9357_v8 }
 0x2be   :  { %8559 = vmatprep.subr.bf16.mxu0 %v9360_v11 }
 0x2bf   :  { %8580 = vmatpush3.bf16.msra.mxu1 %v9359_v10 }
 0x2c0   :  { %8581 = vmatprep.subr.bf16.mxu1 %v9362_v13 }
 0x2c1   :  { %8560 = vmatpush3.bf16.msra.mxu0 %v9361_v12  ;;  %v9402_v12 = vld [vmem:[#allocation5 + $0x1270] sm:$0xff]  }
 0x2c2   :  { %8561 = vmatprep.subr.bf16.mxu0 %v9364_v15  ;;  %v9403_v15 = vld [vmem:[#allocation5 + $0x1230] sm:$0xff]  }
 0x2c3   :  { %8582 = vmatpush3.bf16.msra.mxu1 %v9363_v14 }
 0x2c4   :  { %8583 = vmatprep.subr.bf16.mxu1 %v9366_v18 }
 0x2c5   :  { %8562 = vmatpush3.bf16.msra.mxu0 %v9365_v16 }
 0x2c6   :  { %8563 = vmatprep.subr.bf16.mxu0 %v9368_v23  ;;  %v9409_v23 = vld [vmem:[#allocation5 + $0x12b8] sm:$0xff]  }
 0x2c7   :  { %v8261_v17 = vpop.f32.mrb[40].mxu0  ;;  %8584 = vmatpush3.bf16.msra.mxu1 %v9367_v20 }
 0x2c8   :  { %v8262_v19 = vpop.f32.mrb[41].mxu0  ;;  %8585 = vmatprep.subr.bf16.mxu1 %v9370_v29 }
 0x2c9   :  { %v8263_v21 = vadd.f32 %v8262_v19, %v8261_v17  ;;  %v8264_v22 = vpop.f32.mrb[42].mxu0  ;;  %v8283_v24 = vpop.f32.mrb[40].mxu1  ;;  %8564 = vmatpush3.bf16.msra.mxu0 %v9369_v26  ;;  %v169_v17 = vld [vmem:[#allocation2 + $0x120] sm:$0xff] }
 0x2ca   :  { %v8265_v27 = vpop.f32.mrb[43].mxu0  ;;  %v8284_v28 = vpop.f32.mrb[41].mxu1  ;;  %8565 = vmatprep.subr.bf16.mxu0 %v9372_v34  ;;  %v9404_v19 = vld [vmem:[#allocation5 + $0x12b0] sm:$0xff]   ;;  %v7179_v20 = vcombine.high %v169_v17, %v169_v17  ;;  %v9406_v22 = vld [vmem:[#allocation5 + $0x1238] sm:$0xff]  }
 0x2cb   :  { %v6076_v25 = vadd.f32 %v8263_v21, %v9840_v49  ;;  %v8285_v30 = vadd.f32 %v8284_v28, %v8283_v24  ;;  %v8286_v32 = vpop.f32.mrb[42].mxu1  ;;  %8586 = vmatpush3.bf16.msra.mxu1 %v9371_v31  ;;  %v7177_v49 = vcombine.high %v168_v47, %v168_v47  ;;  %v9405_v21 = vld [vmem:[#allocation5 + $0x1278] sm:$0xff]   ;;  %v7178_v24 = vcombine.low %v169_v17, %v169_v17 }
 0x2cc   :  { %v8287_v35 = vpop.f32.mrb[43].mxu1  ;;  %8587 = vmatprep.subr.bf16.mxu1 %v9374_v37 }
 0x2cd   :  { %v9843_v33 = vadd.f32 %v8285_v30, %v6076_v25  ;;  %8566 = vmatpush3.bf16.msra.mxu0 %v9373_v36  ;;  %6673 = vmatprep.mubr.bf16.mxu1 %v7177_v49  ;;  %v9410_v25 = vld [vmem:[#allocation2 + $0x128] ss:$0 sps:$4 sm:$0xff]  }
 0x2ce   :  { %8567 = vmatprep.subr.bf16.mxu0 %v9376_v39 }
 0x2cf   :  { %8588 = vmatpush3.bf16.msra.mxu1 %v9375_v38 }
 0x2d0   :  { %8589 = vmatprep.subr.bf16.mxu1 %v9378_v41 }
 0x2d1   :  { %8568 = vmatpush3.bf16.msra.mxu0 %v9377_v40 }
 0x2d2   :  { %8597 = vmatprep.subr.bf16.mxu0 %v9382_v46 }
 0x2d3   :  { %8590 = vmatpush3.bf16.msra.mxu1 %v9381_v45 }
 0x2d4   :  { %6634 = vmatmul.mubr.bf16.vlgmr.msra.gmra.mrb[68].mxu0 %v7174_v43  ;;  %8651 = vmatprep.subr.bf16.mxu1 %v9655_v51 }
 0x2d5   :  { %8598 = vmatpush3.bf16.msra.mxu0 %v9385_v50  ;;  %6713 = vmatprep.mubr.bf16.mxu0 %v7179_v20  ;;  %v9411_v50 = vld [vmem:[#allocation8] sm:$0xff]  }
 0x2d6   :  { %6674 = vmatmul.mubr.bf16.vlgmr.msra.gmra.mrb[68].mxu1 %v7176_v48  ;;  %8599 = vmatprep.subr.bf16.mxu0 %v9387_v53  ;;  %v9413_v53 = vld [vmem:[#allocation8 + $0x10] sm:$0xff]  }
 0x2d7   :  { %8652 = vmatpush3.bf16.msra.mxu1 %v9386_v52  ;;  %8667 = vmatprep.mubr.msk.bf16.mxu1 %vm9656_vm0, %v9655_v51  ;;  %v9412_v52 = vld [vmem:[#allocation8 + $0x8] sm:$0xff]  }
 0x2d8   :  { %8653 = vmatprep.subr.bf16.mxu1 %v9655_v51 }
 0x2d9   :  { %8600 = vmatpush3.bf16.msra.mxu0 %v9388_v54  ;;  %v9414_v54 = vld [vmem:[#allocation8 + $0x18] sm:$0xff]  }
 0x2da   :  { %8601 = vmatprep.subr.bf16.mxu0 %v9390_v56 }
 0x2db   :  { %8654 = vmatpush3.bf16.msra.mxu1 %v9389_v55  ;;  %v9415_v55 = vld [vmem:[#allocation8 + $0x20] sm:$0xff]  }
 0x2dc   :  { %8655 = vmatprep.subr.bf16.mxu1 %v9655_v51 }
 0x2dd   :  { %8602 = vmatpush3.bf16.msra.mxu0 %v9391_v57 }
 0x2de   :  { %8603 = vmatprep.subr.bf16.mxu0 %v9393_v59 }
 0x2df   :  { %8656 = vmatpush3.bf16.msra.mxu1 %v9392_v58 }
 0x2e0   :  { %8657 = vmatprep.subr.bf16.mxu1 %v9655_v51 }
 0x2e1   :  { %8604 = vmatpush3.bf16.msra.mxu0 %v9394_v60  ;;  %v9416_v60 = vld [vmem:[#allocation8 + $0x28] sm:$0xff]  }
 0x2e2   :  { %8605 = vmatprep.subr.bf16.mxu0 %v9396_v61 }
 0x2e3   :  { %8658 = vmatpush3.bf16.msra.mxu1 %v9395_v62 }
 0x2e4   :  { %8659 = vmatprep.subr.bf16.mxu1 %v9655_v51 }
 0x2e5   :  { %8606 = vmatpush3.bf16.msra.mxu0 %v9397_v63 }
 0x2e6   :  { %8607 = vmatprep.subr.bf16.mxu0 %v9399_v1 }
 0x2e7   :  { %v8305_v0 = vpop.f32.mrb[44].mxu0  ;;  %8660 = vmatpush3.bf16.msra.mxu1 %v9398_v2 }
 0x2e8   :  { %v8306_v3 = vpop.f32.mrb[45].mxu0  ;;  %8661 = vmatprep.subr.bf16.mxu1 %v9655_v51 }
 0x2e9   :  { %v8307_v4 = vadd.f32 %v8306_v3, %v8305_v0  ;;  %v8308_v5 = vpop.f32.mrb[46].mxu0  ;;  %v8327_v6 = vpop.f32.mrb[44].mxu1  ;;  %8608 = vmatpush3.bf16.msra.mxu0 %v9400_v7  ;;  %v9419_v7 = vld [vmem:[%s9923_s5] sm:$0xff]  }
 0x2ea   :  { %v8309_v8 = vpop.f32.mrb[47].mxu0  ;;  %v8328_v11 = vpop.f32.mrb[45].mxu1  ;;  %8609 = vmatprep.subr.bf16.mxu0 %v9402_v12 }
 0x2eb   :  { %v6156_v10 = vadd.f32 %v8307_v4, %v9843_v33  ;;  %v8329_v13 = vadd.f32 %v8328_v11, %v8327_v6  ;;  %v8330_v14 = vpop.f32.mrb[46].mxu1  ;;  %8662 = vmatpush3.bf16.msra.mxu1 %v9401_v9  ;;  %v9417_v4 = vld [vmem:[#allocation8 + $0x30] sm:$0xff]   ;;  %v9418_v6 = vld [vmem:[#allocation8 + $0x38] sm:$0xff]   ;;  %v9421_v9 = vld [vmem:[%s9923_s5 + $0x10] sm:$0xff]  }
 0x2ec   :  { %v8331_v16 = vpop.f32.mrb[47].mxu1  ;;  %8663 = vmatprep.subr.bf16.mxu1 %v9655_v51  ;;  %v9420_v8 = vld [vmem:[%s9923_s5 + $0x8] sm:$0xff]   ;;  %v9423_v11 = vld [vmem:[%s9923_s5 + $0x20] sm:$0xff]  }
 0x2ed   :  { %v6196_v18 = vadd.f32 %v8329_v13, %v6156_v10  ;;  %8610 = vmatpush3.bf16.msra.mxu0 %v9403_v15  ;;  %v9422_v10 = vld [vmem:[%s9923_s5 + $0x18] sm:$0xff]   ;;  %v9424_v13 = vld [vmem:[%s9923_s5 + $0x28] sm:$0xff]  }
 0x2ee   :  { %8611 = vmatprep.subr.bf16.mxu0 %v9405_v21 }
 0x2ef   :  { %8664 = vmatpush3.bf16.msra.mxu1 %v9404_v19 }
 0x2f0   :  { %8665 = vmatprep.subr.bf16.mxu1 %v9655_v51 }
 0x2f1   :  { %8612 = vmatpush3.bf16.msra.mxu0 %v9406_v22 }
 0x2f2   :  { %8671 = vmatprep.subr.bf16.mxu0 %v9655_v51 }
 0x2f3   :  { %8666 = vmatpush3.bf16.msra.mxu1 %v9409_v23 }
 0x2f4   :  { %6714 = vmatmul.mubr.bf16.vlgmr.msra.gmra.mrb[72].mxu0 %v7178_v24  ;;  %8691 = vmatprep.subr.bf16.mxu1 %v9655_v51 }
 0x2f5   :  { %8687 = vmatprep.mubr.msk.bf16.mxu0 %vm9656_vm0, %v9655_v51  ;;  %8672 = vmatpush3.bf16.msra.mxu0 %v9411_v50 }
 0x2f6   :  { %8668 = vmatmul.mubr.bf16.vlgmr.msra.gmra.mrb[72].mxu1 %v9410_v25  ;;  %8673 = vmatprep.subr.bf16.mxu0 %v9655_v51 }
 0x2f7   :  { %8707 = vmatprep.mubr.msk.bf16.mxu1 %vm9656_vm0, %v9655_v51  ;;  %8692 = vmatpush3.bf16.msra.mxu1 %v9419_v7 }
 0x2f8   :  { %8693 = vmatprep.subr.bf16.mxu1 %v9655_v51 }
 0x2f9   :  { %8674 = vmatpush3.bf16.msra.mxu0 %v9412_v52 }
 0x2fa   :  { %8675 = vmatprep.subr.bf16.mxu0 %v9655_v51 }
 0x2fb   :  { %8694 = vmatpush3.bf16.msra.mxu1 %v9420_v8 }
 0x2fc   :  { %8695 = vmatprep.subr.bf16.mxu1 %v9655_v51 }
 0x2fd   :  { %8676 = vmatpush3.bf16.msra.mxu0 %v9413_v53 }
 0x2fe   :  { %8677 = vmatprep.subr.bf16.mxu0 %v9655_v51 }
 0x2ff   :  { %8696 = vmatpush3.bf16.msra.mxu1 %v9421_v9 }
 0x300   :  { %8697 = vmatprep.subr.bf16.mxu1 %v9655_v51 }
 0x301   :  { %8678 = vmatpush3.bf16.msra.mxu0 %v9414_v54 }
 0x302   :  { %8679 = vmatprep.subr.bf16.mxu0 %v9655_v51 }
 0x303   :  { %8698 = vmatpush3.bf16.msra.mxu1 %v9422_v10 }
 0x304   :  { %8699 = vmatprep.subr.bf16.mxu1 %v9655_v51 }
 0x305   :  { %8680 = vmatpush3.bf16.msra.mxu0 %v9415_v55 }
 0x306   :  { %8681 = vmatprep.subr.bf16.mxu0 %v9655_v51 }
 0x307   :  { %v8349_v26 = vpop.f32.mrb[48].mxu0  ;;  %8700 = vmatpush3.bf16.msra.mxu1 %v9423_v11  ;;  %v9429_v11 = vld [vmem:[#allocation13 + $0x10] sm:$0xff]  }
 0x308   :  { %v8350_v27 = vpop.f32.mrb[49].mxu0  ;;  %8701 = vmatprep.subr.bf16.mxu1 %v9655_v51 }
 0x309   :  { %v8351_v28 = vadd.f32 %v8350_v27, %v8349_v26  ;;  %v8352_v29 = vpop.f32.mrb[50].mxu0  ;;  %v8371_v30 = vpop.f32.mrb[48].mxu1  ;;  %8682 = vmatpush3.bf16.msra.mxu0 %v9416_v60 }
 0x30a   :  { %v8353_v31 = vpop.f32.mrb[51].mxu0  ;;  %v8372_v32 = vpop.f32.mrb[49].mxu1  ;;  %8683 = vmatprep.subr.bf16.mxu0 %v9655_v51 }
 0x30b   :  { %v6236_v33 = vadd.f32 %v8351_v28, %v6196_v18  ;;  %v8373_v34 = vadd.f32 %v8372_v32, %v8371_v30  ;;  %v8374_v35 = vpop.f32.mrb[50].mxu1  ;;  %8702 = vmatpush3.bf16.msra.mxu1 %v9424_v13  ;;  %v7790_v13 = vld [vmem:[#allocation11] ss:$0 sm:$0xff] }
 0x30c   :  { %v8375_v36 = vpop.f32.mrb[51].mxu1  ;;  %8703 = vmatprep.subr.bf16.mxu1 %v9655_v51 }
 0x30d   :  { %v6276_v37 = vadd.f32 %v8373_v34, %v6236_v33  ;;  %8684 = vmatpush3.bf16.msra.mxu0 %v9417_v4 }
 0x30e   :  { %8685 = vmatprep.subr.bf16.mxu0 %v9655_v51 }
 0x311   :  { %8686 = vmatpush3.bf16.msra.mxu0 %v9418_v6 }
 0x312   :  { %8711 = vmatprep.subr.bf16.mxu0 %v9655_v51 }
 0x327   :  { %v8393_v38 = vpop.f32.mrb[52].mxu0 }
 0x328   :  { %v8394_v39 = vpop.f32.mrb[53].mxu0 }
 0x329   :  { %v8395_v40 = vadd.f32 %v8394_v39, %v8393_v38  ;;  %v8396_v41 = vpop.f32.mrb[54].mxu0  ;;  %v8415_v42 = vpop.f32.mrb[52].mxu1 }
 0x32a   :  { %v8397_v43 = vpop.f32.mrb[55].mxu0  ;;  %v8416_v44 = vpop.f32.mrb[53].mxu1 }
 0x32b   :  { %v6316_v45 = vadd.f32 %v8395_v40, %v6276_v37  ;;  %v8417_v46 = vadd.f32 %v8416_v44, %v8415_v42  ;;  %v8418_v47 = vpop.f32.mrb[54].mxu1 }
 0x32c   :  { %v8419_v48 = vpop.f32.mrb[55].mxu1 }
 0x32d   :  { %v6356_v49 = vadd.f32 %v8417_v46, %v6316_v45 }
 0x347   :  { %v8437_v56 = vpop.f32.mrb[56].mxu0 }
 0x348   :  { %v8438_v57 = vpop.f32.mrb[57].mxu0 }
 0x349   :  { %v8439_v58 = vadd.f32 %v8438_v57, %v8437_v56  ;;  %v8440_v59 = vpop.f32.mrb[58].mxu0  ;;  %v8459_v61 = vpop.f32.mrb[56].mxu1 }
 0x34a   :  { %v8441_v62 = vpop.f32.mrb[59].mxu0  ;;  %v8460_v0 = vpop.f32.mrb[57].mxu1 }
 0x34b   :  { %v6396_v63 = vadd.f32 %v8439_v58, %v6356_v49  ;;  %v8461_v1 = vadd.f32 %v8460_v0, %v8459_v61  ;;  %v8462_v2 = vpop.f32.mrb[58].mxu1  ;;  %v9426_v0 = vld [vmem:[%s9923_s5 + $0x38] sm:$0xff]  }
 0x34c   :  { %v8463_v3 = vpop.f32.mrb[59].mxu1  ;;  %v9428_v2 = vld [vmem:[#allocation13 + $0x8] sm:$0xff]  }
 0x34d   :  { %v6436_v5 = vadd.f32 %v8461_v1, %v6396_v63  ;;  %v9425_v63 = vld [vmem:[%s9923_s5 + $0x30] sm:$0xff]   ;;  %v7781_v3 = vld [vmem:[#allocation10] ss:$0 sm:$0xff]  ;;  %s9657_s5 = smov [#allocation16]  }
 0x34e   :  { %8704 = vmatpush3.bf16.msra.mxu1 %v9425_v63  ;;  %v9427_v1 = vld [vmem:[#allocation13] sm:$0xff]   ;;  %s7092_s30 = sshll.u32 %s9657_s5, 4  ;;  %s7093_s30 = int_to_ptr.vmem [resolvable:$true] %s7092_s30 }
 0x34f   :  { %8705 = vmatprep.subr.bf16.mxu1 %v9655_v51  ;;  %s9611_s12 = scalar_lea.vmem %s7093_s30, 128  ;;  %p9616_p9 = scmp.lt.s32.totalorder %s7093_s30, %s7093_s30 }
 0x350   :  { %p9612_p8 = scmp.ne.s32.totalorder %s7093_s30, %s9611_s12  ;;  %p9617_p10 = scmp.lt.s32.totalorder %s9611_s12, %s9611_s12 }
 0x352   :  { %8706 = vmatpush3.bf16.msra.mxu1 %v9426_v0  ;;  %p9618_p11 = por %p9617_p10, %p9616_p9 }
 0x354   :  { %p9619_p12 = pnand %p9618_p11, %p9612_p8 }
 0x367   :  { %v8481_v12 = vpop.f32.mrb[60].mxu0 }
 0x368   :  { %v8482_v14 = vpop.f32.mrb[61].mxu0 }
 0x369   :  { %v8483_v15 = vadd.f32 %v8482_v14, %v8481_v12  ;;  %v8484_v16 = vpop.f32.mrb[62].mxu0  ;;  %v8503_v17 = vpop.f32.mrb[60].mxu1  ;;  %v9430_v12 = vld [vmem:[#allocation13 + $0x18] sm:$0xff]  }
 0x36a   :  { %v8485_v18 = vpop.f32.mrb[63].mxu0  ;;  %v8504_v19 = vpop.f32.mrb[61].mxu1 }
 0x36b   :  { %v6476_v20 = vadd.f32 %v8483_v15, %v6436_v5  ;;  %v8505_v21 = vadd.f32 %v8504_v19, %v8503_v17  ;;  %v8506_v22 = vpop.f32.mrb[62].mxu1 }
 0x36c   :  { %v8507_v23 = vpop.f32.mrb[63].mxu1 }
 0x36d   :  { %v6516_v24 = vadd.f32 %v8505_v21, %v6476_v20  ;;  %v7072_v21 = vlaneseq  ;;  %v7799_v23 = vld [vmem:[#allocation14] ss:$0 sm:$0xff] }
 0x36f   :  { %v7073_v22 = vand.u32 127, %v7072_v21 }
 0x371   :  { %vm7074_vm2 = vcmp.lt.s32.totalorder %v7073_v22, 3 }
 0x387   :  { %v8525_v25 = vpop.f32.mrb[64].mxu0 }
 0x388   :  { %v8526_v26 = vpop.f32.mrb[65].mxu0 }
 0x389   :  { %v8527_v27 = vadd.f32 %v8526_v26, %v8525_v25  ;;  %v8528_v28 = vpop.f32.mrb[66].mxu0  ;;  %v8547_v29 = vpop.f32.mrb[64].mxu1 }
 0x38a   :  { %v8529_v30 = vpop.f32.mrb[67].mxu0  ;;  %v8548_v31 = vpop.f32.mrb[65].mxu1 }
 0x38b   :  { %v6556_v32 = vadd.f32 %v8527_v27, %v6516_v24  ;;  %v8549_v33 = vadd.f32 %v8548_v31, %v8547_v29  ;;  %v8550_v34 = vpop.f32.mrb[66].mxu1 }
 0x38c   :  { %v8551_v35 = vpop.f32.mrb[67].mxu1 }
 0x38d   :  { %v6596_v36 = vadd.f32 %v8549_v33, %v6556_v32 }
 0x3a7   :  { %v8569_v37 = vpop.f32.mrb[68].mxu0 }
 0x3a8   :  { %v8570_v38 = vpop.f32.mrb[69].mxu0 }
 0x3a9   :  { %v8571_v39 = vadd.f32 %v8570_v38, %v8569_v37  ;;  %v8572_v40 = vpop.f32.mrb[70].mxu0  ;;  %v8591_v41 = vpop.f32.mrb[68].mxu1 }
 0x3aa   :  { %v8573_v42 = vpop.f32.mrb[71].mxu0  ;;  %v8592_v44 = vpop.f32.mrb[69].mxu1 }
 0x3ab   :  { %v6636_v43 = vadd.f32 %v8571_v39, %v6596_v36  ;;  %v8593_v45 = vadd.f32 %v8592_v44, %v8591_v41  ;;  %v8594_v46 = vpop.f32.mrb[70].mxu1 }
 0x3ac   :  { %v8595_v47 = vpop.f32.mrb[71].mxu1 }
 0x3ad   :  { %v6676_v48 = vadd.f32 %v8593_v45, %v6636_v43 }
 0x3c7   :  { %v8613_v49 = vpop.f32.mrb[72].mxu0 }
 0x3c8   :  { %v8614_v50 = vpop.f32.mrb[73].mxu0 }
 0x3c9   :  { %v8615_v52 = vadd.f32 %v8614_v50, %v8613_v49  ;;  %v8616_v53 = vpop.f32.mrb[74].mxu0  ;;  %v6755_v54 = vpop.f32.mrb[72].mxu1 }
 0x3ca   :  { %v8617_v55 = vpop.f32.mrb[75].mxu0  ;;  %v8669_v56 = vpop.f32.mrb[73].mxu1 }
 0x3cb   :  { %v6716_v57 = vadd.f32 %v8615_v52, %v6676_v48  ;;  %v6758_v58 = vpop.f32.mrb[74].mxu1 }
 0x3cc   :  { %v8670_v59 = vpop.f32.mrb[75].mxu1 }
 0x3cd   :  { %v6756_v60 = vadd.f32 %v6755_v54, %v6716_v57 }
 0x3cf   :  { %v6761_v61 = vmax.f32 %v6756_v60, 0.0 }
 0x3d1   :  { %v6762_v62 = vpack.c.bf16 %v6761_v61, %v6761_v61 }
 0x3d3   :  { %8688 = vmatmul.mubr.bf16.vlgmr.msra.gmra.mrb[76].mxu0 %v6762_v62 }
 0x3d4   :  { %8719 = vmatprep.mubr.msk.bf16.mxu0 %vm9656_vm0, %v9655_v51  ;;  %8712 = vmatpush3.bf16.msra.mxu0 %v9427_v1 }
 0x3d5   :  { %8713 = vmatprep.subr.bf16.mxu0 %v9655_v51 }
 0x3d8   :  { %8714 = vmatpush3.bf16.msra.mxu0 %v9428_v2 }
 0x3d9   :  { %8715 = vmatprep.subr.bf16.mxu0 %v9655_v51 }
 0x3dc   :  { %8716 = vmatpush3.bf16.msra.mxu0 %v9429_v11 }
 0x3dd   :  { %8717 = vmatprep.subr.bf16.mxu0 %v9655_v51 }
 0x3e0   :  { %8718 = vmatpush3.bf16.msra.mxu0 %v9430_v12 }
 0x4a6   :  { %v6868_v4 = vpop.f32.mrb[76].mxu0 }
 0x4a7   :  { %v6869_v5 = vadd.f32 %v7781_v3, %v6868_v4  ;;  %v8689_v6 = vpop.f32.mrb[77].mxu0 }
 0x4a8   :  { %v6871_v7 = vpop.f32.mrb[78].mxu0 }
 0x4a9   :  { %v6874_v8 = vmax.f32 %v6869_v5, 0.0  ;;  %v8690_v9 = vpop.f32.mrb[79].mxu0 }
 0x4ab   :  { %v6875_v10 = vpack.c.bf16 %v6874_v8, %v6874_v8 }
 0x4ad   :  { %8708 = vmatmul.mubr.bf16.vlgmr.msra.gmra.mrb[76].mxu1 %v6875_v10 }
 0x580   :  { %v6981_v14 = vpop.f32.mrb[76].mxu1 }
 0x581   :  { %v6982_v15 = vadd.f32 %v7790_v13, %v6981_v14  ;;  %v8709_v16 = vpop.f32.mrb[77].mxu1 }
 0x582   :  { %v6984_v17 = vpop.f32.mrb[78].mxu1 }
 0x583   :  { %v6987_v18 = vmax.f32 %v6982_v15, 0.0  ;;  %v8710_v19 = vpop.f32.mrb[79].mxu1 }
 0x585   :  { %v6988_v20 = vpack.c.bf16 %v6987_v18, %v6987_v18 }
 0x587   :  { %8720 = vmatmul.mubr.msk.bf16.vlgmr.msra.gmra.mrb[80].mxu0 %vm7028_vm1, %v6988_v20 }
 0x65a   :  { %v7066_v24 = vpop.f32.mrb[80].mxu0 }
 0x65b   :  { %v7067_v25 = vadd.f32 %v7799_v23, %v7066_v24  ;;  %v8721_v26 = vpop.f32.mrb[81].mxu0 }
 0x65c   :  { %v7069_v51 = vpop.f32.mrb[82].mxu0 }
 0x65d   :  { %v8722_v27 = vpop.f32.mrb[83].mxu0  ;;  %v7075_v28 = vsel %vm7074_vm2, %v7067_v25, -inf }
 0x65e   :  { %7076 = vmax.xlane.f32.xlu0 %v7075_v28 }
 0x6eb   :  { %v7077_v29 = vpop.xlane.xlu0 %7076 }
 0x6ec   :  { %v7078_v30 = vsub.f32 %v7075_v28, %v7077_v29 }
 0x6ee   :  { %v7079_v31 = vmul.f32 1.442695, %v7078_v30 }
 0x6f0   :  { %9431 = vpow2.f32 %v7079_v31 }
 0x6fa   :  { %v9432_v32 = vpop.eup %9431 }
 0x6fb   :  { %7081 = vadd.xlane.f32.xlu0 %v9432_v32 }
 0x788   :  { %v7082_v33 = vpop.xlane.xlu0 %7081 }
 0x789   :  { %9433 = vrcp.f32 %v7082_v33 }
 0x793   :  { %v9434_v34 = vpop.eup %9433 }
 0x794   :  { %v7084_v35 = vmul.f32 %v9434_v34, %v9432_v32 }
 0x796   :  { %7085 = vst [vmem:[#allocation16] sm:$0xff] %v7084_v35 }
 0x797   :  { %9622 = shalt.err (!%p9619_p12)
}
 0x798   :  { %s9623_s14 = scalar_lea.hbm %s9927_s9, 128 }
 0x799   :  { %p9624_p13 = scmp.ne.s32.totalorder %s9927_s9, %s9623_s14  ;;  %p9627_p0 = scmp.lt.u32.totalorder %s9623_s14, %s9927_s9 }
 0x79b   :  { %p9629_p1 = pnand %p9627_p0, %p9624_p13 }
 0x79d   :  { %9632 = shalt.err (!%p9629_p1)
}
 0x79e   :  { %7095 = dma.vmem_to_hbm [thread:$0]  %s7093_s30, 128, %s9927_s9, [#allocation4]  }
 0x79f   :  { %9643 = dma.done.wait [#allocation4], 128  }
 0x7a0   :  { %9644 = vsyncadd [#allocation4], 4294967168 }
 0x7a1   :  { %7099 = vsyncpa [#allocation3], 1 }
 0x7a2   :  { %7100 = vsyncpa [#allocation6], 1 }
 0x7a3   :  { %7101 = vsyncpa [#allocation9], 1 }
 0x7a4   :  { %7102 = vsyncpa [#allocation12], 1 }
 0x7a5   :  { %7103 = vsyncpa [#allocation15], 1 }
 0x7a6   :  { %7104 = vsyncpa [#allocation4], 1 }

</bundles_post_ra>
